<compile_context>
chip_gen: v5e
topology: v5e:2x2
jax: 0.10.0
libtpu: 0.0.40
codegen_flags: <defaults>
</compile_context>

<pallas_src>
import functools

import jax
import jax.numpy as jnp
from jax.experimental import pallas as pl
from jax.experimental.pallas import tpu as pltpu

LN_EPS = 1e-5  # nn.LayerNorm default eps


def _dense_block_kernel(x_ref, w_ref, g_ref, bt_ref, a_ref, mavg_ref,
                        o_ref, skip_ref, win_ref,
                        *, depth, C, Fp, NT, Nbuf, Bb, maxdil):
    # x_ref    : (Bb, C, Nbuf)        zero-padded inputs, flattened (Tp*Fp) spatial on lanes
    # w_ref    : (depth, C, 6*Cmax)   bf16 conv weights, column order (tap, buffer-block, cin)
    # g_ref    : (depth, 1, Bb*NT)    LayerNorm gamma tiled over (batch, t, f), 0 at seam lanes
    # bt_ref   : (depth, 1, Bb*NT)    LayerNorm beta,  0 at seam lanes
    # a_ref    : (depth, C, 1)        PReLU per-channel slope
    # mavg_ref : (Bb*NT, Bb*NT)       bf16 block-diagonal F-averaging matrix (includes 1/F)
    # o_ref    : (Bb, C, NT)          last layer output (lane-dense slab, NCHW channel order)
    # skip_ref : (Cmax, Bb*Nbuf)      f32 padded skip buffer (append-only concat), batch on lanes
    # win_ref  : (6*Cmax, Bb*NT)      bf16 staging scratch for the fused-K conv matmul
    Cmax = C * depth
    wstart = maxdil * Fp + 1          # flat offset of (t=0, f=0) inside one padded buffer

    # Place the (pre-padded) input as channel block 0 of each batch item's slab.
    for bi in range(Bb):
        skip_ref[0:C, bi * Nbuf:(bi + 1) * Nbuf] = x_ref[bi].astype(jnp.float32)

    # Zero ONLY the pad fringe of channel blocks >= 1 (their NT window is fully rewritten
    # by the producing layer every grid step, and unwritten blocks are never read thanks
    # to the per-layer variable-K matmul below).
    if depth > 1:
        tail = Nbuf - wstart - NT
        for bi in range(Bb):
            off = bi * Nbuf
            skip_ref[C:Cmax, off:off + wstart] = jnp.zeros(
                (Cmax - C, wstart), jnp.float32)
            skip_ref[C:Cmax, off + wstart + NT:off + Nbuf] = jnp.zeros(
                (Cmax - C, tail), jnp.float32)

    mavg = mavg_ref[...]              # (Bb*NT, Bb*NT) bf16

    for i in range(depth):
        dil = 2 ** i
        nb = i + 1                    # number of valid channel blocks feeding layer i
        Kw = 6 * nb * C               # fused contraction size

        # Assemble the 6 shifted tap windows of blocks 0..i into the aligned bf16 scratch.
        for bi in range(Bb):
            off = bi * Nbuf
            for kh in range(2):
                ts = maxdil - dil * (1 - kh)
                for kw in range(3):
                    j = kh * 3 + kw
                    start = ts * Fp + kw
                    win_ref[j * nb * C:(j + 1) * nb * C, bi * NT:(bi + 1) * NT] = (
                        skip_ref[0:nb * C, off + start:off + start + NT]
                        .astype(jnp.bfloat16))

        # One wide-K conv matmul per layer (bias dropped: LayerNorm over F cancels it).
        acc = jnp.dot(w_ref[i, :, 0:Kw], win_ref[0:Kw, :],
                      preferred_element_type=jnp.float32)            # (C, Bb*NT) f32

        # LayerNorm over the F valid lanes of each (c, batch, t) group: 2 square matmuls.
        mean_full = jnp.dot(acc.astype(jnp.bfloat16), mavg,
                            preferred_element_type=jnp.float32)      # (C, Bb*NT)
        diff = acc - mean_full
        var_full = jnp.dot((diff * diff).astype(jnp.bfloat16), mavg,
                           preferred_element_type=jnp.float32)
        yn = diff * jax.lax.rsqrt(var_full + LN_EPS)
        yn = yn * g_ref[i] + bt_ref[i]          # seam lanes forced to exactly 0

        # PReLU, per output channel.
        out = jnp.where(yn > 0.0, yn, yn * a_ref[i])                  # (C, Bb*NT)

        if i + 1 < depth:
            # torch.cat([out, skip], dim=1) == append-only write into the next channel
            # block (weights are packed against this buffer order on the host).
            for bi in range(Bb):
                off = bi * Nbuf
                skip_ref[nb * C:(nb + 1) * C, off + wstart:off + wstart + NT] = (
                    out[:, bi * NT:(bi + 1) * NT])
        else:
            for bi in range(Bb):
                o_ref[bi] = out[:, bi * NT:(bi + 1) * NT].astype(o_ref.dtype)


def _prepare_params(params, depth, C, T, F, Fp, NT, Bb):
    """Host-side packing: per-layer fused-K bf16 weights, tiled LN/PReLU params, M_avg."""
    Cmax = C * depth
    Kmax = 6 * Cmax
    BNT = Bb * NT

    w_list, g_list, bt_list, a_list = [], [], [], []
    for i in range(depth):
        p = params[i]
        wt = jnp.transpose(p["w"], (0, 1, 3, 2))      # (2,3,Cin,Cout) -> (2,3,Cout,Cin)
        nb = i + 1
        cols = []
        for kh in range(2):
            for kw in range(3):
                for b in range(nb):
                    # Buffer block b (0=x, b>=1=out_{b-1}) maps to torch input block i-b
                    # (torch order is [out_{i-1}, ..., out_0, x]).
                    jt = i - b
                    cols.append(wt[kh, kw, :, jt * C:(jt + 1) * C])
        w_i = jnp.concatenate(cols, axis=-1)           # (C, 6*nb*C)
        w_i = jnp.pad(w_i, ((0, 0), (0, Kmax - w_i.shape[1])))
        w_list.append(w_i)

        gfull = jnp.pad(jnp.broadcast_to(p["gamma"], (T, F)), ((0, 0), (0, Fp - F)))
        btfull = jnp.pad(jnp.broadcast_to(p["beta"], (T, F)), ((0, 0), (0, Fp - F)))
        g_list.append(jnp.tile(gfull.reshape(1, NT), (1, Bb)))
        bt_list.append(jnp.tile(btfull.reshape(1, NT), (1, Bb)))
        a_list.append(p["alpha"].reshape(C, 1))

    w_all = jnp.stack(w_list).astype(jnp.bfloat16)     # (depth, C, 6*Cmax)
    g_all = jnp.stack(g_list).astype(jnp.float32)      # (depth, 1, Bb*NT)
    bt_all = jnp.stack(bt_list).astype(jnp.float32)    # (depth, 1, Bb*NT)
    a_all = jnp.stack(a_list).astype(jnp.float32)      # (depth, C, 1)

    # Block-diagonal averaging matrix over the F valid lanes of each (batch, t) group.
    # Entries are 0 or 1/F (= 2^-4 for F=16), exactly representable in bf16.
    cols = jnp.arange(BNT)
    grp = cols // Fp                                   # distinct per (batch, t) group
    val = (cols % Fp) < F
    mavg = ((grp[:, None] == grp[None, :]) & val[:, None] & val[None, :]).astype(
        jnp.float32) / F
    mavg = mavg.astype(jnp.bfloat16)                   # (Bb*NT, Bb*NT)
    return w_all, g_all, bt_all, a_all, mavg


def dense_block(x_nchw, params, depth, batch_block=None):
    """DenseBlock.forward. x_nchw: (B, C, T, F) -> (B, C, T, F)."""
    B, C, T, F = x_nchw.shape
    maxdil = 2 ** (depth - 1)
    Fp = F + 2                 # 1 pad column each side in F
    Tp = maxdil + T + 1        # maxdil causal pad rows + 1 trailing guard row
    Nbuf = Tp * Fp
    NT = T * Fp
    Cmax = C * depth

    if batch_block is None:
        # 2 batch items / grid step amortizes the serial grid on 1-TC v5e/v6e and widens
        # the matmul N to 288.  For v7x, keep B//Bb >= 2 when B >= 4 so both TCs are busy.
        batch_block = 2 if B % 2 == 0 else 1
    Bb = batch_block
    assert B % Bb == 0, "batch_block must divide B"
    G = B // Bb
    BNT = Bb * NT

    # Single input pad + flatten (replaces per-layer pad/concat HBM round-trips).
    x_flat = jnp.pad(x_nchw, ((0, 0), (0, 0), (maxdil, 1), (1, 1))
                     ).reshape(B, C, Nbuf).astype(jnp.float32)

    w_all, g_all, bt_all, a_all, mavg = _prepare_params(
        params, depth, C, T, F, Fp, NT, Bb)

    kern = functools.partial(_dense_block_kernel, depth=depth, C=C, Fp=Fp,
                             NT=NT, Nbuf=Nbuf, Bb=Bb, maxdil=maxdil)

    # Advisory cost estimate (kernel is tiny / latency-bound inside a larger model).
    conv_flops = sum(2 * C * (6 * C * (i + 1)) * BNT for i in range(depth))
    ln_flops = depth * 2 * (2 * C * BNT * BNT)
    flops = G * (conv_flops + ln_flops)
    transcendentals = G * depth * C * BNT              # rsqrt
    bytes_accessed = (x_flat.size * 4 + w_all.size * 2 + g_all.size * 4
                      + bt_all.size * 4 + a_all.size * 4 + mavg.size * 2
                      + B * C * NT * jnp.dtype(x_nchw.dtype).itemsize)

    out_flat = pl.pallas_call(
        kern,
        out_shape=jax.ShapeDtypeStruct((B, C, NT), x_nchw.dtype),
        grid=(G,),
        in_specs=[
            pl.BlockSpec((Bb, C, Nbuf), lambda g: (g, 0, 0)),
            pl.BlockSpec((depth, C, 6 * Cmax), lambda g: (0, 0, 0)),
            pl.BlockSpec((depth, 1, BNT), lambda g: (0, 0, 0)),
            pl.BlockSpec((depth, 1, BNT), lambda g: (0, 0, 0)),
            pl.BlockSpec((depth, C, 1), lambda g: (0, 0, 0)),
            pl.BlockSpec((BNT, BNT), lambda g: (0, 0)),
        ],
        out_specs=pl.BlockSpec((Bb, C, NT), lambda g: (g, 0, 0)),
        scratch_shapes=[pltpu.VMEM((Cmax, Bb * Nbuf), jnp.float32),
                        pltpu.VMEM((6 * Cmax, BNT), jnp.bfloat16)],
        compiler_params=pltpu.CompilerParams(
            dimension_semantics=("parallel",)),
        cost_estimate=pl.CostEstimate(flops=flops,
                                      transcendentals=transcendentals,
                                      bytes_accessed=bytes_accessed),
    )(x_flat, w_all, g_all, bt_all, a_all, mavg)

    # Drop the 2 seam lanes per time step; already NCHW — no transpose needed.
    return out_flat.reshape(B, C, T, Fp)[..., :F]


def init_params(key, input_size, depth, in_channels):
    """Deterministic synthetic parameters matching the module's shapes (HWIO conv weights)."""
    params = []
    for i in range(depth):
        cin = in_channels * (i + 1)
        key, k1, k2 = jax.random.split(key, 3)
        params.append(dict(
            w=jax.random.normal(k1, (2, 3, cin, in_channels), jnp.float32) * 0.1,
            b=jax.random.normal(k2, (in_channels,), jnp.float32) * 0.1,
            gamma=jnp.ones((input_size,), jnp.float32),         # LayerNorm default init
            beta=jnp.zeros((input_size,), jnp.float32),
            alpha=jnp.full((in_channels,), 0.25, jnp.float32),  # PReLU default init
        ))
    return params


def dense_block_ref(x_nchw, params, depth):
    """Pure-JAX f32 reference (lax conv) for validation."""
    skip = jnp.transpose(x_nchw, (0, 2, 3, 1))
    out = None
    for i in range(depth):
        dil = 2 ** i
        p = params[i]
        x_pad = jnp.pad(skip, ((0, 0), (dil, 0), (1, 1), (0, 0)))
        conv = jax.lax.conv_general_dilated(
            x_pad, p["w"], window_strides=(1, 1), padding="VALID",
            rhs_dilation=(dil, 1),
            dimension_numbers=("NHWC", "HWIO", "NHWC")) + p["b"]
        mean = conv.mean(axis=2, keepdims=True)
        var = ((conv - mean) ** 2).mean(axis=2, keepdims=True)
        yn = (conv - mean) / jnp.sqrt(var + LN_EPS)
        yn = yn * p["gamma"][None, None, :, None] + p["beta"][None, None, :, None]
        out = jnp.where(yn > 0.0, yn, yn * p["alpha"][None, None, None, :])
        skip = jnp.concatenate([out, skip], axis=-1)
    return jnp.transpose(out, (0, 3, 1, 2))


if __name__ == "__main__":
    B, C, T, F = 2, 4, 8, 16          # batch, in_channels, time, freq (=input_size)
    depth = 5

    key = jax.random.PRNGKey(0)
    kx, kp = jax.random.split(key)
    x = jax.random.normal(kx, (B, C, T, F), jnp.float32)
    params = init_params(kp, input_size=F, depth=depth, in_channels=C)

    out = dense_block(x, params, depth)
    out = jax.block_until_ready(out)
    assert out.shape == (B, C, T, F)

    ref = dense_block_ref(x, params, depth)
    # bf16 MXU operands (per perf review) => expected deviation vs the f32 reference is
    # O(1e-3..1e-2) after 5 LayerNorm'd layers.  5e-2 still robustly catches structural
    # bugs (wrong tap geometry / channel permutation / LN masking give O(1) errors).
    assert bool(jnp.allclose(out, ref, rtol=5e-2, atol=5e-2)), "mismatch vs reference"

    print("KERNEL_OK")
</pallas_src>

<mosaic_0001>
module attributes {stable_mosaic.version = 11 : i64} {
  func.func @_dense_block_kernel(%arg0: i32, %arg1: memref<2x4x450xf32, #tpu.memory_space<vmem>>, %arg2: memref<5x4x120xbf16, #tpu.memory_space<vmem>>, %arg3: memref<5x1x288xf32, #tpu.memory_space<vmem>>, %arg4: memref<5x1x288xf32, #tpu.memory_space<vmem>>, %arg5: memref<5x4x1xf32, #tpu.memory_space<vmem>>, %arg6: memref<288x288xbf16, #tpu.memory_space<vmem>>, %arg7: memref<2x4x144xf32, #tpu.memory_space<vmem>>, %arg8: memref<20x900xf32, #tpu.memory_space<vmem>>, %arg9: memref<120x288xbf16, #tpu.memory_space<vmem>>) attributes {dimension_semantics = [#tpu.dimension_semantics<parallel>], iteration_bounds = array<i64: 1>, scalar_prefetch = 0 : i64, scratch_operands = 2 : i64, tpu.core_type = #tpu.core_type<tc>, window_params = [{transform_indices = @transform_0, window_bounds = array<i64: 2, 4, 450>}, {pipeline_mode = #tpu.pipeline_mode<synchronous>, transform_indices = @transform_1, window_bounds = array<i64: 5, 4, 120>}, {pipeline_mode = #tpu.pipeline_mode<synchronous>, transform_indices = @transform_2, window_bounds = array<i64: 5, 1, 288>}, {pipeline_mode = #tpu.pipeline_mode<synchronous>, transform_indices = @transform_3, window_bounds = array<i64: 5, 1, 288>}, {pipeline_mode = #tpu.pipeline_mode<synchronous>, transform_indices = @transform_4, window_bounds = array<i64: 5, 4, 1>}, {pipeline_mode = #tpu.pipeline_mode<synchronous>, transform_indices = @transform_5, window_bounds = array<i64: 288, 288>}, {transform_indices = @transform_6, window_bounds = array<i64: 2, 4, 144>}]} {
    %c0 = arith.constant 0 : index
    %c0_0 = arith.constant 0 : index
    %c0_1 = arith.constant 0 : index
    %0 = vector.load %arg1[%c0, %c0_0, %c0_1] : memref<2x4x450xf32, #tpu.memory_space<vmem>>, vector<1x4x450xf32>
    %1 = vector.shape_cast %0 : vector<1x4x450xf32> to vector<4x450xf32>
    %c0_2 = arith.constant 0 : index
    %c0_3 = arith.constant 0 : index
    %2 = vector.load %arg8[%c0_2, %c0_3] : memref<20x900xf32, #tpu.memory_space<vmem>>, vector<4x450xf32>
    tpu.vector_store %arg8[%c0_2, %c0_3], %1 {strides = array<i32>} : memref<20x900xf32, #tpu.memory_space<vmem>>, vector<4x450xf32>,
    %c1 = arith.constant 1 : index
    %c0_4 = arith.constant 0 : index
    %c0_5 = arith.constant 0 : index
    %3 = vector.load %arg1[%c1, %c0_4, %c0_5] : memref<2x4x450xf32, #tpu.memory_space<vmem>>, vector<1x4x450xf32>
    %4 = vector.shape_cast %3 : vector<1x4x450xf32> to vector<4x450xf32>
    %c0_6 = arith.constant 0 : index
    %c450 = arith.constant 450 : index
    %5 = vector.load %arg8[%c0_6, %c450] : memref<20x900xf32, #tpu.memory_space<vmem>>, vector<4x450xf32>
    tpu.vector_store %arg8[%c0_6, %c450], %4 {strides = array<i32>} : memref<20x900xf32, #tpu.memory_space<vmem>>, vector<4x450xf32>,
    %cst = arith.constant 0.000000e+00 : f32
    %6 = vector.broadcast %cst : f32 to vector<16x289xf32>
    %c4 = arith.constant 4 : index
    %c0_7 = arith.constant 0 : index
    %7 = vector.load %arg8[%c4, %c0_7] : memref<20x900xf32, #tpu.memory_space<vmem>>, vector<16x289xf32>
    tpu.vector_store %arg8[%c4, %c0_7], %6 {strides = array<i32>} : memref<20x900xf32, #tpu.memory_space<vmem>>, vector<16x289xf32>,
    %cst_8 = arith.constant 0.000000e+00 : f32
    %8 = vector.broadcast %cst_8 : f32 to vector<16x17xf32>
    %c4_9 = arith.constant 4 : index
    %c433 = arith.constant 433 : index
    %9 = vector.load %arg8[%c4_9, %c433] : memref<20x900xf32, #tpu.memory_space<vmem>>, vector<16x17xf32>
    tpu.vector_store %arg8[%c4_9, %c433], %8 {strides = array<i32>} : memref<20x900xf32, #tpu.memory_space<vmem>>, vector<16x17xf32>,
    %cst_10 = arith.constant 0.000000e+00 : f32
    %10 = vector.broadcast %cst_10 : f32 to vector<16x289xf32>
    %c4_11 = arith.constant 4 : index
    %c450_12 = arith.constant 450 : index
    %11 = vector.load %arg8[%c4_11, %c450_12] : memref<20x900xf32, #tpu.memory_space<vmem>>, vector<16x289xf32>
    tpu.vector_store %arg8[%c4_11, %c450_12], %10 {strides = array<i32>} : memref<20x900xf32, #tpu.memory_space<vmem>>, vector<16x289xf32>,
    %cst_13 = arith.constant 0.000000e+00 : f32
    %12 = vector.broadcast %cst_13 : f32 to vector<16x17xf32>
    %c4_14 = arith.constant 4 : index
    %c883 = arith.constant 883 : index
    %13 = vector.load %arg8[%c4_14, %c883] : memref<20x900xf32, #tpu.memory_space<vmem>>, vector<16x17xf32>
    tpu.vector_store %arg8[%c4_14, %c883], %12 {strides = array<i32>} : memref<20x900xf32, #tpu.memory_space<vmem>>, vector<16x17xf32>,
    %c0_15 = arith.constant 0 : index
    %c0_16 = arith.constant 0 : index
    %14 = vector.load %arg6[%c0_15, %c0_16] : memref<288x288xbf16, #tpu.memory_space<vmem>>, vector<288x288xbf16>
    %c0_17 = arith.constant 0 : index
    %c270 = arith.constant 270 : index
    %15 = vector.load %arg8[%c0_17, %c270] : memref<20x900xf32, #tpu.memory_space<vmem>>, vector<4x144xf32>
    %16 = arith.truncf %15 : vector<4x144xf32> to vector<4x144xbf16>
    %c0_18 = arith.constant 0 : index
    %c0_19 = arith.constant 0 : index
    %17 = vector.load %arg9[%c0_18, %c0_19] : memref<120x288xbf16, #tpu.memory_space<vmem>>, vector<4x144xbf16>
    tpu.vector_store %arg9[%c0_18, %c0_19], %16 {strides = array<i32>} : memref<120x288xbf16, #tpu.memory_space<vmem>>, vector<4x144xbf16>,
    %c0_20 = arith.constant 0 : index
    %c271 = arith.constant 271 : index
    %18 = vector.load %arg8[%c0_20, %c271] : memref<20x900xf32, #tpu.memory_space<vmem>>, vector<4x144xf32>
    %19 = arith.truncf %18 : vector<4x144xf32> to vector<4x144xbf16>
    %c4_21 = arith.constant 4 : index
    %c0_22 = arith.constant 0 : index
    %20 = vector.load %arg9[%c4_21, %c0_22] : memref<120x288xbf16, #tpu.memory_space<vmem>>, vector<4x144xbf16>
    tpu.vector_store %arg9[%c4_21, %c0_22], %19 {strides = array<i32>} : memref<120x288xbf16, #tpu.memory_space<vmem>>, vector<4x144xbf16>,
    %c0_23 = arith.constant 0 : index
    %c272 = arith.constant 272 : index
    %21 = vector.load %arg8[%c0_23, %c272] : memref<20x900xf32, #tpu.memory_space<vmem>>, vector<4x144xf32>
    %22 = arith.truncf %21 : vector<4x144xf32> to vector<4x144xbf16>
    %c8 = arith.constant 8 : index
    %c0_24 = arith.constant 0 : index
    %23 = vector.load %arg9[%c8, %c0_24] : memref<120x288xbf16, #tpu.memory_space<vmem>>, vector<4x144xbf16>
    tpu.vector_store %arg9[%c8, %c0_24], %22 {strides = array<i32>} : memref<120x288xbf16, #tpu.memory_space<vmem>>, vector<4x144xbf16>,
    %c0_25 = arith.constant 0 : index
    %c288 = arith.constant 288 : index
    %24 = vector.load %arg8[%c0_25, %c288] : memref<20x900xf32, #tpu.memory_space<vmem>>, vector<4x144xf32>
    %25 = arith.truncf %24 : vector<4x144xf32> to vector<4x144xbf16>
    %c12 = arith.constant 12 : index
    %c0_26 = arith.constant 0 : index
    %26 = vector.load %arg9[%c12, %c0_26] : memref<120x288xbf16, #tpu.memory_space<vmem>>, vector<4x144xbf16>
    tpu.vector_store %arg9[%c12, %c0_26], %25 {strides = array<i32>} : memref<120x288xbf16, #tpu.memory_space<vmem>>, vector<4x144xbf16>,
    %c0_27 = arith.constant 0 : index
    %c289 = arith.constant 289 : index
    %27 = vector.load %arg8[%c0_27, %c289] : memref<20x900xf32, #tpu.memory_space<vmem>>, vector<4x144xf32>
    %28 = arith.truncf %27 : vector<4x144xf32> to vector<4x144xbf16>
    %c16 = arith.constant 16 : index
    %c0_28 = arith.constant 0 : index
    %29 = vector.load %arg9[%c16, %c0_28] : memref<120x288xbf16, #tpu.memory_space<vmem>>, vector<4x144xbf16>
    tpu.vector_store %arg9[%c16, %c0_28], %28 {strides = array<i32>} : memref<120x288xbf16, #tpu.memory_space<vmem>>, vector<4x144xbf16>,
    %c0_29 = arith.constant 0 : index
    %c290 = arith.constant 290 : index
    %30 = vector.load %arg8[%c0_29, %c290] : memref<20x900xf32, #tpu.memory_space<vmem>>, vector<4x144xf32>
    %31 = arith.truncf %30 : vector<4x144xf32> to vector<4x144xbf16>
    %c20 = arith.constant 20 : index
    %c0_30 = arith.constant 0 : index
    %32 = vector.load %arg9[%c20, %c0_30] : memref<120x288xbf16, #tpu.memory_space<vmem>>, vector<4x144xbf16>
    tpu.vector_store %arg9[%c20, %c0_30], %31 {strides = array<i32>} : memref<120x288xbf16, #tpu.memory_space<vmem>>, vector<4x144xbf16>,
    %c0_31 = arith.constant 0 : index
    %c720 = arith.constant 720 : index
    %33 = vector.load %arg8[%c0_31, %c720] : memref<20x900xf32, #tpu.memory_space<vmem>>, vector<4x144xf32>
    %34 = arith.truncf %33 : vector<4x144xf32> to vector<4x144xbf16>
    %c0_32 = arith.constant 0 : index
    %c144 = arith.constant 144 : index
    %35 = vector.load %arg9[%c0_32, %c144] : memref<120x288xbf16, #tpu.memory_space<vmem>>, vector<4x144xbf16>
    tpu.vector_store %arg9[%c0_32, %c144], %34 {strides = array<i32>} : memref<120x288xbf16, #tpu.memory_space<vmem>>, vector<4x144xbf16>,
    %c0_33 = arith.constant 0 : index
    %c721 = arith.constant 721 : index
    %36 = vector.load %arg8[%c0_33, %c721] : memref<20x900xf32, #tpu.memory_space<vmem>>, vector<4x144xf32>
    %37 = arith.truncf %36 : vector<4x144xf32> to vector<4x144xbf16>
    %c4_34 = arith.constant 4 : index
    %c144_35 = arith.constant 144 : index
    %38 = vector.load %arg9[%c4_34, %c144_35] : memref<120x288xbf16, #tpu.memory_space<vmem>>, vector<4x144xbf16>
    tpu.vector_store %arg9[%c4_34, %c144_35], %37 {strides = array<i32>} : memref<120x288xbf16, #tpu.memory_space<vmem>>, vector<4x144xbf16>,
    %c0_36 = arith.constant 0 : index
    %c722 = arith.constant 722 : index
    %39 = vector.load %arg8[%c0_36, %c722] : memref<20x900xf32, #tpu.memory_space<vmem>>, vector<4x144xf32>
    %40 = arith.truncf %39 : vector<4x144xf32> to vector<4x144xbf16>
    %c8_37 = arith.constant 8 : index
    %c144_38 = arith.constant 144 : index
    %41 = vector.load %arg9[%c8_37, %c144_38] : memref<120x288xbf16, #tpu.memory_space<vmem>>, vector<4x144xbf16>
    tpu.vector_store %arg9[%c8_37, %c144_38], %40 {strides = array<i32>} : memref<120x288xbf16, #tpu.memory_space<vmem>>, vector<4x144xbf16>,
    %c0_39 = arith.constant 0 : index
    %c738 = arith.constant 738 : index
    %42 = vector.load %arg8[%c0_39, %c738] : memref<20x900xf32, #tpu.memory_space<vmem>>, vector<4x144xf32>
    %43 = arith.truncf %42 : vector<4x144xf32> to vector<4x144xbf16>
    %c12_40 = arith.constant 12 : index
    %c144_41 = arith.constant 144 : index
    %44 = vector.load %arg9[%c12_40, %c144_41] : memref<120x288xbf16, #tpu.memory_space<vmem>>, vector<4x144xbf16>
    tpu.vector_store %arg9[%c12_40, %c144_41], %43 {strides = array<i32>} : memref<120x288xbf16, #tpu.memory_space<vmem>>, vector<4x144xbf16>,
    %c0_42 = arith.constant 0 : index
    %c739 = arith.constant 739 : index
    %45 = vector.load %arg8[%c0_42, %c739] : memref<20x900xf32, #tpu.memory_space<vmem>>, vector<4x144xf32>
    %46 = arith.truncf %45 : vector<4x144xf32> to vector<4x144xbf16>
    %c16_43 = arith.constant 16 : index
    %c144_44 = arith.constant 144 : index
    %47 = vector.load %arg9[%c16_43, %c144_44] : memref<120x288xbf16, #tpu.memory_space<vmem>>, vector<4x144xbf16>
    tpu.vector_store %arg9[%c16_43, %c144_44], %46 {strides = array<i32>} : memref<120x288xbf16, #tpu.memory_space<vmem>>, vector<4x144xbf16>,
    %c0_45 = arith.constant 0 : index
    %c740 = arith.constant 740 : index
    %48 = vector.load %arg8[%c0_45, %c740] : memref<20x900xf32, #tpu.memory_space<vmem>>, vector<4x144xf32>
    %49 = arith.truncf %48 : vector<4x144xf32> to vector<4x144xbf16>
    %c20_46 = arith.constant 20 : index
    %c144_47 = arith.constant 144 : index
    %50 = vector.load %arg9[%c20_46, %c144_47] : memref<120x288xbf16, #tpu.memory_space<vmem>>, vector<4x144xbf16>
    tpu.vector_store %arg9[%c20_46, %c144_47], %49 {strides = array<i32>} : memref<120x288xbf16, #tpu.memory_space<vmem>>, vector<4x144xbf16>,
    %c0_48 = arith.constant 0 : index
    %c0_49 = arith.constant 0 : index
    %c0_50 = arith.constant 0 : index
    %51 = vector.load %arg2[%c0_48, %c0_49, %c0_50] : memref<5x4x120xbf16, #tpu.memory_space<vmem>>, vector<1x4x24xbf16>
    %52 = vector.shape_cast %51 : vector<1x4x24xbf16> to vector<4x24xbf16>
    %c0_51 = arith.constant 0 : index
    %c0_52 = arith.constant 0 : index
    %53 = vector.load %arg9[%c0_51, %c0_52] : memref<120x288xbf16, #tpu.memory_space<vmem>>, vector<24x288xbf16>
    %cst_53 = arith.constant dense<0.000000e+00> : vector<4x288xf32>
    %54 = tpu.matmul %52, %53, %cst_53 {dimension_numbers = #tpu.dot_dimension_numbers<[1], [0], [0], [1], [0, 0, 1, 1], [], []>} : vector<4x24xbf16>, vector<24x288xbf16>, vector<4x288xf32> -> vector<4x288xf32>
    %55 = arith.truncf %54 : vector<4x288xf32> to vector<4x288xbf16>
    %cst_54 = arith.constant dense<0.000000e+00> : vector<4x288xf32>
    %56 = tpu.matmul %55, %14, %cst_54 {dimension_numbers = #tpu.dot_dimension_numbers<[1], [0], [0], [1], [0, 0, 1, 1], [], []>} : vector<4x288xbf16>, vector<288x288xbf16>, vector<4x288xf32> -> vector<4x288xf32>
    %57 = arith.subf %54, %56 : vector<4x288xf32>
    %58 = arith.mulf %57, %57 : vector<4x288xf32>
    %59 = arith.truncf %58 : vector<4x288xf32> to vector<4x288xbf16>
    %cst_55 = arith.constant dense<0.000000e+00> : vector<4x288xf32>
    %60 = tpu.matmul %59, %14, %cst_55 {dimension_numbers = #tpu.dot_dimension_numbers<[1], [0], [0], [1], [0, 0, 1, 1], [], []>} : vector<4x288xbf16>, vector<288x288xbf16>, vector<4x288xf32> -> vector<4x288xf32>
    %cst_56 = arith.constant 9.99999974E-6 : f32
    %61 = vector.broadcast %cst_56 : f32 to vector<4x288xf32>
    %62 = arith.addf %60, %61 : vector<4x288xf32>
    %63 = math.rsqrt %62 : vector<4x288xf32>
    %64 = arith.mulf %57, %63 : vector<4x288xf32>
    %c0_57 = arith.constant 0 : index
    %c0_58 = arith.constant 0 : index
    %c0_59 = arith.constant 0 : index
    %65 = vector.load %arg3[%c0_57, %c0_58, %c0_59] : memref<5x1x288xf32, #tpu.memory_space<vmem>>, vector<1x1x288xf32>
    %66 = vector.shape_cast %65 : vector<1x1x288xf32> to vector<1x288xf32>
    %67 = vector.broadcast %66 : vector<1x288xf32> to vector<4x288xf32>
    %68 = arith.mulf %64, %67 : vector<4x288xf32>
    %c0_60 = arith.constant 0 : index
    %c0_61 = arith.constant 0 : index
    %c0_62 = arith.constant 0 : index
    %69 = vector.load %arg4[%c0_60, %c0_61, %c0_62] : memref<5x1x288xf32, #tpu.memory_space<vmem>>, vector<1x1x288xf32>
    %70 = vector.shape_cast %69 : vector<1x1x288xf32> to vector<1x288xf32>
    %71 = vector.broadcast %70 : vector<1x288xf32> to vector<4x288xf32>
    %72 = arith.addf %68, %71 : vector<4x288xf32>
    %cst_63 = arith.constant 0.000000e+00 : f32
    %73 = vector.broadcast %cst_63 : f32 to vector<4x288xf32>
    %74 = arith.cmpf ogt, %72, %73 : vector<4x288xf32>
    %c0_64 = arith.constant 0 : index
    %c0_65 = arith.constant 0 : index
    %c0_66 = arith.constant 0 : index
    %75 = vector.load %arg5[%c0_64, %c0_65, %c0_66] : memref<5x4x1xf32, #tpu.memory_space<vmem>>, vector<1x4x1xf32>
    %76 = vector.shape_cast %75 : vector<1x4x1xf32> to vector<4x1xf32>
    %77 = vector.broadcast %76 : vector<4x1xf32> to vector<4x288xf32>
    %78 = arith.mulf %72, %77 : vector<4x288xf32>
    %79 = arith.select %74, %72, %78 : vector<4x288xi1>, vector<4x288xf32>
    %80 = vector.extract_strided_slice %79 {offsets = [0, 0], sizes = [4, 144], strides = [1, 1]} : vector<4x288xf32> to vector<4x144xf32>
    %c4_67 = arith.constant 4 : index
    %c289_68 = arith.constant 289 : index
    %81 = vector.load %arg8[%c4_67, %c289_68] : memref<20x900xf32, #tpu.memory_space<vmem>>, vector<4x144xf32>
    tpu.vector_store %arg8[%c4_67, %c289_68], %80 {strides = array<i32>} : memref<20x900xf32, #tpu.memory_space<vmem>>, vector<4x144xf32>,
    %82 = vector.extract_strided_slice %79 {offsets = [0, 144], sizes = [4, 144], strides = [1, 1]} : vector<4x288xf32> to vector<4x144xf32>
    %c4_69 = arith.constant 4 : index
    %c739_70 = arith.constant 739 : index
    %83 = vector.load %arg8[%c4_69, %c739_70] : memref<20x900xf32, #tpu.memory_space<vmem>>, vector<4x144xf32>
    tpu.vector_store %arg8[%c4_69, %c739_70], %82 {strides = array<i32>} : memref<20x900xf32, #tpu.memory_space<vmem>>, vector<4x144xf32>,
    %c0_71 = arith.constant 0 : index
    %c252 = arith.constant 252 : index
    %84 = vector.load %arg8[%c0_71, %c252] : memref<20x900xf32, #tpu.memory_space<vmem>>, vector<8x144xf32>
    %85 = arith.truncf %84 : vector<8x144xf32> to vector<8x144xbf16>
    %c0_72 = arith.constant 0 : index
    %c0_73 = arith.constant 0 : index
    %86 = vector.load %arg9[%c0_72, %c0_73] : memref<120x288xbf16, #tpu.memory_space<vmem>>, vector<8x144xbf16>
    tpu.vector_store %arg9[%c0_72, %c0_73], %85 {strides = array<i32>} : memref<120x288xbf16, #tpu.memory_space<vmem>>, vector<8x144xbf16>,
    %c0_74 = arith.constant 0 : index
    %c253 = arith.constant 253 : index
    %87 = vector.load %arg8[%c0_74, %c253] : memref<20x900xf32, #tpu.memory_space<vmem>>, vector<8x144xf32>
    %88 = arith.truncf %87 : vector<8x144xf32> to vector<8x144xbf16>
    %c8_75 = arith.constant 8 : index
    %c0_76 = arith.constant 0 : index
    %89 = vector.load %arg9[%c8_75, %c0_76] : memref<120x288xbf16, #tpu.memory_space<vmem>>, vector<8x144xbf16>
    tpu.vector_store %arg9[%c8_75, %c0_76], %88 {strides = array<i32>} : memref<120x288xbf16, #tpu.memory_space<vmem>>, vector<8x144xbf16>,
    %c0_77 = arith.constant 0 : index
    %c254 = arith.constant 254 : index
    %90 = vector.load %arg8[%c0_77, %c254] : memref<20x900xf32, #tpu.memory_space<vmem>>, vector<8x144xf32>
    %91 = arith.truncf %90 : vector<8x144xf32> to vector<8x144xbf16>
    %c16_78 = arith.constant 16 : index
    %c0_79 = arith.constant 0 : index
    %92 = vector.load %arg9[%c16_78, %c0_79] : memref<120x288xbf16, #tpu.memory_space<vmem>>, vector<8x144xbf16>
    tpu.vector_store %arg9[%c16_78, %c0_79], %91 {strides = array<i32>} : memref<120x288xbf16, #tpu.memory_space<vmem>>, vector<8x144xbf16>,
    %c0_80 = arith.constant 0 : index
    %c288_81 = arith.constant 288 : index
    %93 = vector.load %arg8[%c0_80, %c288_81] : memref<20x900xf32, #tpu.memory_space<vmem>>, vector<8x144xf32>
    %94 = arith.truncf %93 : vector<8x144xf32> to vector<8x144xbf16>
    %c24 = arith.constant 24 : index
    %c0_82 = arith.constant 0 : index
    %95 = vector.load %arg9[%c24, %c0_82] : memref<120x288xbf16, #tpu.memory_space<vmem>>, vector<8x144xbf16>
    tpu.vector_store %arg9[%c24, %c0_82], %94 {strides = array<i32>} : memref<120x288xbf16, #tpu.memory_space<vmem>>, vector<8x144xbf16>,
    %c0_83 = arith.constant 0 : index
    %c289_84 = arith.constant 289 : index
    %96 = vector.load %arg8[%c0_83, %c289_84] : memref<20x900xf32, #tpu.memory_space<vmem>>, vector<8x144xf32>
    %97 = arith.truncf %96 : vector<8x144xf32> to vector<8x144xbf16>
    %c32 = arith.constant 32 : index
    %c0_85 = arith.constant 0 : index
    %98 = vector.load %arg9[%c32, %c0_85] : memref<120x288xbf16, #tpu.memory_space<vmem>>, vector<8x144xbf16>
    tpu.vector_store %arg9[%c32, %c0_85], %97 {strides = array<i32>} : memref<120x288xbf16, #tpu.memory_space<vmem>>, vector<8x144xbf16>,
    %c0_86 = arith.constant 0 : index
    %c290_87 = arith.constant 290 : index
    %99 = vector.load %arg8[%c0_86, %c290_87] : memref<20x900xf32, #tpu.memory_space<vmem>>, vector<8x144xf32>
    %100 = arith.truncf %99 : vector<8x144xf32> to vector<8x144xbf16>
    %c40 = arith.constant 40 : index
    %c0_88 = arith.constant 0 : index
    %101 = vector.load %arg9[%c40, %c0_88] : memref<120x288xbf16, #tpu.memory_space<vmem>>, vector<8x144xbf16>
    tpu.vector_store %arg9[%c40, %c0_88], %100 {strides = array<i32>} : memref<120x288xbf16, #tpu.memory_space<vmem>>, vector<8x144xbf16>,
    %c0_89 = arith.constant 0 : index
    %c702 = arith.constant 702 : index
    %102 = vector.load %arg8[%c0_89, %c702] : memref<20x900xf32, #tpu.memory_space<vmem>>, vector<8x144xf32>
    %103 = arith.truncf %102 : vector<8x144xf32> to vector<8x144xbf16>
    %c0_90 = arith.constant 0 : index
    %c144_91 = arith.constant 144 : index
    %104 = vector.load %arg9[%c0_90, %c144_91] : memref<120x288xbf16, #tpu.memory_space<vmem>>, vector<8x144xbf16>
    tpu.vector_store %arg9[%c0_90, %c144_91], %103 {strides = array<i32>} : memref<120x288xbf16, #tpu.memory_space<vmem>>, vector<8x144xbf16>,
    %c0_92 = arith.constant 0 : index
    %c703 = arith.constant 703 : index
    %105 = vector.load %arg8[%c0_92, %c703] : memref<20x900xf32, #tpu.memory_space<vmem>>, vector<8x144xf32>
    %106 = arith.truncf %105 : vector<8x144xf32> to vector<8x144xbf16>
    %c8_93 = arith.constant 8 : index
    %c144_94 = arith.constant 144 : index
    %107 = vector.load %arg9[%c8_93, %c144_94] : memref<120x288xbf16, #tpu.memory_space<vmem>>, vector<8x144xbf16>
    tpu.vector_store %arg9[%c8_93, %c144_94], %106 {strides = array<i32>} : memref<120x288xbf16, #tpu.memory_space<vmem>>, vector<8x144xbf16>,
    %c0_95 = arith.constant 0 : index
    %c704 = arith.constant 704 : index
    %108 = vector.load %arg8[%c0_95, %c704] : memref<20x900xf32, #tpu.memory_space<vmem>>, vector<8x144xf32>
    %109 = arith.truncf %108 : vector<8x144xf32> to vector<8x144xbf16>
    %c16_96 = arith.constant 16 : index
    %c144_97 = arith.constant 144 : index
    %110 = vector.load %arg9[%c16_96, %c144_97] : memref<120x288xbf16, #tpu.memory_space<vmem>>, vector<8x144xbf16>
    tpu.vector_store %arg9[%c16_96, %c144_97], %109 {strides = array<i32>} : memref<120x288xbf16, #tpu.memory_space<vmem>>, vector<8x144xbf16>,
    %c0_98 = arith.constant 0 : index
    %c738_99 = arith.constant 738 : index
    %111 = vector.load %arg8[%c0_98, %c738_99] : memref<20x900xf32, #tpu.memory_space<vmem>>, vector<8x144xf32>
    %112 = arith.truncf %111 : vector<8x144xf32> to vector<8x144xbf16>
    %c24_100 = arith.constant 24 : index
    %c144_101 = arith.constant 144 : index
    %113 = vector.load %arg9[%c24_100, %c144_101] : memref<120x288xbf16, #tpu.memory_space<vmem>>, vector<8x144xbf16>
    tpu.vector_store %arg9[%c24_100, %c144_101], %112 {strides = array<i32>} : memref<120x288xbf16, #tpu.memory_space<vmem>>, vector<8x144xbf16>,
    %c0_102 = arith.constant 0 : index
    %c739_103 = arith.constant 739 : index
    %114 = vector.load %arg8[%c0_102, %c739_103] : memref<20x900xf32, #tpu.memory_space<vmem>>, vector<8x144xf32>
    %115 = arith.truncf %114 : vector<8x144xf32> to vector<8x144xbf16>
    %c32_104 = arith.constant 32 : index
    %c144_105 = arith.constant 144 : index
    %116 = vector.load %arg9[%c32_104, %c144_105] : memref<120x288xbf16, #tpu.memory_space<vmem>>, vector<8x144xbf16>
    tpu.vector_store %arg9[%c32_104, %c144_105], %115 {strides = array<i32>} : memref<120x288xbf16, #tpu.memory_space<vmem>>, vector<8x144xbf16>,
    %c0_106 = arith.constant 0 : index
    %c740_107 = arith.constant 740 : index
    %117 = vector.load %arg8[%c0_106, %c740_107] : memref<20x900xf32, #tpu.memory_space<vmem>>, vector<8x144xf32>
    %118 = arith.truncf %117 : vector<8x144xf32> to vector<8x144xbf16>
    %c40_108 = arith.constant 40 : index
    %c144_109 = arith.constant 144 : index
    %119 = vector.load %arg9[%c40_108, %c144_109] : memref<120x288xbf16, #tpu.memory_space<vmem>>, vector<8x144xbf16>
    tpu.vector_store %arg9[%c40_108, %c144_109], %118 {strides = array<i32>} : memref<120x288xbf16, #tpu.memory_space<vmem>>, vector<8x144xbf16>,
    %c1_110 = arith.constant 1 : index
    %c0_111 = arith.constant 0 : index
    %c0_112 = arith.constant 0 : index
    %120 = vector.load %arg2[%c1_110, %c0_111, %c0_112] : memref<5x4x120xbf16, #tpu.memory_space<vmem>>, vector<1x4x48xbf16>
    %121 = vector.shape_cast %120 : vector<1x4x48xbf16> to vector<4x48xbf16>
    %c0_113 = arith.constant 0 : index
    %c0_114 = arith.constant 0 : index
    %122 = vector.load %arg9[%c0_113, %c0_114] : memref<120x288xbf16, #tpu.memory_space<vmem>>, vector<48x288xbf16>
    %cst_115 = arith.constant dense<0.000000e+00> : vector<4x288xf32>
    %123 = tpu.matmul %121, %122, %cst_115 {dimension_numbers = #tpu.dot_dimension_numbers<[1], [0], [0], [1], [0, 0, 1, 1], [], []>} : vector<4x48xbf16>, vector<48x288xbf16>, vector<4x288xf32> -> vector<4x288xf32>
    %124 = arith.truncf %123 : vector<4x288xf32> to vector<4x288xbf16>
    %cst_116 = arith.constant dense<0.000000e+00> : vector<4x288xf32>
    %125 = tpu.matmul %124, %14, %cst_116 {dimension_numbers = #tpu.dot_dimension_numbers<[1], [0], [0], [1], [0, 0, 1, 1], [], []>} : vector<4x288xbf16>, vector<288x288xbf16>, vector<4x288xf32> -> vector<4x288xf32>
    %126 = arith.subf %123, %125 : vector<4x288xf32>
    %127 = arith.mulf %126, %126 : vector<4x288xf32>
    %128 = arith.truncf %127 : vector<4x288xf32> to vector<4x288xbf16>
    %cst_117 = arith.constant dense<0.000000e+00> : vector<4x288xf32>
    %129 = tpu.matmul %128, %14, %cst_117 {dimension_numbers = #tpu.dot_dimension_numbers<[1], [0], [0], [1], [0, 0, 1, 1], [], []>} : vector<4x288xbf16>, vector<288x288xbf16>, vector<4x288xf32> -> vector<4x288xf32>
    %cst_118 = arith.constant 9.99999974E-6 : f32
    %130 = vector.broadcast %cst_118 : f32 to vector<4x288xf32>
    %131 = arith.addf %129, %130 : vector<4x288xf32>
    %132 = math.rsqrt %131 : vector<4x288xf32>
    %133 = arith.mulf %126, %132 : vector<4x288xf32>
    %c1_119 = arith.constant 1 : index
    %c0_120 = arith.constant 0 : index
    %c0_121 = arith.constant 0 : index
    %134 = vector.load %arg3[%c1_119, %c0_120, %c0_121] : memref<5x1x288xf32, #tpu.memory_space<vmem>>, vector<1x1x288xf32>
    %135 = vector.shape_cast %134 : vector<1x1x288xf32> to vector<1x288xf32>
    %136 = vector.broadcast %135 : vector<1x288xf32> to vector<4x288xf32>
    %137 = arith.mulf %133, %136 : vector<4x288xf32>
    %c1_122 = arith.constant 1 : index
    %c0_123 = arith.constant 0 : index
    %c0_124 = arith.constant 0 : index
    %138 = vector.load %arg4[%c1_122, %c0_123, %c0_124] : memref<5x1x288xf32, #tpu.memory_space<vmem>>, vector<1x1x288xf32>
    %139 = vector.shape_cast %138 : vector<1x1x288xf32> to vector<1x288xf32>
    %140 = vector.broadcast %139 : vector<1x288xf32> to vector<4x288xf32>
    %141 = arith.addf %137, %140 : vector<4x288xf32>
    %cst_125 = arith.constant 0.000000e+00 : f32
    %142 = vector.broadcast %cst_125 : f32 to vector<4x288xf32>
    %143 = arith.cmpf ogt, %141, %142 : vector<4x288xf32>
    %c1_126 = arith.constant 1 : index
    %c0_127 = arith.constant 0 : index
    %c0_128 = arith.constant 0 : index
    %144 = vector.load %arg5[%c1_126, %c0_127, %c0_128] : memref<5x4x1xf32, #tpu.memory_space<vmem>>, vector<1x4x1xf32>
    %145 = vector.shape_cast %144 : vector<1x4x1xf32> to vector<4x1xf32>
    %146 = vector.broadcast %145 : vector<4x1xf32> to vector<4x288xf32>
    %147 = arith.mulf %141, %146 : vector<4x288xf32>
    %148 = arith.select %143, %141, %147 : vector<4x288xi1>, vector<4x288xf32>
    %149 = vector.extract_strided_slice %148 {offsets = [0, 0], sizes = [4, 144], strides = [1, 1]} : vector<4x288xf32> to vector<4x144xf32>
    %c8_129 = arith.constant 8 : index
    %c289_130 = arith.constant 289 : index
    %150 = vector.load %arg8[%c8_129, %c289_130] : memref<20x900xf32, #tpu.memory_space<vmem>>, vector<4x144xf32>
    tpu.vector_store %arg8[%c8_129, %c289_130], %149 {strides = array<i32>} : memref<20x900xf32, #tpu.memory_space<vmem>>, vector<4x144xf32>,
    %151 = vector.extract_strided_slice %148 {offsets = [0, 144], sizes = [4, 144], strides = [1, 1]} : vector<4x288xf32> to vector<4x144xf32>
    %c8_131 = arith.constant 8 : index
    %c739_132 = arith.constant 739 : index
    %152 = vector.load %arg8[%c8_131, %c739_132] : memref<20x900xf32, #tpu.memory_space<vmem>>, vector<4x144xf32>
    tpu.vector_store %arg8[%c8_131, %c739_132], %151 {strides = array<i32>} : memref<20x900xf32, #tpu.memory_space<vmem>>, vector<4x144xf32>,
    %c0_133 = arith.constant 0 : index
    %c216 = arith.constant 216 : index
    %153 = vector.load %arg8[%c0_133, %c216] : memref<20x900xf32, #tpu.memory_space<vmem>>, vector<12x144xf32>
    %154 = arith.truncf %153 : vector<12x144xf32> to vector<12x144xbf16>
    %c0_134 = arith.constant 0 : index
    %c0_135 = arith.constant 0 : index
    %155 = vector.load %arg9[%c0_134, %c0_135] : memref<120x288xbf16, #tpu.memory_space<vmem>>, vector<12x144xbf16>
    tpu.vector_store %arg9[%c0_134, %c0_135], %154 {strides = array<i32>} : memref<120x288xbf16, #tpu.memory_space<vmem>>, vector<12x144xbf16>,
    %c0_136 = arith.constant 0 : index
    %c217 = arith.constant 217 : index
    %156 = vector.load %arg8[%c0_136, %c217] : memref<20x900xf32, #tpu.memory_space<vmem>>, vector<12x144xf32>
    %157 = arith.truncf %156 : vector<12x144xf32> to vector<12x144xbf16>
    %c12_137 = arith.constant 12 : index
    %c0_138 = arith.constant 0 : index
    %158 = vector.load %arg9[%c12_137, %c0_138] : memref<120x288xbf16, #tpu.memory_space<vmem>>, vector<12x144xbf16>
    tpu.vector_store %arg9[%c12_137, %c0_138], %157 {strides = array<i32>} : memref<120x288xbf16, #tpu.memory_space<vmem>>, vector<12x144xbf16>,
    %c0_139 = arith.constant 0 : index
    %c218 = arith.constant 218 : index
    %159 = vector.load %arg8[%c0_139, %c218] : memref<20x900xf32, #tpu.memory_space<vmem>>, vector<12x144xf32>
    %160 = arith.truncf %159 : vector<12x144xf32> to vector<12x144xbf16>
    %c24_140 = arith.constant 24 : index
    %c0_141 = arith.constant 0 : index
    %161 = vector.load %arg9[%c24_140, %c0_141] : memref<120x288xbf16, #tpu.memory_space<vmem>>, vector<12x144xbf16>
    tpu.vector_store %arg9[%c24_140, %c0_141], %160 {strides = array<i32>} : memref<120x288xbf16, #tpu.memory_space<vmem>>, vector<12x144xbf16>,
    %c0_142 = arith.constant 0 : index
    %c288_143 = arith.constant 288 : index
    %162 = vector.load %arg8[%c0_142, %c288_143] : memref<20x900xf32, #tpu.memory_space<vmem>>, vector<12x144xf32>
    %163 = arith.truncf %162 : vector<12x144xf32> to vector<12x144xbf16>
    %c36 = arith.constant 36 : index
    %c0_144 = arith.constant 0 : index
    %164 = vector.load %arg9[%c36, %c0_144] : memref<120x288xbf16, #tpu.memory_space<vmem>>, vector<12x144xbf16>
    tpu.vector_store %arg9[%c36, %c0_144], %163 {strides = array<i32>} : memref<120x288xbf16, #tpu.memory_space<vmem>>, vector<12x144xbf16>,
    %c0_145 = arith.constant 0 : index
    %c289_146 = arith.constant 289 : index
    %165 = vector.load %arg8[%c0_145, %c289_146] : memref<20x900xf32, #tpu.memory_space<vmem>>, vector<12x144xf32>
    %166 = arith.truncf %165 : vector<12x144xf32> to vector<12x144xbf16>
    %c48 = arith.constant 48 : index
    %c0_147 = arith.constant 0 : index
    %167 = vector.load %arg9[%c48, %c0_147] : memref<120x288xbf16, #tpu.memory_space<vmem>>, vector<12x144xbf16>
    tpu.vector_store %arg9[%c48, %c0_147], %166 {strides = array<i32>} : memref<120x288xbf16, #tpu.memory_space<vmem>>, vector<12x144xbf16>,
    %c0_148 = arith.constant 0 : index
    %c290_149 = arith.constant 290 : index
    %168 = vector.load %arg8[%c0_148, %c290_149] : memref<20x900xf32, #tpu.memory_space<vmem>>, vector<12x144xf32>
    %169 = arith.truncf %168 : vector<12x144xf32> to vector<12x144xbf16>
    %c60 = arith.constant 60 : index
    %c0_150 = arith.constant 0 : index
    %170 = vector.load %arg9[%c60, %c0_150] : memref<120x288xbf16, #tpu.memory_space<vmem>>, vector<12x144xbf16>
    tpu.vector_store %arg9[%c60, %c0_150], %169 {strides = array<i32>} : memref<120x288xbf16, #tpu.memory_space<vmem>>, vector<12x144xbf16>,
    %c0_151 = arith.constant 0 : index
    %c666 = arith.constant 666 : index
    %171 = vector.load %arg8[%c0_151, %c666] : memref<20x900xf32, #tpu.memory_space<vmem>>, vector<12x144xf32>
    %172 = arith.truncf %171 : vector<12x144xf32> to vector<12x144xbf16>
    %c0_152 = arith.constant 0 : index
    %c144_153 = arith.constant 144 : index
    %173 = vector.load %arg9[%c0_152, %c144_153] : memref<120x288xbf16, #tpu.memory_space<vmem>>, vector<12x144xbf16>
    tpu.vector_store %arg9[%c0_152, %c144_153], %172 {strides = array<i32>} : memref<120x288xbf16, #tpu.memory_space<vmem>>, vector<12x144xbf16>,
    %c0_154 = arith.constant 0 : index
    %c667 = arith.constant 667 : index
    %174 = vector.load %arg8[%c0_154, %c667] : memref<20x900xf32, #tpu.memory_space<vmem>>, vector<12x144xf32>
    %175 = arith.truncf %174 : vector<12x144xf32> to vector<12x144xbf16>
    %c12_155 = arith.constant 12 : index
    %c144_156 = arith.constant 144 : index
    %176 = vector.load %arg9[%c12_155, %c144_156] : memref<120x288xbf16, #tpu.memory_space<vmem>>, vector<12x144xbf16>
    tpu.vector_store %arg9[%c12_155, %c144_156], %175 {strides = array<i32>} : memref<120x288xbf16, #tpu.memory_space<vmem>>, vector<12x144xbf16>,
    %c0_157 = arith.constant 0 : index
    %c668 = arith.constant 668 : index
    %177 = vector.load %arg8[%c0_157, %c668] : memref<20x900xf32, #tpu.memory_space<vmem>>, vector<12x144xf32>
    %178 = arith.truncf %177 : vector<12x144xf32> to vector<12x144xbf16>
    %c24_158 = arith.constant 24 : index
    %c144_159 = arith.constant 144 : index
    %179 = vector.load %arg9[%c24_158, %c144_159] : memref<120x288xbf16, #tpu.memory_space<vmem>>, vector<12x144xbf16>
    tpu.vector_store %arg9[%c24_158, %c144_159], %178 {strides = array<i32>} : memref<120x288xbf16, #tpu.memory_space<vmem>>, vector<12x144xbf16>,
    %c0_160 = arith.constant 0 : index
    %c738_161 = arith.constant 738 : index
    %180 = vector.load %arg8[%c0_160, %c738_161] : memref<20x900xf32, #tpu.memory_space<vmem>>, vector<12x144xf32>
    %181 = arith.truncf %180 : vector<12x144xf32> to vector<12x144xbf16>
    %c36_162 = arith.constant 36 : index
    %c144_163 = arith.constant 144 : index
    %182 = vector.load %arg9[%c36_162, %c144_163] : memref<120x288xbf16, #tpu.memory_space<vmem>>, vector<12x144xbf16>
    tpu.vector_store %arg9[%c36_162, %c144_163], %181 {strides = array<i32>} : memref<120x288xbf16, #tpu.memory_space<vmem>>, vector<12x144xbf16>,
    %c0_164 = arith.constant 0 : index
    %c739_165 = arith.constant 739 : index
    %183 = vector.load %arg8[%c0_164, %c739_165] : memref<20x900xf32, #tpu.memory_space<vmem>>, vector<12x144xf32>
    %184 = arith.truncf %183 : vector<12x144xf32> to vector<12x144xbf16>
    %c48_166 = arith.constant 48 : index
    %c144_167 = arith.constant 144 : index
    %185 = vector.load %arg9[%c48_166, %c144_167] : memref<120x288xbf16, #tpu.memory_space<vmem>>, vector<12x144xbf16>
    tpu.vector_store %arg9[%c48_166, %c144_167], %184 {strides = array<i32>} : memref<120x288xbf16, #tpu.memory_space<vmem>>, vector<12x144xbf16>,
    %c0_168 = arith.constant 0 : index
    %c740_169 = arith.constant 740 : index
    %186 = vector.load %arg8[%c0_168, %c740_169] : memref<20x900xf32, #tpu.memory_space<vmem>>, vector<12x144xf32>
    %187 = arith.truncf %186 : vector<12x144xf32> to vector<12x144xbf16>
    %c60_170 = arith.constant 60 : index
    %c144_171 = arith.constant 144 : index
    %188 = vector.load %arg9[%c60_170, %c144_171] : memref<120x288xbf16, #tpu.memory_space<vmem>>, vector<12x144xbf16>
    tpu.vector_store %arg9[%c60_170, %c144_171], %187 {strides = array<i32>} : memref<120x288xbf16, #tpu.memory_space<vmem>>, vector<12x144xbf16>,
    %c2 = arith.constant 2 : index
    %c0_172 = arith.constant 0 : index
    %c0_173 = arith.constant 0 : index
    %189 = vector.load %arg2[%c2, %c0_172, %c0_173] : memref<5x4x120xbf16, #tpu.memory_space<vmem>>, vector<1x4x72xbf16>
    %190 = vector.shape_cast %189 : vector<1x4x72xbf16> to vector<4x72xbf16>
    %c0_174 = arith.constant 0 : index
    %c0_175 = arith.constant 0 : index
    %191 = vector.load %arg9[%c0_174, %c0_175] : memref<120x288xbf16, #tpu.memory_space<vmem>>, vector<72x288xbf16>
    %cst_176 = arith.constant dense<0.000000e+00> : vector<4x288xf32>
    %192 = tpu.matmul %190, %191, %cst_176 {dimension_numbers = #tpu.dot_dimension_numbers<[1], [0], [0], [1], [0, 0, 1, 1], [], []>} : vector<4x72xbf16>, vector<72x288xbf16>, vector<4x288xf32> -> vector<4x288xf32>
    %193 = arith.truncf %192 : vector<4x288xf32> to vector<4x288xbf16>
    %cst_177 = arith.constant dense<0.000000e+00> : vector<4x288xf32>
    %194 = tpu.matmul %193, %14, %cst_177 {dimension_numbers = #tpu.dot_dimension_numbers<[1], [0], [0], [1], [0, 0, 1, 1], [], []>} : vector<4x288xbf16>, vector<288x288xbf16>, vector<4x288xf32> -> vector<4x288xf32>
    %195 = arith.subf %192, %194 : vector<4x288xf32>
    %196 = arith.mulf %195, %195 : vector<4x288xf32>
    %197 = arith.truncf %196 : vector<4x288xf32> to vector<4x288xbf16>
    %cst_178 = arith.constant dense<0.000000e+00> : vector<4x288xf32>
    %198 = tpu.matmul %197, %14, %cst_178 {dimension_numbers = #tpu.dot_dimension_numbers<[1], [0], [0], [1], [0, 0, 1, 1], [], []>} : vector<4x288xbf16>, vector<288x288xbf16>, vector<4x288xf32> -> vector<4x288xf32>
    %cst_179 = arith.constant 9.99999974E-6 : f32
    %199 = vector.broadcast %cst_179 : f32 to vector<4x288xf32>
    %200 = arith.addf %198, %199 : vector<4x288xf32>
    %201 = math.rsqrt %200 : vector<4x288xf32>
    %202 = arith.mulf %195, %201 : vector<4x288xf32>
    %c2_180 = arith.constant 2 : index
    %c0_181 = arith.constant 0 : index
    %c0_182 = arith.constant 0 : index
    %203 = vector.load %arg3[%c2_180, %c0_181, %c0_182] : memref<5x1x288xf32, #tpu.memory_space<vmem>>, vector<1x1x288xf32>
    %204 = vector.shape_cast %203 : vector<1x1x288xf32> to vector<1x288xf32>
    %205 = vector.broadcast %204 : vector<1x288xf32> to vector<4x288xf32>
    %206 = arith.mulf %202, %205 : vector<4x288xf32>
    %c2_183 = arith.constant 2 : index
    %c0_184 = arith.constant 0 : index
    %c0_185 = arith.constant 0 : index
    %207 = vector.load %arg4[%c2_183, %c0_184, %c0_185] : memref<5x1x288xf32, #tpu.memory_space<vmem>>, vector<1x1x288xf32>
    %208 = vector.shape_cast %207 : vector<1x1x288xf32> to vector<1x288xf32>
    %209 = vector.broadcast %208 : vector<1x288xf32> to vector<4x288xf32>
    %210 = arith.addf %206, %209 : vector<4x288xf32>
    %cst_186 = arith.constant 0.000000e+00 : f32
    %211 = vector.broadcast %cst_186 : f32 to vector<4x288xf32>
    %212 = arith.cmpf ogt, %210, %211 : vector<4x288xf32>
    %c2_187 = arith.constant 2 : index
    %c0_188 = arith.constant 0 : index
    %c0_189 = arith.constant 0 : index
    %213 = vector.load %arg5[%c2_187, %c0_188, %c0_189] : memref<5x4x1xf32, #tpu.memory_space<vmem>>, vector<1x4x1xf32>
    %214 = vector.shape_cast %213 : vector<1x4x1xf32> to vector<4x1xf32>
    %215 = vector.broadcast %214 : vector<4x1xf32> to vector<4x288xf32>
    %216 = arith.mulf %210, %215 : vector<4x288xf32>
    %217 = arith.select %212, %210, %216 : vector<4x288xi1>, vector<4x288xf32>
    %218 = vector.extract_strided_slice %217 {offsets = [0, 0], sizes = [4, 144], strides = [1, 1]} : vector<4x288xf32> to vector<4x144xf32>
    %c12_190 = arith.constant 12 : index
    %c289_191 = arith.constant 289 : index
    %219 = vector.load %arg8[%c12_190, %c289_191] : memref<20x900xf32, #tpu.memory_space<vmem>>, vector<4x144xf32>
    tpu.vector_store %arg8[%c12_190, %c289_191], %218 {strides = array<i32>} : memref<20x900xf32, #tpu.memory_space<vmem>>, vector<4x144xf32>,
    %220 = vector.extract_strided_slice %217 {offsets = [0, 144], sizes = [4, 144], strides = [1, 1]} : vector<4x288xf32> to vector<4x144xf32>
    %c12_192 = arith.constant 12 : index
    %c739_193 = arith.constant 739 : index
    %221 = vector.load %arg8[%c12_192, %c739_193] : memref<20x900xf32, #tpu.memory_space<vmem>>, vector<4x144xf32>
    tpu.vector_store %arg8[%c12_192, %c739_193], %220 {strides = array<i32>} : memref<20x900xf32, #tpu.memory_space<vmem>>, vector<4x144xf32>,
    %c0_194 = arith.constant 0 : index
    %c144_195 = arith.constant 144 : index
    %222 = vector.load %arg8[%c0_194, %c144_195] : memref<20x900xf32, #tpu.memory_space<vmem>>, vector<16x144xf32>
    %223 = arith.truncf %222 : vector<16x144xf32> to vector<16x144xbf16>
    %c0_196 = arith.constant 0 : index
    %c0_197 = arith.constant 0 : index
    %224 = vector.load %arg9[%c0_196, %c0_197] : memref<120x288xbf16, #tpu.memory_space<vmem>>, vector<16x144xbf16>
    tpu.vector_store %arg9[%c0_196, %c0_197], %223 {strides = array<i32>} : memref<120x288xbf16, #tpu.memory_space<vmem>>, vector<16x144xbf16>,
    %c0_198 = arith.constant 0 : index
    %c145 = arith.constant 145 : index
    %225 = vector.load %arg8[%c0_198, %c145] : memref<20x900xf32, #tpu.memory_space<vmem>>, vector<16x144xf32>
    %226 = arith.truncf %225 : vector<16x144xf32> to vector<16x144xbf16>
    %c16_199 = arith.constant 16 : index
    %c0_200 = arith.constant 0 : index
    %227 = vector.load %arg9[%c16_199, %c0_200] : memref<120x288xbf16, #tpu.memory_space<vmem>>, vector<16x144xbf16>
    tpu.vector_store %arg9[%c16_199, %c0_200], %226 {strides = array<i32>} : memref<120x288xbf16, #tpu.memory_space<vmem>>, vector<16x144xbf16>,
    %c0_201 = arith.constant 0 : index
    %c146 = arith.constant 146 : index
    %228 = vector.load %arg8[%c0_201, %c146] : memref<20x900xf32, #tpu.memory_space<vmem>>, vector<16x144xf32>
    %229 = arith.truncf %228 : vector<16x144xf32> to vector<16x144xbf16>
    %c32_202 = arith.constant 32 : index
    %c0_203 = arith.constant 0 : index
    %230 = vector.load %arg9[%c32_202, %c0_203] : memref<120x288xbf16, #tpu.memory_space<vmem>>, vector<16x144xbf16>
    tpu.vector_store %arg9[%c32_202, %c0_203], %229 {strides = array<i32>} : memref<120x288xbf16, #tpu.memory_space<vmem>>, vector<16x144xbf16>,
    %c0_204 = arith.constant 0 : index
    %c288_205 = arith.constant 288 : index
    %231 = vector.load %arg8[%c0_204, %c288_205] : memref<20x900xf32, #tpu.memory_space<vmem>>, vector<16x144xf32>
    %232 = arith.truncf %231 : vector<16x144xf32> to vector<16x144xbf16>
    %c48_206 = arith.constant 48 : index
    %c0_207 = arith.constant 0 : index
    %233 = vector.load %arg9[%c48_206, %c0_207] : memref<120x288xbf16, #tpu.memory_space<vmem>>, vector<16x144xbf16>
    tpu.vector_store %arg9[%c48_206, %c0_207], %232 {strides = array<i32>} : memref<120x288xbf16, #tpu.memory_space<vmem>>, vector<16x144xbf16>,
    %c0_208 = arith.constant 0 : index
    %c289_209 = arith.constant 289 : index
    %234 = vector.load %arg8[%c0_208, %c289_209] : memref<20x900xf32, #tpu.memory_space<vmem>>, vector<16x144xf32>
    %235 = arith.truncf %234 : vector<16x144xf32> to vector<16x144xbf16>
    %c64 = arith.constant 64 : index
    %c0_210 = arith.constant 0 : index
    %236 = vector.load %arg9[%c64, %c0_210] : memref<120x288xbf16, #tpu.memory_space<vmem>>, vector<16x144xbf16>
    tpu.vector_store %arg9[%c64, %c0_210], %235 {strides = array<i32>} : memref<120x288xbf16, #tpu.memory_space<vmem>>, vector<16x144xbf16>,
    %c0_211 = arith.constant 0 : index
    %c290_212 = arith.constant 290 : index
    %237 = vector.load %arg8[%c0_211, %c290_212] : memref<20x900xf32, #tpu.memory_space<vmem>>, vector<16x144xf32>
    %238 = arith.truncf %237 : vector<16x144xf32> to vector<16x144xbf16>
    %c80 = arith.constant 80 : index
    %c0_213 = arith.constant 0 : index
    %239 = vector.load %arg9[%c80, %c0_213] : memref<120x288xbf16, #tpu.memory_space<vmem>>, vector<16x144xbf16>
    tpu.vector_store %arg9[%c80, %c0_213], %238 {strides = array<i32>} : memref<120x288xbf16, #tpu.memory_space<vmem>>, vector<16x144xbf16>,
    %c0_214 = arith.constant 0 : index
    %c594 = arith.constant 594 : index
    %240 = vector.load %arg8[%c0_214, %c594] : memref<20x900xf32, #tpu.memory_space<vmem>>, vector<16x144xf32>
    %241 = arith.truncf %240 : vector<16x144xf32> to vector<16x144xbf16>
    %c0_215 = arith.constant 0 : index
    %c144_216 = arith.constant 144 : index
    %242 = vector.load %arg9[%c0_215, %c144_216] : memref<120x288xbf16, #tpu.memory_space<vmem>>, vector<16x144xbf16>
    tpu.vector_store %arg9[%c0_215, %c144_216], %241 {strides = array<i32>} : memref<120x288xbf16, #tpu.memory_space<vmem>>, vector<16x144xbf16>,
    %c0_217 = arith.constant 0 : index
    %c595 = arith.constant 595 : index
    %243 = vector.load %arg8[%c0_217, %c595] : memref<20x900xf32, #tpu.memory_space<vmem>>, vector<16x144xf32>
    %244 = arith.truncf %243 : vector<16x144xf32> to vector<16x144xbf16>
    %c16_218 = arith.constant 16 : index
    %c144_219 = arith.constant 144 : index
    %245 = vector.load %arg9[%c16_218, %c144_219] : memref<120x288xbf16, #tpu.memory_space<vmem>>, vector<16x144xbf16>
    tpu.vector_store %arg9[%c16_218, %c144_219], %244 {strides = array<i32>} : memref<120x288xbf16, #tpu.memory_space<vmem>>, vector<16x144xbf16>,
    %c0_220 = arith.constant 0 : index
    %c596 = arith.constant 596 : index
    %246 = vector.load %arg8[%c0_220, %c596] : memref<20x900xf32, #tpu.memory_space<vmem>>, vector<16x144xf32>
    %247 = arith.truncf %246 : vector<16x144xf32> to vector<16x144xbf16>
    %c32_221 = arith.constant 32 : index
    %c144_222 = arith.constant 144 : index
    %248 = vector.load %arg9[%c32_221, %c144_222] : memref<120x288xbf16, #tpu.memory_space<vmem>>, vector<16x144xbf16>
    tpu.vector_store %arg9[%c32_221, %c144_222], %247 {strides = array<i32>} : memref<120x288xbf16, #tpu.memory_space<vmem>>, vector<16x144xbf16>,
    %c0_223 = arith.constant 0 : index
    %c738_224 = arith.constant 738 : index
    %249 = vector.load %arg8[%c0_223, %c738_224] : memref<20x900xf32, #tpu.memory_space<vmem>>, vector<16x144xf32>
    %250 = arith.truncf %249 : vector<16x144xf32> to vector<16x144xbf16>
    %c48_225 = arith.constant 48 : index
    %c144_226 = arith.constant 144 : index
    %251 = vector.load %arg9[%c48_225, %c144_226] : memref<120x288xbf16, #tpu.memory_space<vmem>>, vector<16x144xbf16>
    tpu.vector_store %arg9[%c48_225, %c144_226], %250 {strides = array<i32>} : memref<120x288xbf16, #tpu.memory_space<vmem>>, vector<16x144xbf16>,
    %c0_227 = arith.constant 0 : index
    %c739_228 = arith.constant 739 : index
    %252 = vector.load %arg8[%c0_227, %c739_228] : memref<20x900xf32, #tpu.memory_space<vmem>>, vector<16x144xf32>
    %253 = arith.truncf %252 : vector<16x144xf32> to vector<16x144xbf16>
    %c64_229 = arith.constant 64 : index
    %c144_230 = arith.constant 144 : index
    %254 = vector.load %arg9[%c64_229, %c144_230] : memref<120x288xbf16, #tpu.memory_space<vmem>>, vector<16x144xbf16>
    tpu.vector_store %arg9[%c64_229, %c144_230], %253 {strides = array<i32>} : memref<120x288xbf16, #tpu.memory_space<vmem>>, vector<16x144xbf16>,
    %c0_231 = arith.constant 0 : index
    %c740_232 = arith.constant 740 : index
    %255 = vector.load %arg8[%c0_231, %c740_232] : memref<20x900xf32, #tpu.memory_space<vmem>>, vector<16x144xf32>
    %256 = arith.truncf %255 : vector<16x144xf32> to vector<16x144xbf16>
    %c80_233 = arith.constant 80 : index
    %c144_234 = arith.constant 144 : index
    %257 = vector.load %arg9[%c80_233, %c144_234] : memref<120x288xbf16, #tpu.memory_space<vmem>>, vector<16x144xbf16>
    tpu.vector_store %arg9[%c80_233, %c144_234], %256 {strides = array<i32>} : memref<120x288xbf16, #tpu.memory_space<vmem>>, vector<16x144xbf16>,
    %c3 = arith.constant 3 : index
    %c0_235 = arith.constant 0 : index
    %c0_236 = arith.constant 0 : index
    %258 = vector.load %arg2[%c3, %c0_235, %c0_236] : memref<5x4x120xbf16, #tpu.memory_space<vmem>>, vector<1x4x96xbf16>
    %259 = vector.shape_cast %258 : vector<1x4x96xbf16> to vector<4x96xbf16>
    %c0_237 = arith.constant 0 : index
    %c0_238 = arith.constant 0 : index
    %260 = vector.load %arg9[%c0_237, %c0_238] : memref<120x288xbf16, #tpu.memory_space<vmem>>, vector<96x288xbf16>
    %cst_239 = arith.constant dense<0.000000e+00> : vector<4x288xf32>
    %261 = tpu.matmul %259, %260, %cst_239 {dimension_numbers = #tpu.dot_dimension_numbers<[1], [0], [0], [1], [0, 0, 1, 1], [], []>} : vector<4x96xbf16>, vector<96x288xbf16>, vector<4x288xf32> -> vector<4x288xf32>
    %262 = arith.truncf %261 : vector<4x288xf32> to vector<4x288xbf16>
    %cst_240 = arith.constant dense<0.000000e+00> : vector<4x288xf32>
    %263 = tpu.matmul %262, %14, %cst_240 {dimension_numbers = #tpu.dot_dimension_numbers<[1], [0], [0], [1], [0, 0, 1, 1], [], []>} : vector<4x288xbf16>, vector<288x288xbf16>, vector<4x288xf32> -> vector<4x288xf32>
    %264 = arith.subf %261, %263 : vector<4x288xf32>
    %265 = arith.mulf %264, %264 : vector<4x288xf32>
    %266 = arith.truncf %265 : vector<4x288xf32> to vector<4x288xbf16>
    %cst_241 = arith.constant dense<0.000000e+00> : vector<4x288xf32>
    %267 = tpu.matmul %266, %14, %cst_241 {dimension_numbers = #tpu.dot_dimension_numbers<[1], [0], [0], [1], [0, 0, 1, 1], [], []>} : vector<4x288xbf16>, vector<288x288xbf16>, vector<4x288xf32> -> vector<4x288xf32>
    %cst_242 = arith.constant 9.99999974E-6 : f32
    %268 = vector.broadcast %cst_242 : f32 to vector<4x288xf32>
    %269 = arith.addf %267, %268 : vector<4x288xf32>
    %270 = math.rsqrt %269 : vector<4x288xf32>
    %271 = arith.mulf %264, %270 : vector<4x288xf32>
    %c3_243 = arith.constant 3 : index
    %c0_244 = arith.constant 0 : index
    %c0_245 = arith.constant 0 : index
    %272 = vector.load %arg3[%c3_243, %c0_244, %c0_245] : memref<5x1x288xf32, #tpu.memory_space<vmem>>, vector<1x1x288xf32>
    %273 = vector.shape_cast %272 : vector<1x1x288xf32> to vector<1x288xf32>
    %274 = vector.broadcast %273 : vector<1x288xf32> to vector<4x288xf32>
    %275 = arith.mulf %271, %274 : vector<4x288xf32>
    %c3_246 = arith.constant 3 : index
    %c0_247 = arith.constant 0 : index
    %c0_248 = arith.constant 0 : index
    %276 = vector.load %arg4[%c3_246, %c0_247, %c0_248] : memref<5x1x288xf32, #tpu.memory_space<vmem>>, vector<1x1x288xf32>
    %277 = vector.shape_cast %276 : vector<1x1x288xf32> to vector<1x288xf32>
    %278 = vector.broadcast %277 : vector<1x288xf32> to vector<4x288xf32>
    %279 = arith.addf %275, %278 : vector<4x288xf32>
    %cst_249 = arith.constant 0.000000e+00 : f32
    %280 = vector.broadcast %cst_249 : f32 to vector<4x288xf32>
    %281 = arith.cmpf ogt, %279, %280 : vector<4x288xf32>
    %c3_250 = arith.constant 3 : index
    %c0_251 = arith.constant 0 : index
    %c0_252 = arith.constant 0 : index
    %282 = vector.load %arg5[%c3_250, %c0_251, %c0_252] : memref<5x4x1xf32, #tpu.memory_space<vmem>>, vector<1x4x1xf32>
    %283 = vector.shape_cast %282 : vector<1x4x1xf32> to vector<4x1xf32>
    %284 = vector.broadcast %283 : vector<4x1xf32> to vector<4x288xf32>
    %285 = arith.mulf %279, %284 : vector<4x288xf32>
    %286 = arith.select %281, %279, %285 : vector<4x288xi1>, vector<4x288xf32>
    %287 = vector.extract_strided_slice %286 {offsets = [0, 0], sizes = [4, 144], strides = [1, 1]} : vector<4x288xf32> to vector<4x144xf32>
    %c16_253 = arith.constant 16 : index
    %c289_254 = arith.constant 289 : index
    %288 = vector.load %arg8[%c16_253, %c289_254] : memref<20x900xf32, #tpu.memory_space<vmem>>, vector<4x144xf32>
    tpu.vector_store %arg8[%c16_253, %c289_254], %287 {strides = array<i32>} : memref<20x900xf32, #tpu.memory_space<vmem>>, vector<4x144xf32>,
    %289 = vector.extract_strided_slice %286 {offsets = [0, 144], sizes = [4, 144], strides = [1, 1]} : vector<4x288xf32> to vector<4x144xf32>
    %c16_255 = arith.constant 16 : index
    %c739_256 = arith.constant 739 : index
    %290 = vector.load %arg8[%c16_255, %c739_256] : memref<20x900xf32, #tpu.memory_space<vmem>>, vector<4x144xf32>
    tpu.vector_store %arg8[%c16_255, %c739_256], %289 {strides = array<i32>} : memref<20x900xf32, #tpu.memory_space<vmem>>, vector<4x144xf32>,
    %c0_257 = arith.constant 0 : index
    %c0_258 = arith.constant 0 : index
    %291 = vector.load %arg8[%c0_257, %c0_258] : memref<20x900xf32, #tpu.memory_space<vmem>>, vector<20x144xf32>
    %292 = arith.truncf %291 : vector<20x144xf32> to vector<20x144xbf16>
    %c0_259 = arith.constant 0 : index
    %c0_260 = arith.constant 0 : index
    %293 = vector.load %arg9[%c0_259, %c0_260] : memref<120x288xbf16, #tpu.memory_space<vmem>>, vector<20x144xbf16>
    tpu.vector_store %arg9[%c0_259, %c0_260], %292 {strides = array<i32>} : memref<120x288xbf16, #tpu.memory_space<vmem>>, vector<20x144xbf16>,
    %c0_261 = arith.constant 0 : index
    %c1_262 = arith.constant 1 : index
    %294 = vector.load %arg8[%c0_261, %c1_262] : memref<20x900xf32, #tpu.memory_space<vmem>>, vector<20x144xf32>
    %295 = arith.truncf %294 : vector<20x144xf32> to vector<20x144xbf16>
    %c20_263 = arith.constant 20 : index
    %c0_264 = arith.constant 0 : index
    %296 = vector.load %arg9[%c20_263, %c0_264] : memref<120x288xbf16, #tpu.memory_space<vmem>>, vector<20x144xbf16>
    tpu.vector_store %arg9[%c20_263, %c0_264], %295 {strides = array<i32>} : memref<120x288xbf16, #tpu.memory_space<vmem>>, vector<20x144xbf16>,
    %c0_265 = arith.constant 0 : index
    %c2_266 = arith.constant 2 : index
    %297 = vector.load %arg8[%c0_265, %c2_266] : memref<20x900xf32, #tpu.memory_space<vmem>>, vector<20x144xf32>
    %298 = arith.truncf %297 : vector<20x144xf32> to vector<20x144xbf16>
    %c40_267 = arith.constant 40 : index
    %c0_268 = arith.constant 0 : index
    %299 = vector.load %arg9[%c40_267, %c0_268] : memref<120x288xbf16, #tpu.memory_space<vmem>>, vector<20x144xbf16>
    tpu.vector_store %arg9[%c40_267, %c0_268], %298 {strides = array<i32>} : memref<120x288xbf16, #tpu.memory_space<vmem>>, vector<20x144xbf16>,
    %c0_269 = arith.constant 0 : index
    %c288_270 = arith.constant 288 : index
    %300 = vector.load %arg8[%c0_269, %c288_270] : memref<20x900xf32, #tpu.memory_space<vmem>>, vector<20x144xf32>
    %301 = arith.truncf %300 : vector<20x144xf32> to vector<20x144xbf16>
    %c60_271 = arith.constant 60 : index
    %c0_272 = arith.constant 0 : index
    %302 = vector.load %arg9[%c60_271, %c0_272] : memref<120x288xbf16, #tpu.memory_space<vmem>>, vector<20x144xbf16>
    tpu.vector_store %arg9[%c60_271, %c0_272], %301 {strides = array<i32>} : memref<120x288xbf16, #tpu.memory_space<vmem>>, vector<20x144xbf16>,
    %c0_273 = arith.constant 0 : index
    %c289_274 = arith.constant 289 : index
    %303 = vector.load %arg8[%c0_273, %c289_274] : memref<20x900xf32, #tpu.memory_space<vmem>>, vector<20x144xf32>
    %304 = arith.truncf %303 : vector<20x144xf32> to vector<20x144xbf16>
    %c80_275 = arith.constant 80 : index
    %c0_276 = arith.constant 0 : index
    %305 = vector.load %arg9[%c80_275, %c0_276] : memref<120x288xbf16, #tpu.memory_space<vmem>>, vector<20x144xbf16>
    tpu.vector_store %arg9[%c80_275, %c0_276], %304 {strides = array<i32>} : memref<120x288xbf16, #tpu.memory_space<vmem>>, vector<20x144xbf16>,
    %c0_277 = arith.constant 0 : index
    %c290_278 = arith.constant 290 : index
    %306 = vector.load %arg8[%c0_277, %c290_278] : memref<20x900xf32, #tpu.memory_space<vmem>>, vector<20x144xf32>
    %307 = arith.truncf %306 : vector<20x144xf32> to vector<20x144xbf16>
    %c100 = arith.constant 100 : index
    %c0_279 = arith.constant 0 : index
    %308 = vector.load %arg9[%c100, %c0_279] : memref<120x288xbf16, #tpu.memory_space<vmem>>, vector<20x144xbf16>
    tpu.vector_store %arg9[%c100, %c0_279], %307 {strides = array<i32>} : memref<120x288xbf16, #tpu.memory_space<vmem>>, vector<20x144xbf16>,
    %c0_280 = arith.constant 0 : index
    %c450_281 = arith.constant 450 : index
    %309 = vector.load %arg8[%c0_280, %c450_281] : memref<20x900xf32, #tpu.memory_space<vmem>>, vector<20x144xf32>
    %310 = arith.truncf %309 : vector<20x144xf32> to vector<20x144xbf16>
    %c0_282 = arith.constant 0 : index
    %c144_283 = arith.constant 144 : index
    %311 = vector.load %arg9[%c0_282, %c144_283] : memref<120x288xbf16, #tpu.memory_space<vmem>>, vector<20x144xbf16>
    tpu.vector_store %arg9[%c0_282, %c144_283], %310 {strides = array<i32>} : memref<120x288xbf16, #tpu.memory_space<vmem>>, vector<20x144xbf16>,
    %c0_284 = arith.constant 0 : index
    %c451 = arith.constant 451 : index
    %312 = vector.load %arg8[%c0_284, %c451] : memref<20x900xf32, #tpu.memory_space<vmem>>, vector<20x144xf32>
    %313 = arith.truncf %312 : vector<20x144xf32> to vector<20x144xbf16>
    %c20_285 = arith.constant 20 : index
    %c144_286 = arith.constant 144 : index
    %314 = vector.load %arg9[%c20_285, %c144_286] : memref<120x288xbf16, #tpu.memory_space<vmem>>, vector<20x144xbf16>
    tpu.vector_store %arg9[%c20_285, %c144_286], %313 {strides = array<i32>} : memref<120x288xbf16, #tpu.memory_space<vmem>>, vector<20x144xbf16>,
    %c0_287 = arith.constant 0 : index
    %c452 = arith.constant 452 : index
    %315 = vector.load %arg8[%c0_287, %c452] : memref<20x900xf32, #tpu.memory_space<vmem>>, vector<20x144xf32>
    %316 = arith.truncf %315 : vector<20x144xf32> to vector<20x144xbf16>
    %c40_288 = arith.constant 40 : index
    %c144_289 = arith.constant 144 : index
    %317 = vector.load %arg9[%c40_288, %c144_289] : memref<120x288xbf16, #tpu.memory_space<vmem>>, vector<20x144xbf16>
    tpu.vector_store %arg9[%c40_288, %c144_289], %316 {strides = array<i32>} : memref<120x288xbf16, #tpu.memory_space<vmem>>, vector<20x144xbf16>,
    %c0_290 = arith.constant 0 : index
    %c738_291 = arith.constant 738 : index
    %318 = vector.load %arg8[%c0_290, %c738_291] : memref<20x900xf32, #tpu.memory_space<vmem>>, vector<20x144xf32>
    %319 = arith.truncf %318 : vector<20x144xf32> to vector<20x144xbf16>
    %c60_292 = arith.constant 60 : index
    %c144_293 = arith.constant 144 : index
    %320 = vector.load %arg9[%c60_292, %c144_293] : memref<120x288xbf16, #tpu.memory_space<vmem>>, vector<20x144xbf16>
    tpu.vector_store %arg9[%c60_292, %c144_293], %319 {strides = array<i32>} : memref<120x288xbf16, #tpu.memory_space<vmem>>, vector<20x144xbf16>,
    %c0_294 = arith.constant 0 : index
    %c739_295 = arith.constant 739 : index
    %321 = vector.load %arg8[%c0_294, %c739_295] : memref<20x900xf32, #tpu.memory_space<vmem>>, vector<20x144xf32>
    %322 = arith.truncf %321 : vector<20x144xf32> to vector<20x144xbf16>
    %c80_296 = arith.constant 80 : index
    %c144_297 = arith.constant 144 : index
    %323 = vector.load %arg9[%c80_296, %c144_297] : memref<120x288xbf16, #tpu.memory_space<vmem>>, vector<20x144xbf16>
    tpu.vector_store %arg9[%c80_296, %c144_297], %322 {strides = array<i32>} : memref<120x288xbf16, #tpu.memory_space<vmem>>, vector<20x144xbf16>,
    %c0_298 = arith.constant 0 : index
    %c740_299 = arith.constant 740 : index
    %324 = vector.load %arg8[%c0_298, %c740_299] : memref<20x900xf32, #tpu.memory_space<vmem>>, vector<20x144xf32>
    %325 = arith.truncf %324 : vector<20x144xf32> to vector<20x144xbf16>
    %c100_300 = arith.constant 100 : index
    %c144_301 = arith.constant 144 : index
    %326 = vector.load %arg9[%c100_300, %c144_301] : memref<120x288xbf16, #tpu.memory_space<vmem>>, vector<20x144xbf16>
    tpu.vector_store %arg9[%c100_300, %c144_301], %325 {strides = array<i32>} : memref<120x288xbf16, #tpu.memory_space<vmem>>, vector<20x144xbf16>,
    %c4_302 = arith.constant 4 : index
    %c0_303 = arith.constant 0 : index
    %c0_304 = arith.constant 0 : index
    %327 = vector.load %arg2[%c4_302, %c0_303, %c0_304] : memref<5x4x120xbf16, #tpu.memory_space<vmem>>, vector<1x4x120xbf16>
    %328 = vector.shape_cast %327 : vector<1x4x120xbf16> to vector<4x120xbf16>
    %c0_305 = arith.constant 0 : index
    %c0_306 = arith.constant 0 : index
    %329 = vector.load %arg9[%c0_305, %c0_306] : memref<120x288xbf16, #tpu.memory_space<vmem>>, vector<120x288xbf16>
    %cst_307 = arith.constant dense<0.000000e+00> : vector<4x288xf32>
    %330 = tpu.matmul %328, %329, %cst_307 {dimension_numbers = #tpu.dot_dimension_numbers<[1], [0], [0], [1], [0, 0, 1, 1], [], []>} : vector<4x120xbf16>, vector<120x288xbf16>, vector<4x288xf32> -> vector<4x288xf32>
    %331 = arith.truncf %330 : vector<4x288xf32> to vector<4x288xbf16>
    %cst_308 = arith.constant dense<0.000000e+00> : vector<4x288xf32>
    %332 = tpu.matmul %331, %14, %cst_308 {dimension_numbers = #tpu.dot_dimension_numbers<[1], [0], [0], [1], [0, 0, 1, 1], [], []>} : vector<4x288xbf16>, vector<288x288xbf16>, vector<4x288xf32> -> vector<4x288xf32>
    %333 = arith.subf %330, %332 : vector<4x288xf32>
    %334 = arith.mulf %333, %333 : vector<4x288xf32>
    %335 = arith.truncf %334 : vector<4x288xf32> to vector<4x288xbf16>
    %cst_309 = arith.constant dense<0.000000e+00> : vector<4x288xf32>
    %336 = tpu.matmul %335, %14, %cst_309 {dimension_numbers = #tpu.dot_dimension_numbers<[1], [0], [0], [1], [0, 0, 1, 1], [], []>} : vector<4x288xbf16>, vector<288x288xbf16>, vector<4x288xf32> -> vector<4x288xf32>
    %cst_310 = arith.constant 9.99999974E-6 : f32
    %337 = vector.broadcast %cst_310 : f32 to vector<4x288xf32>
    %338 = arith.addf %336, %337 : vector<4x288xf32>
    %339 = math.rsqrt %338 : vector<4x288xf32>
    %340 = arith.mulf %333, %339 : vector<4x288xf32>
    %c4_311 = arith.constant 4 : index
    %c0_312 = arith.constant 0 : index
    %c0_313 = arith.constant 0 : index
    %341 = vector.load %arg3[%c4_311, %c0_312, %c0_313] : memref<5x1x288xf32, #tpu.memory_space<vmem>>, vector<1x1x288xf32>
    %342 = vector.shape_cast %341 : vector<1x1x288xf32> to vector<1x288xf32>
    %343 = vector.broadcast %342 : vector<1x288xf32> to vector<4x288xf32>
    %344 = arith.mulf %340, %343 : vector<4x288xf32>
    %c4_314 = arith.constant 4 : index
    %c0_315 = arith.constant 0 : index
    %c0_316 = arith.constant 0 : index
    %345 = vector.load %arg4[%c4_314, %c0_315, %c0_316] : memref<5x1x288xf32, #tpu.memory_space<vmem>>, vector<1x1x288xf32>
    %346 = vector.shape_cast %345 : vector<1x1x288xf32> to vector<1x288xf32>
    %347 = vector.broadcast %346 : vector<1x288xf32> to vector<4x288xf32>
    %348 = arith.addf %344, %347 : vector<4x288xf32>
    %cst_317 = arith.constant 0.000000e+00 : f32
    %349 = vector.broadcast %cst_317 : f32 to vector<4x288xf32>
    %350 = arith.cmpf ogt, %348, %349 : vector<4x288xf32>
    %c4_318 = arith.constant 4 : index
    %c0_319 = arith.constant 0 : index
    %c0_320 = arith.constant 0 : index
    %351 = vector.load %arg5[%c4_318, %c0_319, %c0_320] : memref<5x4x1xf32, #tpu.memory_space<vmem>>, vector<1x4x1xf32>
    %352 = vector.shape_cast %351 : vector<1x4x1xf32> to vector<4x1xf32>
    %353 = vector.broadcast %352 : vector<4x1xf32> to vector<4x288xf32>
    %354 = arith.mulf %348, %353 : vector<4x288xf32>
    %355 = arith.select %350, %348, %354 : vector<4x288xi1>, vector<4x288xf32>
    %356 = vector.extract_strided_slice %355 {offsets = [0, 0], sizes = [4, 144], strides = [1, 1]} : vector<4x288xf32> to vector<4x144xf32>
    %c0_321 = arith.constant 0 : index
    %c0_322 = arith.constant 0 : index
    %c0_323 = arith.constant 0 : index
    %357 = vector.load %arg7[%c0_321, %c0_322, %c0_323] : memref<2x4x144xf32, #tpu.memory_space<vmem>>, vector<1x4x144xf32>
    %358 = vector.shape_cast %357 : vector<1x4x144xf32> to vector<4x144xf32>
    %359 = vector.shape_cast %356 : vector<4x144xf32> to vector<1x4x144xf32>
    tpu.vector_store %arg7[%c0_321, %c0_322, %c0_323], %359 {strides = array<i32>} : memref<2x4x144xf32, #tpu.memory_space<vmem>>, vector<1x4x144xf32>,
    %360 = vector.extract_strided_slice %355 {offsets = [0, 144], sizes = [4, 144], strides = [1, 1]} : vector<4x288xf32> to vector<4x144xf32>
    %c1_324 = arith.constant 1 : index
    %c0_325 = arith.constant 0 : index
    %c0_326 = arith.constant 0 : index
    %361 = vector.load %arg7[%c1_324, %c0_325, %c0_326] : memref<2x4x144xf32, #tpu.memory_space<vmem>>, vector<1x4x144xf32>
    %362 = vector.shape_cast %361 : vector<1x4x144xf32> to vector<4x144xf32>
    %363 = vector.shape_cast %360 : vector<4x144xf32> to vector<1x4x144xf32>
    tpu.vector_store %arg7[%c1_324, %c0_325, %c0_326], %363 {strides = array<i32>} : memref<2x4x144xf32, #tpu.memory_space<vmem>>, vector<1x4x144xf32>,
    return
  }
  func.func @transform_0(%arg0: i32) -> (i32, i32, i32) {
    %c0_i32 = arith.constant 0 : i32
    %c0_i32_0 = arith.constant 0 : i32
    %c0_i32_1 = arith.constant 0 : i32
    return %arg0, %c0_i32, %c0_i32_0 : i32, i32, i32
  }
  func.func @transform_1(%arg0: i32) -> (i32, i32, i32) {
    %c0_i32 = arith.constant 0 : i32
    %c0_i32_0 = arith.constant 0 : i32
    %c0_i32_1 = arith.constant 0 : i32
    %c0_i32_2 = arith.constant 0 : i32
    return %c0_i32, %c0_i32_0, %c0_i32_1 : i32, i32, i32
  }
  func.func @transform_2(%arg0: i32) -> (i32, i32, i32) {
    %c0_i32 = arith.constant 0 : i32
    %c0_i32_0 = arith.constant 0 : i32
    %c0_i32_1 = arith.constant 0 : i32
    %c0_i32_2 = arith.constant 0 : i32
    return %c0_i32, %c0_i32_0, %c0_i32_1 : i32, i32, i32
  }
  func.func @transform_3(%arg0: i32) -> (i32, i32, i32) {
    %c0_i32 = arith.constant 0 : i32
    %c0_i32_0 = arith.constant 0 : i32
    %c0_i32_1 = arith.constant 0 : i32
    %c0_i32_2 = arith.constant 0 : i32
    return %c0_i32, %c0_i32_0, %c0_i32_1 : i32, i32, i32
  }
  func.func @transform_4(%arg0: i32) -> (i32, i32, i32) {
    %c0_i32 = arith.constant 0 : i32
    %c0_i32_0 = arith.constant 0 : i32
    %c0_i32_1 = arith.constant 0 : i32
    %c0_i32_2 = arith.constant 0 : i32
    return %c0_i32, %c0_i32_0, %c0_i32_1 : i32, i32, i32
  }
  func.func @transform_5(%arg0: i32) -> (i32, i32) {
    %c0_i32 = arith.constant 0 : i32
    %c0_i32_0 = arith.constant 0 : i32
    %c0_i32_1 = arith.constant 0 : i32
    return %c0_i32, %c0_i32_0 : i32, i32
  }
  func.func @transform_6(%arg0: i32) -> (i32, i32, i32) {
    %c0_i32 = arith.constant 0 : i32
    %c0_i32_0 = arith.constant 0 : i32
    %c0_i32_1 = arith.constant 0 : i32
    return %arg0, %c0_i32, %c0_i32_0 : i32, i32, i32
  }
}

</mosaic_0001>

<bundles_post_ra>
// kernel: tpu_custom_call.1
= control target key start
LH: loop header
LB: loop body
LE: loop exit
PB: predicated region body
PF: predicated region fallthrough
CT: control target
= control target key end

     0   :  { %11 = vsyncpa [#allocation5], 0  ;;  %s6675_s0 = inlined_call_operand.hbm [shape: f32[2,4,450], index: 0, kind: input, shape index: {}]   ;;  %s6676_s1 = inlined_call_operand.vmem [shape: bf16[5,4,120], index: 1, kind: input, shape index: {}]   ;;  %s6677_s2 = inlined_call_operand.vmem [shape: f32[5,1,288], index: 2, kind: input, shape index: {}]   ;;  %s6678_s3 = inlined_call_operand.hbm [shape: f32[5,1,288], index: 3, kind: input, shape index: {}]   ;;  %s6679_s4 = inlined_call_operand.vmem [shape: f32[5,4,1], index: 4, kind: input, shape index: {}]   ;;  %s6680_s5 = inlined_call_operand.hbm [shape: bf16[288,288], index: 5, kind: input, shape index: {}]   ;;  %s6681_s6 = inlined_call_operand.hbm [shape: f32[2,4,144], index: 6, kind: output, shape index: {}]  }
   0x1   :  { %12 = vsyncpa [#allocation8], 0  ;;  %s35_s23 = sshll.u32 %s6678_s3, 4  ;;  %s36_s23 = int_to_ptr.hbm [resolvable:$true] %s35_s23 }
   0x2   :  { %13 = vsyncpa [#allocation6], 0  ;;  %s5031_s24 = smov [#allocation7]   ;;  %s18_s28 = sshll.u32 %s6675_s0, 4  ;;  %s19_s28 = int_to_ptr.hbm [resolvable:$true] %s18_s28 }
   0x3   :  { %s37_s25 = sshll.u32 %s5031_s24, 4  ;;  %s5032_s29 = smov 48   ;;  %s38_s25 = int_to_ptr.vmem [resolvable:$true] %s37_s25 }
   0x4   :  { %s5033_s30 = smov 3   ;;  %s5034_s7 = smov [#allocation4]  }
   0x5   :  { %43 = dma.hbm_to_vmem [thread:$0]  %s36_s23, 240, %s38_s25, [#allocation8], %s5032_s29, %s5032_s29, %s5033_s30  }
   0x6   :  { %s20_s8 = sshll.u32 %s5034_s7, 4  ;;  %s5035_s9 = smov 256   ;;  %s21_s8 = int_to_ptr.vmem [resolvable:$true] %s20_s8 }
   0x7   :  { %s5036_s10 = smov 16   ;;  %s50_s12 = sshll.u32 %s6680_s5, 4  ;;  %s51_s12 = int_to_ptr.hbm [resolvable:$true] %s50_s12 }
   0x8   :  { %26 = dma.hbm_to_vmem [thread:$0]  %s19_s28, 512, %s21_s8, [#allocation5], %s5035_s9, %s5035_s9, %s5036_s10  }
   0x9   :  { %s5037_s13 = smov [#allocation9]   ;;  %s5038_s0 = smov 192  }
   0xa   :  { %s52_s14 = sshll.u32 %s5037_s13, 4  ;;  %s5039_s15 = smov 12   ;;  %s53_s14 = int_to_ptr.vmem [resolvable:$true] %s52_s14 }
   0xb   :  { %58 = dma.hbm_to_vmem [thread:$0]  %s51_s12, 6912, %s53_s14, [#allocation8], %s5038_s0, %s5038_s0, %s5039_s15  }
   0xc   :  { %5025 = dma.done.wait [#allocation5], 512  }
   0xd   :  { %5026 = vsyncadd [#allocation5], 4294966784 }
   0xe   :  { %5027 = dma.done.wait [#allocation8], 7152  }
   0xf   :  { %5028 = vsyncadd [#allocation8], 4294960144  ;;  %v5040_v0 = vmov 0.0   ;;  %v73_v1 = vld [vmem:[#allocation4 + $0x8] sm:$0xff]  ;;  %v72_v2 = vld [vmem:[#allocation4] sm:$0xff]  ;;  %s5041_s5 = smov 66  }
  0x10   :  { %128 = vst [vmem:[#allocation2] sm:$0xf0] %v5040_v0  ;;  %v94_v3 = vld [vmem:[#allocation4 + $0x18] sm:$0xff]  ;;  %v93_v4 = vld [vmem:[#allocation4 + $0x10] sm:$0xff]  ;;  %vm90_vm0 = vcmask 535552   ;;  %vm6682_vm1 = vcmask 1043984  }
  0x11   :  { %129 = vst [vmem:[#allocation2 + $0x8] sm:$0xf0] %v5040_v0  ;;  %vm112_vm2 = vcmask 539648   ;;  %s5042_s16 = smov 95   ;;  %s5043_s17 = smov 112   ;;  %vm6721_vm3 = vcmask 1041408  }
  0x12   :  { %132 = vst [vmem:[#allocation2 + $0x40] sm:$0xff] %v5040_v0  ;;  %s5044_s18 = smov 114   ;;  %s5045_s19 = smov 45   ;;  %vm254_vm4 = vcmask 128004   ;;  %vm6770_vm5 = vcmask 777216   ;;  %v6823_v63 = vmov 0 }
  0x13   :  { %133 = vst [vmem:[#allocation2 + $0x48] sm:$0xff] %v5040_v0  ;;  %s5046_s20 = smov 44   ;;  %s5047_s21 = smov 94   ;;  %vm5135_vm6 = vmor %vm254_vm4, %vm6721_vm3  ;;  %vm250_vm7 = vcmask 932864   ;;  %vm268_vm8 = vcmask 1043458   ;;  %vm269_vm9 = vcmask 130054  }
  0x14   :  { %136 = vst [vmem:[#allocation2 + $0x80] sm:$0xf] %v5040_v0  ;;  %s5048_s22 = smov 64   ;;  %s5049_s23 = smov 63   ;;  %v6824_v63 = vsel %vm5135_vm6, 4294967295, %v6823_v63  ;;  %vm314_vm10 = vcmask 769024   ;;  %vm5144_vm11 = vmor %vm269_vm9, %vm268_vm8 }
  0x15   :  { %137 = vst [vmem:[#allocation2 + $0x88] sm:$0xf] %v5040_v0  ;;  %s5050_s24 = smov 96   ;;  %s5051_s25 = smov 113   ;;  %vm6720_vm12 = vcmask 916480   ;;  %vm6765_vm13 = vcmask 785408  }
  0x16   :  { %148 = vst [vmem:[#allocation2 + $0x20] sm:$0xf0] %v5040_v0  ;;  %s5052_s26 = smov 62   ;;  %s5053_s27 = smov 46   ;;  %vm328_vm14 = vcmask 1041536   ;;  %vm329_vm15 = vcmask 259076  }
  0x17   :  { %157 = vst [vmem:[#allocation2 + $0xa0] sm:$0xf] %v5040_v0  ;;  %vm6737_vm4 = vcmask 367616   ;;  %vm344_vm8 = vcmask 261126   ;;  %vm6732_vm9 = vcmask 359424   ;;  %s5055_s3 = smov 33  }
  0x18   :  { %78 = vst [vmem:[#allocation1 + $0x10] ss:$2 sm:$0xff] %v73_v1  ;;  %s5056_s11 = smov 83   ;;  %s5057_s12 = smov 2  }
  0x19   :  { %76 = vst [vmem:[#allocation1] ss:$2 sm:$0xff] %v72_v2  ;;  %s5058_s13 = smov 4   ;;  %s5059_s14 = smov 80  }
  0x1a   :  { %6825 = vst [vmem:[#allocation14_spill] sm:$0xff] %v6824_v63  ;;  %s5060_s0 = smov 82   ;;  %s5061_s15 = smov 81  }
  0x1b   :  { %s5062_s28 = smov 38   ;;  %s5063_s29 = smov 39  }
  0x1c   :  { %s5064_s7 = smov 40   ;;  %s5065_s8 = smov 116  }
  0x1d   :  { %s5066_s9 = smov 117   ;;  %s5067_s10 = smov 118  }
  0x1f   :  { %v81_v5 = vld.sshfl [vmem:[#allocation1 + $0x10] sm:$0xff pattern:$0x75316420]  ;;  %v82_v6 = vld.sshfl [vmem:[#allocation1 + $0x18] sm:$0xff pattern:$0x75316420] }
  0x20   :  { %99 = vst [vmem:[#allocation1 + $0x10] ss:$2 sm:$0xff] %v94_v3  ;;  %v79_v7 = vld.sshfl [vmem:[#allocation1] sm:$0xff pattern:$0x75316420] }
  0x21   :  { %89 = vst [vmem:[#allocation2 + $0x10] sm:$0xf] %v81_v5  ;;  %v80_v8 = vld.sshfl [vmem:[#allocation1 + $0x8] sm:$0xff pattern:$0x75316420] }
  0x22   :  { %97 = vst [vmem:[#allocation1] ss:$2 sm:$0xff] %v93_v4 }
  0x23   :  { %87 = vst [vmem:[#allocation2] sm:$0xf] %v79_v7 }
  0x24   :  { %88 = vst [vmem:[#allocation2 + $0x8] sm:$0xf] %v80_v8 }
  0x25   :  { %91 = vst.msk [vmem:[#allocation2 + $0x18] sm:$0xf] %vm90_vm0, %v82_v6  ;;  %v6826_v6 = vmov 0  ;;  %vm6719_vm0 = vcmask 506880  }
  0x26   :  { %v6827_v6 = vsel %vm5144_vm11, 4294967295, %v6826_v6 }
  0x27   :  { %v102_v9 = vld.sshfl [vmem:[#allocation1 + $0x10] sm:$0xff pattern:$0x75316420]  ;;  %v103_v11 = vld.sshfl [vmem:[#allocation1 + $0x18] sm:$0xff pattern:$0x75316420] }
  0x28   :  { %108 = vrot.lane.b32.xlu1 %v102_v9, %s5041_s5  ;;  %v295_v16 = vld [vmem:[#allocation2 + $0x10] sm:$0xf]  ;;  %6828 = vst [vmem:[#allocation15_spill] sm:$0xff] %v6827_v6 }
  0x29   :  { %v100_v10 = vld.sshfl [vmem:[#allocation1] sm:$0xff pattern:$0x75316420]  ;;  %v101_v12 = vld.sshfl [vmem:[#allocation1 + $0x8] sm:$0xff pattern:$0x75316420] }
  0x2a   :  { %104 = vrot.lane.b32.xlu0 %v100_v10, %s5041_s5  ;;  %v272_v17 = vld [vmem:[#allocation2 + $0x10] sm:$0xf] }
  0x2b   :  { %v243_v26 = vld [vmem:[#allocation2 + $0x10] sm:$0xf] }
  0x2c   :  { %v306_v31 = vld [vmem:[#allocation2 + $0x10] sm:$0xf] }
  0x2d   :  { %v283_v45 = vld [vmem:[#allocation2 + $0x10] sm:$0xf] }
  0x2e   :  { %v257_v48 = vld [vmem:[#allocation2 + $0x10] sm:$0xf] }
  0x30   :  { %110 = vrot.lane.b32.xlu1 %v103_v11, %s5041_s5 }
  0x32   :  { %106 = vrot.lane.b32.xlu0 %v101_v12, %s5041_s5 }
  0x9a   :  { %v109_v13 = vpop.permute.xlu1 %108 }
  0x9c   :  { %v105_v14 = vpop.permute.xlu0 %104 }
  0x9d   :  { %122 = vst.msk [vmem:[#allocation2 + $0x18] sm:$0xf] %vm6682_vm1, %v105_v14 }
  0xa2   :  { %v111_v15 = vpop.permute.xlu1 %110 }
  0xa3   :  { %v115_v18 = vsel %vm112_vm2, %v109_v13, %v111_v15 }
  0xa4   :  { %125 = vst [vmem:[#allocation2 + $0x30] sm:$0xf] %v115_v18  ;;  %v107_v19 = vpop.permute.xlu0 %106  ;;  %v296_v20 = vld [vmem:[#allocation2 + $0x18] sm:$0xf] }
  0xa5   :  { %v273_v21 = vld [vmem:[#allocation2 + $0x18] sm:$0xf]  ;;  %v113_v22 = vsel %vm112_vm2, %v105_v14, %v107_v19  ;;  %v114_v23 = vsel %vm112_vm2, %v107_v19, %v109_v13  ;;  %v297_v24 = vpack.c.bf16 %v296_v20, %v295_v16  ;;  %vm5157_vm2 = vmor %vm329_vm15, %vm328_vm14  ;;  %v6829_v16 = vmov 0 }
  0xa6   :  { %v274_v25 = vpack.c.bf16 %v273_v21, %v272_v17  ;;  %123 = vst [vmem:[#allocation2 + $0x20] sm:$0xf] %v113_v22  ;;  %v244_v27 = vld [vmem:[#allocation2 + $0x18] sm:$0xf]  ;;  %v6830_v16 = vsel %vm5157_vm2, 4294967295, %v6829_v16  ;;  %vm325_vm14 = vcmask 523264  }
  0xa7   :  { %124 = vst [vmem:[#allocation2 + $0x28] sm:$0xf] %v114_v23  ;;  %299 = vrot.lane.b32.xlu2 %v297_v24, %s5042_s16  ;;  %v245_v30 = vpack.c.bf16 %v244_v27, %v243_v26  ;;  %v307_v34 = vld [vmem:[#allocation2 + $0x18] sm:$0xf]  ;;  %v6832_v23 = vmov 0  ;;  %vm265_vm15 = vcmask 924672  }
  0xa8   :  { %276 = vrot.lane.b32.xlu1 %v274_v25, %s5043_s17  ;;  %v308_v38 = vpack.c.bf16 %v307_v34, %v306_v31  ;;  %v284_v46 = vld [vmem:[#allocation2 + $0x18] sm:$0xf]  ;;  %6831 = vst [vmem:[#allocation16_spill] sm:$0xff] %v6830_v16 }
  0xa9   :  { %v258_v49 = vld [vmem:[#allocation2 + $0x18] sm:$0xf]  ;;  %v285_v51 = vpack.c.bf16 %v284_v46, %v283_v45  ;;  %v4302_v45 = vld [vmem:[#allocation9 + $0xa8] sm:$0xf] }
  0xaa   :  { %v310_v43 = vrot.slane %v308_v38, 6  ;;  %v259_v52 = vpack.c.bf16 %v258_v49, %v257_v48  ;;  %v4748_v46 = vld [vmem:[#allocation9 + $0xb0] sm:$0xf0]  ;;  %v4290_v49 = vld [vmem:[#allocation9 + $0x90] sm:$0xf] }
  0xab   :  { %v371_v28 = vld [vmem:[#allocation2 + $0x30] sm:$0xf]  ;;  %v287_v53 = vrot.slane %v285_v51, 6  ;;  %v5181_v48 = vor.u32 %v4748_v46, %v4302_v45  ;;  %v4338_v45 = vld [vmem:[#allocation9 + $0xf0] sm:$0xf] }
  0xac   :  { %v382_v29 = vld [vmem:[#allocation2 + $0x30] sm:$0xf]  ;;  %v261_v54 = vrot.slane %v259_v52, 6  ;;  %v4398_v52 = vld [vmem:[#allocation9 + $0x168] sm:$0xf] }
  0xad   :  { %v333_v40 = vld [vmem:[#allocation2 + $0x30] sm:$0xf]  ;;  %772 = vmatpush.bf16.msra.mxu3 %v5181_v48  ;;  %v4757_v46 = vld [vmem:[#allocation9 + $0xf8] sm:$0xf0] }
  0xae   :  { %v370_v32 = vld [vmem:[#allocation2 + $0x28] sm:$0xf]  ;;  %v319_v42 = vld [vmem:[#allocation2 + $0x30] sm:$0xf] }
  0xaf   :  { %v381_v33 = vld [vmem:[#allocation2 + $0x28] sm:$0xf]  ;;  %247 = vrot.lane.b32.xlu2 %v245_v30, %s5044_s18  ;;  %v372_v35 = vpack.c.bf16 %v371_v28, %v370_v32  ;;  %v359_v56 = vld [vmem:[#allocation2 + $0x30] sm:$0xf]  ;;  %s5068_s18 = smov 110  }
  0xb0   :  { %v383_v36 = vpack.c.bf16 %v382_v29, %v381_v33  ;;  %v332_v39 = vld [vmem:[#allocation2 + $0x28] sm:$0xf]  ;;  %v348_v58 = vld [vmem:[#allocation2 + $0x30] sm:$0xf] }
  0xb1   :  { %374 = vrot.lane.b32.xlu0 %v372_v35, %s5045_s19  ;;  %v318_v41 = vld [vmem:[#allocation2 + $0x28] sm:$0xf]  ;;  %v334_v44 = vpack.c.bf16 %v333_v40, %v332_v39 }
  0xb2   :  { %v385_v37 = vrot.slane %v383_v36, 6  ;;  %v320_v47 = vpack.c.bf16 %v319_v42, %v318_v41  ;;  %v358_v55 = vld [vmem:[#allocation2 + $0x28] sm:$0xf] }
  0xb3   :  { %v336_v50 = vrot.slane %v334_v44, 6  ;;  %v347_v57 = vld [vmem:[#allocation2 + $0x28] sm:$0xf]  ;;  %v360_v59 = vpack.c.bf16 %v359_v56, %v358_v55 }
  0xb4   :  { %386 = vrot.lane.b32.xlu1 %v385_v37, %s5046_s20  ;;  %v349_v60 = vpack.c.bf16 %v348_v58, %v347_v57 }
  0xb5   :  { %v362_v61 = vrot.slane %v360_v59, 6 }
  0xb7   :  { %311 = vrot.lane.b32.xlu2 %v310_v43, %s5047_s21 }
  0xb9   :  { %322 = vrot.lane.b32.xlu0 %v320_v47, %s5048_s22  ;;  %s5070_s22 = smov 111  }
  0xbc   :  { %337 = vrot.lane.b32.xlu1 %v336_v50, %s5049_s23  ;;  %v4745_v50 = vld [vmem:[#allocation9 + $0x98] sm:$0xf0]  ;;  %s5071_s23 = smov 61  }
  0xbf   :  { %288 = vrot.lane.b32.xlu2 %v287_v53, %s5050_s24  ;;  %v4772_v53 = vld [vmem:[#allocation9 + $0x170] sm:$0xf0] }
  0xc0   :  { %v5190_v59 = vor.u32 %v4772_v53, %v4398_v52  ;;  %v4735_v53 = vld [vmem:[#allocation9 + $0x4c] sm:$0xf] }
  0xc1   :  { %262 = vrot.lane.b32.xlu0 %v261_v54, %s5051_s25  ;;  %v5186_v54 = vor.u32 %v4745_v50, %v4290_v49  ;;  %v4422_v49 = vld [vmem:[#allocation9 + $0x198] sm:$0xf]  ;;  %v4778_v50 = vld [vmem:[#allocation9 + $0x1a0] sm:$0xf0] }
  0xc3   :  { %773 = vmatpush.bf16.msra.mxu3 %v5186_v54 }
  0xc7   :  { %351 = vrot.lane.b32.xlu2 %v349_v60, %s5052_s26  ;;  %v4278_v60 = vld [vmem:[#allocation9 + $0x78] sm:$0xf] }
  0xc9   :  { %363 = vrot.lane.b32.xlu0 %v362_v61, %s5053_s27  ;;  %v4742_v61 = vld [vmem:[#allocation9 + $0x80] sm:$0xf0] }
 0x101   :  { %v300_v62 = vpop.permute.xlu2 %299 }
 0x102   :  { %v301_v0 = vrot.slane %v300_v62, 4 }
 0x104   :  { %v303_v1 = vsel %vm6770_vm5, %v300_v62, %v301_v0  ;;  %v4386_v0 = vld [vmem:[#allocation9 + $0x150] sm:$0xf] }
 0x105   :  { %305 = vst.msk [vmem:[#allocation3 + $0x18] sm:$0x33] %vm5135_vm6, %v303_v1  ;;  %v4769_v1 = vld [vmem:[#allocation9 + $0x158] sm:$0xf0] }
 0x109   :  { %v248_v2 = vpop.permute.xlu2 %247 }
 0x10a   :  { %v249_v3 = vrot.slane %v248_v2, 4 }
 0x10c   :  { %v251_v4 = vsel %vm250_vm7, %v248_v2, %v249_v3  ;;  %vm343_vm7 = vcmask 1043586   ;;  %v5194_v2 = vor.u32 %v4742_v61, %v4278_v60  ;;  %v393_v3 = vld [vmem:[%s6676_s1] sm:$0x3] }
 0x10d   :  { %256 = vst.msk [vmem:[#allocation3] sm:$0x33] %vm5135_vm6, %v251_v4  ;;  %vm5165_vm1 = vmor %vm344_vm8, %vm343_vm7  ;;  %vm6762_vm7 = vcmask 1043456   ;;  %vm340_vm8 = vcmask 515072   ;;  %v4747_v4 = vld [vmem:[#allocation9 + $0xac] sm:$0xf] }
 0x10e   :  { %v6833_v23 = vsel %vm5165_vm1, 4294967295, %v6832_v23  ;;  %774 = vmatpush.bf16.msra.mxu3 %v5194_v2  ;;  %v4732_v61 = vld [vmem:[#allocation9 + $0x34] sm:$0xf] }
 0x10f   :  { %6834 = vst [vmem:[#allocation17_spill] sm:$0xff] %v6833_v23 }
 0x111   :  { %v312_v5 = vpop.permute.xlu2 %311 }
 0x112   :  { %v313_v7 = vrot.slane %v312_v5, 4 }
 0x114   :  { %v315_v8 = vsel %vm314_vm10, %v312_v5, %v313_v7  ;;  %v5201_v5 = vor.u32 %v4769_v1, %v4386_v0  ;;  %v4266_v7 = vld [vmem:[#allocation9 + $0x60] sm:$0xf] }
 0x115   :  { %317 = vst.msk [vmem:[#allocation3 + $0x18] sm:$0xcc] %vm5144_vm11, %v315_v8  ;;  %v4739_v8 = vld [vmem:[#allocation9 + $0x68] sm:$0xf0]  ;;  %v4244_v0 = vld [vmem:[#allocation9 + $0x3c] sm:$0xf0] }
 0x116   :  { %v4314_v1 = vld [vmem:[#allocation9 + $0xc0] sm:$0xf] }
 0x119   :  { %v289_v10 = vpop.permute.xlu2 %288 }
 0x11a   :  { %v277_v9 = vpop.permute.xlu1 %276  ;;  %v290_v12 = vrot.slane %v289_v10, 4 }
 0x11b   :  { %v278_v11 = vrot.slane %v277_v9, 4 }
 0x11c   :  { %v292_v14 = vsel %vm6765_vm13, %v289_v10, %v290_v12  ;;  %v4374_v10 = vld [vmem:[#allocation9 + $0x138] sm:$0xf]  ;;  %v5203_v12 = vor.u32 %v4739_v8, %v4266_v7  ;;  %v4749_v7 = vld [vmem:[#allocation9 + $0xb8] sm:$0xf0]  ;;  %v5251_v8 = vor.u32 %v4732_v61, %v4244_v0  ;;  %v4743_v61 = vld [vmem:[#allocation9 + $0x88] sm:$0xf0] }
 0x11d   :  { %v280_v13 = vsel %vm6720_vm12, %v277_v9, %v278_v11  ;;  %294 = vst.msk [vmem:[#allocation3 + $0xc] sm:$0xcc] %vm5144_vm11, %v292_v14  ;;  %v4304_v9 = vld [vmem:[#allocation9 + $0xb4] sm:$0xf0]  ;;  %v4766_v11 = vld [vmem:[#allocation9 + $0x140] sm:$0xf0] }
 0x11e   :  { %282 = vst.msk [vmem:[#allocation3 + $0xc] sm:$0x33] %vm5135_vm6, %v280_v13  ;;  %775 = vmatpush.bf16.msra.mxu3 %v5203_v12  ;;  %v4358_v0 = vld [vmem:[#allocation9 + $0x110] sm:$0xf] }
 0x11f   :  { %6835 = vst [vmem:[#allocation18_spill] sm:$0xff] %v5203_v12 }
 0x120   :  { %6844 = vst [vmem:[#allocation27_spill] sm:$0xff] %v5251_v8 }
 0x121   :  { %v352_v15 = vpop.permute.xlu2 %351 }
 0x122   :  { %v353_v17 = vrot.slane %v352_v15, 4 }
 0x123   :  { %v375_v18 = vpop.permute.xlu0 %374 }
 0x124   :  { %v355_v19 = vsel %vm6719_vm0, %v352_v15, %v353_v17  ;;  %v376_v20 = vrot.slane %v375_v18, 4  ;;  %v4744_v15 = vld [vmem:[#allocation9 + $0x94] sm:$0xf]  ;;  %v4292_v17 = vld [vmem:[#allocation9 + $0x9c] sm:$0xf0] }
 0x125   :  { %357 = vst.msk [vmem:[#allocation3 + $0x10] sm:$0x33] %vm5157_vm2, %v355_v19  ;;  %v4781_v56 = vld [vmem:[#allocation3 + $0x8] sm:$0xf0] }
 0x126   :  { %v387_v21 = vpop.permute.xlu1 %386  ;;  %v378_v22 = vsel %vm6737_vm4, %v375_v18, %v376_v20  ;;  %v5207_v20 = vor.u32 %v4747_v4, %v4304_v9  ;;  %v4310_v4 = vld [vmem:[#allocation9 + $0xb0] sm:$0xf] }
 0x127   :  { %v388_v24 = vrot.slane %v387_v21, 4  ;;  %380 = vst.msk [vmem:[#allocation3 + $0x1c] sm:$0x33] %vm5157_vm2, %v378_v22  ;;  %v4254_v22 = vld [vmem:[#allocation9 + $0x48] sm:$0xf] }
 0x129   :  { %v390_v25 = vsel %vm6732_vm9, %v387_v21, %v388_v24  ;;  %v5210_v21 = vor.u32 %v4766_v11, %v4374_v10  ;;  %v4729_v10 = vld [vmem:[#allocation9 + $0x1c] sm:$0xf]  ;;  %v4232_v11 = vld [vmem:[#allocation9 + $0x24] sm:$0xf0]  ;;  %vm160_vm9 = vcmask 1048476  }
 0x12a   :  { %392 = vst.msk [vmem:[#allocation3 + $0x1c] sm:$0xcc] %vm5165_vm1, %v390_v25 }
 0x12b   :  { %v323_v26 = vpop.permute.xlu0 %322 }
 0x12c   :  { %v324_v27 = vrot.slane %v323_v26, 4 }
 0x12e   :  { %v326_v28 = vsel %vm325_vm14, %v323_v26, %v324_v27  ;;  %v338_v29 = vpop.permute.xlu1 %337  ;;  %vm6731_vm14 = vcmask 375808   ;;  %v4362_v26 = vld [vmem:[#allocation9 + $0x120] sm:$0xf]  ;;  %v4763_v27 = vld [vmem:[#allocation9 + $0x128] sm:$0xf0] }
 0x12f   :  { %331 = vst.msk [vmem:[#allocation3 + $0x4] sm:$0x33] %vm5157_vm2, %v326_v28  ;;  %v339_v35 = vrot.slane %v338_v29, 4  ;;  %v4736_v28 = vld [vmem:[#allocation9 + $0x50] sm:$0xf0] }
 0x131   :  { %v398_v30 = vld [vmem:[#allocation3 + $0x18] sm:$0xff]  ;;  %v399_v31 = vld [vmem:[#allocation3 + $0x20] sm:$0xf]  ;;  %v341_v47 = vsel %vm340_vm8, %v338_v29, %v339_v35  ;;  %v5212_v29 = vor.u32 %v4736_v28, %v4254_v22  ;;  %v4280_v35 = vld [vmem:[#allocation9 + $0x84] sm:$0xf0]  ;;  %vm6730_vm8 = vcmask 261120  }
 0x132   :  { %v412_v32 = vunpack.c.l.b16 %v398_v30  ;;  %v413_v33 = vunpack.c.h.b16 %v398_v30  ;;  %v414_v34 = vunpack.c.l.b16 %v399_v31  ;;  %v4242_v30 = vld [vmem:[#allocation9 + $0x30] sm:$0xf]  ;;  %v4733_v31 = vld [vmem:[#allocation9 + $0x38] sm:$0xf0]  ;;  %v4382_v28 = vld [vmem:[#allocation9 + $0x140] sm:$0xf] }
 0x133   :  { %v263_v36 = vpop.permute.xlu0 %262  ;;  %6836 = vst [vmem:[#allocation19_spill] sm:$0xff] %v5212_v29  ;;  %776 = vmatpush.bf16.msra.mxu3 %v5212_v29 }
 0x134   :  { %v418_v37 = vpack.c.b16 %v412_v32, %v412_v32  ;;  %v419_v38 = vpack.c.b16 %v413_v33, %v413_v33  ;;  %v420_v39 = vpack.c.b16 %v414_v34, %v414_v34  ;;  %v264_v40 = vrot.slane %v263_v36, 4  ;;  %v4741_v33 = vld [vmem:[#allocation9 + $0x7c] sm:$0xf] }
 0x135   :  { %v5215_v32 = vor.u32 %v4744_v15, %v4292_v17  ;;  %v5218_v34 = vor.u32 %v4763_v27, %v4362_v26  ;;  %v4726_v15 = vld [vmem:[#allocation9 + $0x4] sm:$0xf]  ;;  %v4220_v17 = vld [vmem:[#allocation9 + $0xc] sm:$0xf0] }
 0x136   :  { %v430_v41 = vsel %vm6762_vm7, %v418_v37, 0  ;;  %v433_v42 = vsel %vm6762_vm7, %v419_v38, 0  ;;  %v436_v43 = vsel %vm6762_vm7, %v420_v39, 0  ;;  %v266_v44 = vsel %vm265_vm15, %v263_v36, %v264_v40  ;;  %v4350_v36 = vld [vmem:[#allocation9 + $0x108] sm:$0xf] }
 0x137   :  { %444 = vmatpush.bf16.msra.mxu0 %v430_v41  ;;  %457 = vmatpush.bf16.msra.mxu1 %v433_v42  ;;  %271 = vst.msk [vmem:[#allocation3] sm:$0xcc] %vm5144_vm11, %v266_v44  ;;  %vm424_vm15 = vcmask 195584   ;;  %v4760_v37 = vld [vmem:[#allocation9 + $0x110] sm:$0xf0]  ;;  %v5221_v38 = vor.u32 %v4733_v31, %v4242_v30  ;;  %v5226_v41 = vor.u32 %v4741_v33, %v4280_v35 }
 0x138   :  { %470 = vmatpush.bf16.msra.mxu2 %v436_v43  ;;  %346 = vst.msk [vmem:[#allocation3 + $0x4] sm:$0xcc] %vm5165_vm1, %v341_v47  ;;  %v4230_v39 = vld [vmem:[#allocation9 + $0x18] sm:$0xf]  ;;  %v4730_v40 = vld [vmem:[#allocation9 + $0x20] sm:$0xf0]  ;;  %v5229_v44 = vor.u32 %v4760_v37, %v4350_v36  ;;  %v5264_v22 = vor.u32 %v4726_v15, %v4220_v17 }
 0x139   :  { %6837 = vst [vmem:[#allocation20_spill] sm:$0xff] %v5221_v38  ;;  %v4738_v42 = vld [vmem:[#allocation9 + $0x64] sm:$0xf]  ;;  %v4268_v43 = vld [vmem:[#allocation9 + $0x6c] sm:$0xf0]  ;;  %777 = vmatpush.bf16.msra.mxu3 %v5221_v38  ;;  %v5232_v47 = vor.u32 %v4730_v40, %v4230_v39 }
 0x13a   :  { %6838 = vst [vmem:[#allocation21_spill] sm:$0xff] %v5229_v44  ;;  %v5237_v52 = vor.u32 %v4738_v42, %v4268_v43  ;;  %v4770_v26 = vld [vmem:[#allocation9 + $0x160] sm:$0xf0]  ;;  %v4767_v30 = vld [vmem:[#allocation9 + $0x148] sm:$0xf0] }
 0x13b   :  { %v364_v51 = vpop.permute.xlu0 %363  ;;  %6839 = vst [vmem:[#allocation22_spill] sm:$0xff] %v5232_v47  ;;  %v5273_v31 = vor.u32 %v4767_v30, %v4382_v28  ;;  %v4218_v33 = vld [vmem:[#allocation9] sm:$0xf]  ;;  %v4727_v35 = vld [vmem:[#allocation9 + $0x8] sm:$0xf0] }
 0x13c   :  { %v365_v55 = vrot.slane %v364_v51, 4  ;;  %6840 = vst [vmem:[#allocation23_spill] sm:$0xff] %v5237_v52  ;;  %v4298_v36 = vld [vmem:[#allocation9 + $0x98] sm:$0xf]  ;;  %v5276_v37 = vor.u32 %v4727_v35, %v4218_v33  ;;  %v4746_v39 = vld [vmem:[#allocation9 + $0xa0] sm:$0xf0] }
 0x13d   :  { %778 = vmatpush.bf16.msra.mxu3 %v5232_v47  ;;  %6848 = vst [vmem:[#allocation31_spill] sm:$0xff] %v5264_v22  ;;  %v4370_v40 = vld [vmem:[#allocation9 + $0x128] sm:$0xf]  ;;  %v4764_v42 = vld [vmem:[#allocation9 + $0x130] sm:$0xf0]  ;;  %v5278_v43 = vor.u32 %v4746_v39, %v4298_v36 }
 0x13e   :  { %v367_v57 = vsel %vm6731_vm14, %v364_v51, %v365_v55  ;;  %v4203_v58 = vld [vmem:[#allocation3] sm:$0xf]  ;;  %v5234_v51 = vor.u32 %v4778_v50, %v4422_v49  ;;  %v5240_v55 = vor.u32 %v4757_v46, %v4338_v45  ;;  %6851 = vst [vmem:[#allocation34_spill] sm:$0xff] %v5276_v37  ;;  %v5280_v45 = vor.u32 %v4764_v42, %v4370_v40  ;;  %v4410_v46 = vld [vmem:[#allocation9 + $0x180] sm:$0xf] }
 0x13f   :  { %369 = vst.msk [vmem:[#allocation3 + $0x10] sm:$0xcc] %vm5165_vm1, %v367_v57  ;;  %v4204_v62 = vor.u32 %v4781_v56, %v4203_v58  ;;  %v4780_v13 = vld [vmem:[#allocation3 + $0x4] sm:$0xf]  ;;  %v4211_v14 = vld [vmem:[#allocation3 + $0x8] sm:$0xf] }
 0x140   :  { %6841 = vst [vmem:[#allocation24_spill] sm:$0xff] %v5240_v55  ;;  %v4256_v56 = vld [vmem:[#allocation9 + $0x54] sm:$0xf0]  ;;  %v4754_v58 = vld [vmem:[#allocation9 + $0xe0] sm:$0xf0]  ;;  %vm149_vm14 = vcmask 809988  }
 0x141   :  { %445 = vmatpush.bf16.msra.mxu0 %v4204_v62  ;;  %v4326_v57 = vld [vmem:[#allocation9 + $0xd8] sm:$0xf]  ;;  %v5245_v60 = vor.u32 %v4735_v53, %v4256_v56  ;;  %6852 = vst [vmem:[#allocation35_spill] sm:$0xff] %v5278_v43  ;;  %v4775_v49 = vld [vmem:[#allocation9 + $0x188] sm:$0xf0]  ;;  %779 = vmatpush.bf16.msra.mxu3 %v5276_v37 }
 0x142   :  { %v5248_v62 = vor.u32 %v4754_v58, %v4326_v57  ;;  %v4771_v50 = vld [vmem:[#allocation9 + $0x16c] sm:$0xf]  ;;  %v5283_v53 = vor.u32 %v4775_v49, %v4410_v46  ;;  %v4400_v56 = vld [vmem:[#allocation9 + $0x174] sm:$0xf0]  ;;  %v4286_v58 = vld [vmem:[#allocation9 + $0x80] sm:$0xf] }
 0x143   :  { %6842 = vst [vmem:[#allocation25_spill] sm:$0xff] %v5245_v60  ;;  %v5287_v57 = vor.u32 %v4771_v50, %v4400_v56  ;;  %v4777_v15 = vld [vmem:[#allocation9 + $0x19c] sm:$0xf]  ;;  %v4424_v17 = vld [vmem:[#allocation9 + $0x1a4] sm:$0xf0] }
 0x144   :  { %4213 = vmatmul.msk.bf16.vlgmr.msra.gmra.mxu0 %vm424_vm15, %v393_v3  ;;  %6843 = vst [vmem:[#allocation26_spill] sm:$0xff] %v5248_v62  ;;  %v4758_v30 = vld [vmem:[#allocation9 + $0x100] sm:$0xf0]  ;;  %v4765_v35 = vld [vmem:[#allocation9 + $0x13c] sm:$0xf] }
 0x145   :  { %785 = vmatpush.bf16.msrb.mxu0 %v5190_v59  ;;  %v4376_v36 = vld [vmem:[#allocation9 + $0x144] sm:$0xf0]  ;;  %v4262_v40 = vld [vmem:[#allocation9 + $0x50] sm:$0xf]  ;;  %v4737_v42 = vld [vmem:[#allocation9 + $0x58] sm:$0xf0] }
 0x146   :  { %v4205_v18 = vld [vmem:[#allocation3 + $0xc] sm:$0xf0]  ;;  %v4782_v19 = vld [vmem:[#allocation3 + $0x10] sm:$0xf0]  ;;  %v5307_v39 = vor.u32 %v4765_v35, %v4376_v36  ;;  %v4334_v46 = vld [vmem:[#allocation9 + $0xe0] sm:$0xf]  ;;  %v5311_v49 = vor.u32 %v4737_v42, %v4262_v40 }
 0x147   :  { %v4208_v24 = vor.u32 %v4780_v13, %v4205_v18  ;;  %v4212_v25 = vor.u32 %v4782_v19, %v4211_v14  ;;  %v5256_v13 = vor.u32 %v4749_v7, %v4310_v4  ;;  %v5259_v14 = vor.u32 %v4729_v10, %v4232_v11  ;;  %v4406_v18 = vld [vmem:[#allocation9 + $0x170] sm:$0xf]  ;;  %v4773_v19 = vld [vmem:[#allocation9 + $0x178] sm:$0xf0]  ;;  %v4768_v4 = vld [vmem:[#allocation9 + $0x154] sm:$0xf] }
 0x148   :  { %v4388_v7 = vld [vmem:[#allocation9 + $0x15c] sm:$0xf0]  ;;  %6856 = vst [vmem:[#allocation39_spill] sm:$0xff] %v5311_v49  ;;  %v4755_v50 = vld [vmem:[#allocation9 + $0xe8] sm:$0xf0] }
 0x149   :  { %786 = vmatpush.bf16.msrb.mxu0 %v5201_v5  ;;  %458 = vmatpush.bf16.msra.mxu1 %v4208_v24  ;;  %6846 = vst [vmem:[#allocation29_spill] sm:$0xff] %v5256_v13  ;;  %v5266_v24 = vor.u32 %v4773_v19, %v4406_v18  ;;  %v5295_v11 = vor.u32 %v4768_v4, %v4388_v7  ;;  %v4274_v19 = vld [vmem:[#allocation9 + $0x68] sm:$0xf]  ;;  %v4412_v4 = vld [vmem:[#allocation9 + $0x18c] sm:$0xf0] }
 0x14a   :  { %471 = vmatpush.bf16.msra.mxu2 %v4212_v25  ;;  %6847 = vst [vmem:[#allocation30_spill] sm:$0xff] %v5259_v14  ;;  %v4394_v25 = vld [vmem:[#allocation9 + $0x158] sm:$0xf]  ;;  %v5297_v18 = vor.u32 %v4777_v15, %v4424_v17  ;;  %v5314_v56 = vor.u32 %v4755_v50, %v4334_v46  ;;  %v4734_v17 = vld [vmem:[#allocation9 + $0x40] sm:$0xf0] }
 0x14b   :  { %6849 = vst [vmem:[#allocation32_spill] sm:$0xff] %v5266_v24  ;;  %v5270_v27 = vor.u32 %v4770_v26, %v4394_v25  ;;  %v4740_v25 = vld [vmem:[#allocation9 + $0x70] sm:$0xf0]  ;;  %v4346_v26 = vld [vmem:[#allocation9 + $0xf8] sm:$0xf] }
 0x14c   :  { %4214 = vmatmul.msk.bf16.vlgmr.msra.gmra.mxu1 %vm424_vm15, %v393_v3  ;;  %6854 = vst [vmem:[#allocation37_spill] sm:$0xff] %v5297_v18  ;;  %843 = vmatpush.bf16.msrb.mxu3 %v5297_v18  ;;  %v5302_v28 = vor.u32 %v4740_v25, %v4274_v19  ;;  %v5305_v33 = vor.u32 %v4758_v30, %v4346_v26  ;;  %v4250_v7 = vld [vmem:[#allocation9 + $0x38] sm:$0xf]  ;;  %v4322_v19 = vld [vmem:[#allocation9 + $0xc8] sm:$0xf] }
 0x14d   :  { %787 = vmatpush.bf16.msrb.mxu0 %v5210_v21  ;;  %4215 = vmatmul.msk.bf16.vlgmr.msra.gmra.mxu2 %vm424_vm15, %v393_v3  ;;  %v4751_v3 = vld [vmem:[#allocation9 + $0xc8] sm:$0xf0]  ;;  %6850 = vst [vmem:[#allocation33_spill] sm:$0xff] %v5270_v27  ;;  %v4752_v25 = vld [vmem:[#allocation9 + $0xd0] sm:$0xf0]  ;;  %v5323_v26 = vor.u32 %v4734_v17, %v4250_v7 }
 0x14e   :  { %811 = vmatpush.bf16.msrb.mxu2 %v5207_v20  ;;  %804 = vmatpush.bf16.msrb.mxu1 %v5234_v51  ;;  %v5254_v9 = vor.u32 %v4751_v3, %v4314_v1  ;;  %v5290_v1 = vor.u32 %v4743_v61, %v4286_v58  ;;  %v4761_v3 = vld [vmem:[#allocation9 + $0x118] sm:$0xf0]  ;;  %6855 = vst [vmem:[#allocation38_spill] sm:$0xff] %v5302_v28  ;;  %v4762_v58 = vld [vmem:[#allocation9 + $0x124] sm:$0xf] }
 0x14f   :  { %v5293_v10 = vor.u32 %v4761_v3, %v4358_v0  ;;  %v4364_v61 = vld [vmem:[#allocation9 + $0x12c] sm:$0xf0]  ;;  %v4774_v3 = vld [vmem:[#allocation9 + $0x184] sm:$0xf]  ;;  %6859 = vst [vmem:[#allocation42_spill] sm:$0xff] %v5323_v26  ;;  %v5325_v30 = vor.u32 %v4752_v25, %v4322_v19 }
 0x150   :  { %6845 = vst [vmem:[#allocation28_spill] sm:$0xff] %v5254_v9  ;;  %v5316_v0 = vor.u32 %v4762_v58, %v4364_v61  ;;  %v5320_v15 = vor.u32 %v4774_v3, %v4412_v4  ;;  %v4759_v35 = vld [vmem:[#allocation9 + $0x10c] sm:$0xf]  ;;  %v4352_v36 = vld [vmem:[#allocation9 + $0x114] sm:$0xf0] }
 0x151   :  { %788 = vmatpush.bf16.msrb.mxu0 %v5218_v34  ;;  %6853 = vst [vmem:[#allocation36_spill] sm:$0xff] %v5290_v1  ;;  %v5328_v40 = vor.u32 %v4759_v35, %v4352_v36  ;;  %v4238_v42 = vld [vmem:[#allocation9 + $0x20] sm:$0xf]  ;;  %v4731_v46 = vld [vmem:[#allocation9 + $0x28] sm:$0xf0] }
 0x152   :  { %812 = vmatpush.bf16.msrb.mxu2 %v5215_v32  ;;  %805 = vmatpush.bf16.msrb.mxu1 %v5283_v53  ;;  %6857 = vst [vmem:[#allocation40_spill] sm:$0xff] %v5316_v0  ;;  %v5332_v50 = vor.u32 %v4731_v46, %v4238_v42  ;;  %v4756_v58 = vld [vmem:[#allocation9 + $0xf4] sm:$0xf]  ;;  %v4340_v61 = vld [vmem:[#allocation9 + $0xfc] sm:$0xf0] }
 0x153   :  { %6858 = vst [vmem:[#allocation41_spill] sm:$0xff] %v5320_v15  ;;  %844 = vmatpush.bf16.msrb.mxu3 %v5320_v15  ;;  %v5335_v3 = vor.u32 %v4756_v58, %v4340_v61  ;;  %v4226_v4 = vld [vmem:[#allocation9 + $0x8] sm:$0xf]  ;;  %v4728_v7 = vld [vmem:[#allocation9 + $0x10] sm:$0xf0] }
 0x154   :  { %6860 = vst [vmem:[#allocation43_spill] sm:$0xff] %v5325_v30  ;;  %v4753_v17 = vld [vmem:[#allocation9 + $0xdc] sm:$0xf]  ;;  %v4328_v19 = vld [vmem:[#allocation9 + $0xe4] sm:$0xf0]  ;;  %v5339_v25 = vor.u32 %v4728_v7, %v4226_v4 }
 0x155   :  { %789 = vmatpush.bf16.msrb.mxu0 %v5229_v44  ;;  %6861 = vst [vmem:[#allocation44_spill] sm:$0xff] %v5328_v40  ;;  %v5341_v35 = vor.u32 %v4753_v17, %v4328_v19  ;;  %v4750_v36 = vld [vmem:[#allocation9 + $0xc4] sm:$0xf]  ;;  %v4316_v42 = vld [vmem:[#allocation9 + $0xcc] sm:$0xf0] }
 0x156   :  { %813 = vmatpush.bf16.msrb.mxu2 %v5226_v41  ;;  %824 = vmatpush.bf16.msra.mxu1 %v5287_v57  ;;  %6862 = vst [vmem:[#allocation45_spill] sm:$0xff] %v5332_v50  ;;  %v5345_v46 = vor.u32 %v4750_v36, %v4316_v42  ;;  %v4430_v58 = vld [vmem:[#allocation9 + $0x1a0] sm:$0xf]  ;;  %v4779_v61 = vld [vmem:[#allocation9 + $0x1a8] sm:$0xf0] }
 0x157   :  { %6863 = vst [vmem:[#allocation46_spill] sm:$0xff] %v5335_v3  ;;  %v5349_v16 = vor.u32 %v4779_v61, %v4430_v58  ;;  %v4418_v7 = vld [vmem:[#allocation9 + $0x188] sm:$0xf]  ;;  %v4776_v17 = vld [vmem:[#allocation9 + $0x190] sm:$0xf0] }
 0x158   :  { %6864 = vst [vmem:[#allocation47_spill] sm:$0xff] %v5339_v25  ;;  %v5355_v19 = vor.u32 %v4776_v17, %v4418_v7 }
 0x159   :  { %790 = vmatpush.bf16.msrb.mxu0 %v5240_v55  ;;  %6865 = vst [vmem:[#allocation48_spill] sm:$0xff] %v5341_v35 }
 0x15a   :  { %814 = vmatpush.bf16.msrb.mxu2 %v5237_v52  ;;  %825 = vmatpush.bf16.msra.mxu1 %v5295_v11  ;;  %6866 = vst [vmem:[#allocation49_spill] sm:$0xff] %v5345_v46 }
 0x15b   :  { %6867 = vst [vmem:[#allocation50_spill] sm:$0xff] %v5349_v16 }
 0x15c   :  { %6868 = vst [vmem:[#allocation51_spill] sm:$0xff] %v5355_v19 }
 0x15d   :  { %791 = vmatpush.bf16.msrb.mxu0 %v5248_v62 }
 0x15e   :  { %815 = vmatpush.bf16.msrb.mxu2 %v5245_v60  ;;  %826 = vmatpush.bf16.msra.mxu1 %v5307_v39 }
 0x161   :  { %792 = vmatpush.bf16.msrb.mxu0 %v5254_v9 }
 0x162   :  { %816 = vmatpush.bf16.msrb.mxu2 %v5251_v8  ;;  %827 = vmatpush.bf16.msra.mxu1 %v5316_v0 }
 0x165   :  { %850 = vmatpush.bf16.msra.mxu0 %v5256_v13 }
 0x166   :  { %817 = vmatpush.bf16.msrb.mxu2 %v5259_v14  ;;  %828 = vmatpush.bf16.msra.mxu1 %v5328_v40 }
 0x169   :  { %851 = vmatpush.bf16.msra.mxu0 %v5278_v43 }
 0x16a   :  { %818 = vmatpush.bf16.msrb.mxu2 %v5264_v22  ;;  %829 = vmatpush.bf16.msra.mxu1 %v5335_v3 }
 0x16d   :  { %852 = vmatpush.bf16.msra.mxu0 %v5290_v1 }
 0x16e   :  { %863 = vmatpush.bf16.msra.mxu2 %v5266_v24  ;;  %830 = vmatpush.bf16.msra.mxu1 %v5341_v35 }
 0x171   :  { %853 = vmatpush.bf16.msra.mxu0 %v5302_v28 }
 0x172   :  { %864 = vmatpush.bf16.msra.mxu2 %v5270_v27  ;;  %831 = vmatpush.bf16.msra.mxu1 %v5345_v46 }
 0x175   :  { %854 = vmatpush.bf16.msra.mxu0 %v5311_v49 }
 0x176   :  { %865 = vmatpush.bf16.msra.mxu2 %v5273_v31 }
 0x179   :  { %855 = vmatpush.bf16.msra.mxu0 %v5323_v26 }
 0x17a   :  { %866 = vmatpush.bf16.msra.mxu2 %v5280_v45 }
 0x17d   :  { %856 = vmatpush.bf16.msra.mxu0 %v5332_v50 }
 0x17e   :  { %867 = vmatpush.bf16.msra.mxu2 %v5293_v10 }
 0x181   :  { %857 = vmatpush.bf16.msra.mxu0 %v5339_v25 }
 0x182   :  { %868 = vmatpush.bf16.msra.mxu2 %v5305_v33 }
 0x186   :  { %869 = vmatpush.bf16.msra.mxu2 %v5314_v56 }
 0x18a   :  { %870 = vmatpush.bf16.msra.mxu2 %v5325_v30 }
 0x1c1   :  { %v5347_v23 = vpop.f32.mrf.mxu0 }
 0x1c2   :  { %v477_v4 = vpack.c.bf16 %v5347_v23, %v5347_v23 }
 0x1c4   :  { %780 = vmatmul.bf16.vlgmr.msra.gmra.mxu3 %v477_v4  ;;  %819 = vmatmul.bf16.vlgmr.msrb.gmra.mxu2 %v477_v4 }
 0x1c5   :  { %882 = vmatpush.bf16.msra.mxu3 %v5349_v16  ;;  %940 = vmatpush.bf16.msrb.mxu2 %v5207_v20 }
 0x1c9   :  { %v449_v36 = vpop.f32.mrf.mxu0  ;;  %v5358_v42 = vpop.f32.mrf.mxu1  ;;  %883 = vmatpush.bf16.msra.mxu3 %v5355_v19  ;;  %941 = vmatpush.bf16.msrb.mxu2 %v5215_v32 }
 0x1ca   :  { %v478_v58 = vpack.c.bf16 %v5358_v42, %v5358_v42 }
 0x1cc   :  { %793 = vmatmul.bf16.vlgmr.msrb.gmra.mxu0 %v478_v58 }
 0x1cd   :  { %942 = vmatpush.bf16.msrb.mxu2 %v5226_v41  ;;  %933 = vmatpush.bf16.msrb.mxu0 %v5234_v51 }
 0x1d0   :  { %v5366_v61 = vpop.f32.mrf.mxu2 }
 0x1d1   :  { %v479_v7 = vpack.c.bf16 %v5366_v61, %v5366_v61  ;;  %v462_v17 = vpop.f32.mrf.mxu1  ;;  %943 = vmatpush.bf16.msrb.mxu2 %v5237_v52  ;;  %934 = vmatpush.bf16.msrb.mxu0 %v5283_v53 }
 0x1d3   :  { %4432 = vmatmul.msk.bf16.vlgmr.msrb.gmra.mxu1 %vm6730_vm8, %v479_v7 }
 0x1d4   :  { %901 = vmatpush.bf16.msrb.mxu1 %v5181_v48  ;;  %4433 = vmatmul.msk.bf16.vlgmr.msrb.gmra.mxu3 %vm6730_vm8, %v479_v7 }
 0x1d5   :  { %871 = vmatmul.bf16.vlgmr.msra.gmra.mxu2 %v478_v58  ;;  %914 = vmatpush.bf16.msrb.mxu3 %v5190_v59 }
 0x1d6   :  { %944 = vmatpush.bf16.msrb.mxu2 %v5245_v60 }
 0x1d8   :  { %v475_v36 = vpop.f32.mrf.mxu2  ;;  %902 = vmatpush.bf16.msrb.mxu1 %v5186_v54 }
 0x1d9   :  { %915 = vmatpush.bf16.msrb.mxu3 %v5201_v5 }
 0x1da   :  { %945 = vmatpush.bf16.msrb.mxu2 %v5251_v8 }
 0x1dc   :  { %903 = vmatpush.bf16.msrb.mxu1 %v5194_v2  ;;  %858 = vmatmul.bf16.vlgmr.msra.gmra.mxu0 %v477_v4 }
 0x1dd   :  { %916 = vmatpush.bf16.msrb.mxu3 %v5210_v21  ;;  %953 = vmatpush.bf16.msra.mxu0 %v5287_v57 }
 0x1de   :  { %946 = vmatpush.bf16.msrb.mxu2 %v5259_v14 }
 0x1e0   :  { %904 = vmatpush.bf16.msrb.mxu1 %v5203_v12 }
 0x1e1   :  { %917 = vmatpush.bf16.msrb.mxu3 %v5218_v34  ;;  %954 = vmatpush.bf16.msra.mxu0 %v5295_v11 }
 0x1e2   :  { %947 = vmatpush.bf16.msrb.mxu2 %v5264_v22 }
 0x1e3   :  { %832 = vmatmul.bf16.vlgmr.msra.gmra.mxu1 %v478_v58 }
 0x1e4   :  { %905 = vmatpush.bf16.msrb.mxu1 %v5212_v29  ;;  %4434 = vmatmul.msk.bf16.vlgmr.msra.gmra.mxu3 %vm6730_vm8, %v479_v7 }
 0x1e5   :  { %918 = vmatpush.bf16.msrb.mxu3 %v5229_v44  ;;  %955 = vmatpush.bf16.msra.mxu0 %v5307_v39 }
 0x1e8   :  { %906 = vmatpush.bf16.msrb.mxu1 %v5221_v38 }
 0x1e9   :  { %919 = vmatpush.bf16.msrb.mxu3 %v5240_v55  ;;  %956 = vmatpush.bf16.msra.mxu0 %v5316_v0 }
 0x1ec   :  { %907 = vmatpush.bf16.msrb.mxu1 %v5232_v47 }
 0x1ed   :  { %920 = vmatpush.bf16.msrb.mxu3 %v5248_v62  ;;  %957 = vmatpush.bf16.msra.mxu0 %v5328_v40 }
 0x1f0   :  { %908 = vmatpush.bf16.msrb.mxu1 %v5276_v37 }
 0x1f1   :  { %921 = vmatpush.bf16.msrb.mxu3 %v5254_v9  ;;  %958 = vmatpush.bf16.msra.mxu0 %v5335_v3 }
 0x1f4   :  { %972 = vmatpush.bf16.msra.mxu1 %v5297_v18 }
 0x1f5   :  { %979 = vmatpush.bf16.msra.mxu3 %v5256_v13  ;;  %959 = vmatpush.bf16.msra.mxu0 %v5341_v35 }
 0x1f8   :  { %973 = vmatpush.bf16.msra.mxu1 %v5320_v15 }
 0x1f9   :  { %980 = vmatpush.bf16.msra.mxu3 %v5278_v43  ;;  %960 = vmatpush.bf16.msra.mxu0 %v5345_v46 }
 0x1fd   :  { %981 = vmatpush.bf16.msra.mxu3 %v5290_v1 }
 0x201   :  { %982 = vmatpush.bf16.msra.mxu3 %v5302_v28 }
 0x205   :  { %983 = vmatpush.bf16.msra.mxu3 %v5311_v49 }
 0x209   :  { %984 = vmatpush.bf16.msra.mxu3 %v5323_v26 }
 0x20d   :  { %985 = vmatpush.bf16.msra.mxu3 %v5332_v50 }
 0x211   :  { %986 = vmatpush.bf16.msra.mxu3 %v5339_v25 }
 0x247   :  { %v781_v4 = vpop.f32.mrf.mxu3  ;;  %v820_v58 = vpop.f32.mrf.mxu2 }
 0x249   :  { %v794_v7 = vpop.f32.mrf.mxu0 }
 0x24a   :  { %v795_v17 = vadd.f32 %v794_v7, %v781_v4 }
 0x24f   :  { %v783_v36 = vpop.f32.mrf.mxu3  ;;  %v822_v22 = vpop.f32.mrf.mxu2 }
 0x250   :  { %v807_v63 = vpop.f32.mrf.mxu1 }
 0x251   :  { %v808_v35 = vadd.f32 %v807_v63, %v795_v17  ;;  %v796_v3 = vpop.f32.mrf.mxu0 }
 0x253   :  { %v5414_v46 = vsub.f32 %v5347_v23, %v808_v35 }
 0x255   :  { %v892_v14 = vmul.f32 %v5414_v46, %v5414_v46 }
 0x257   :  { %v895_v15 = vpack.c.bf16 %v892_v14, %v892_v14  ;;  %v846_v8 = vpop.f32.mrf.mxu3 }
 0x258   :  { %v809_v40 = vpop.f32.mrf.mxu1  ;;  %v872_v18 = vpop.f32.mrf.mxu2 }
 0x259   :  { %909 = vmatmul.bf16.vlgmr.msrb.gmra.mxu1 %v895_v15  ;;  %948 = vmatmul.bf16.vlgmr.msrb.gmra.mxu2 %v895_v15  ;;  %v859_v0 = vpop.f32.mrf.mxu0 }
 0x25a   :  { %992 = vmatpush.bf16.msrb.mxu1 %v5266_v24  ;;  %v873_v40 = vadd.f32 %v872_v18, %v859_v0  ;;  %v5054_v18 = vmov 0  }
 0x25b   :  { %4892 = vset.pattern.permute.xlu1 %v5054_v18  ;;  %4893 = vset.pattern.permute.xlu0 %v5054_v18 }
 0x25c   :  { %4894 = vset.pattern.permute.xlu2 %v5054_v18 }
 0x25e   :  { %993 = vmatpush.bf16.msrb.mxu1 %v5270_v27 }
 0x25f   :  { %v848_v22 = vpop.f32.mrf.mxu3 }
 0x260   :  { %v833_v63 = vpop.f32.mrf.mxu1  ;;  %v874_v4 = vpop.f32.mrf.mxu2 }
 0x261   :  { %v834_v3 = vadd.f32 %v833_v63, %v820_v58  ;;  %v861_v23 = vpop.f32.mrf.mxu0 }
 0x262   :  { %994 = vmatpush.bf16.msrb.mxu1 %v5273_v31 }
 0x263   :  { %v847_v35 = vadd.f32 %v846_v8, %v834_v3  ;;  %v1076_v8 = vld [vmem:[%s6679_s4] sm:$0xf] }
 0x264   :  { %1079 = vperm.xlu1 %4892, %v1076_v8  }
 0x265   :  { %v5422_v14 = vsub.f32 %v5358_v42, %v847_v35 }
 0x266   :  { %995 = vmatpush.bf16.msrb.mxu1 %v5280_v45 }
 0x267   :  { %v893_v7 = vmul.f32 %v5422_v14, %v5422_v14  ;;  %v885_v36 = vpop.f32.mrf.mxu3 }
 0x268   :  { %v835_v17 = vpop.f32.mrf.mxu1  ;;  %v886_v24 = vadd.f32 %v885_v36, %v873_v40 }
 0x269   :  { %v896_v27 = vpack.c.bf16 %v893_v7, %v893_v7 }
 0x26a   :  { %996 = vmatpush.bf16.msrb.mxu1 %v5293_v10  ;;  %v5429_v58 = vsub.f32 %v5366_v61, %v886_v24 }
 0x26b   :  { %922 = vmatmul.bf16.vlgmr.msrb.gmra.mxu3 %v896_v27 }
 0x26c   :  { %1011 = vmatpush.bf16.msrb.mxu3 %v5349_v16  ;;  %v894_v0 = vmul.f32 %v5429_v58, %v5429_v58 }
 0x26e   :  { %997 = vmatpush.bf16.msrb.mxu1 %v5305_v33  ;;  %v897_v42 = vpack.c.bf16 %v894_v0, %v894_v0 }
 0x26f   :  { %v887_v24 = vpop.f32.mrf.mxu3 }
 0x270   :  { %1012 = vmatpush.bf16.msrb.mxu3 %v5355_v19  ;;  %4435 = vmatmul.msk.bf16.vlgmr.msrb.gmra.mxu0 %vm6730_vm8, %v897_v42 }
 0x271   :  { %4436 = vmatmul.msk.bf16.vlgmr.msra.gmra.mxu1 %vm6730_vm8, %v897_v42 }
 0x272   :  { %998 = vmatpush.bf16.msrb.mxu1 %v5314_v56 }
 0x276   :  { %999 = vmatpush.bf16.msrb.mxu1 %v5325_v30 }
 0x27a   :  { %1394 = vmatpush.bf16.msra.mxu1 %v5190_v59 }
 0x27b   :  { %987 = vmatmul.bf16.vlgmr.msra.gmra.mxu3 %v895_v15 }
 0x27e   :  { %1395 = vmatpush.bf16.msra.mxu1 %v5201_v5 }
 0x280   :  { %961 = vmatmul.bf16.vlgmr.msra.gmra.mxu0 %v896_v27 }
 0x281   :  { %1000 = vmatmul.bf16.vlgmr.msrb.gmra.mxu1 %v896_v27 }
 0x282   :  { %1396 = vmatpush.bf16.msra.mxu1 %v5210_v21 }
 0x286   :  { %1397 = vmatpush.bf16.msra.mxu1 %v5218_v34 }
 0x28a   :  { %1398 = vmatpush.bf16.msra.mxu1 %v5229_v44 }
 0x28b   :  { %4437 = vmatmul.msk.bf16.vlgmr.msrb.gmra.mxu3 %vm6730_vm8, %v897_v42 }
 0x28e   :  { %1399 = vmatpush.bf16.msra.mxu1 %v5240_v55 }
 0x292   :  { %1400 = vmatpush.bf16.msra.mxu1 %v5248_v62 }
 0x296   :  { %1401 = vmatpush.bf16.msra.mxu1 %v5254_v9 }
 0x29a   :  { %1459 = vmatpush.bf16.msrb.mxu1 %v5256_v13 }
 0x29e   :  { %1460 = vmatpush.bf16.msrb.mxu1 %v5278_v43 }
 0x2a2   :  { %1461 = vmatpush.bf16.msrb.mxu1 %v5290_v1 }
 0x2a6   :  { %1462 = vmatpush.bf16.msrb.mxu1 %v5302_v28 }
 0x2aa   :  { %1463 = vmatpush.bf16.msrb.mxu1 %v5311_v49 }
 0x2ae   :  { %1464 = vmatpush.bf16.msrb.mxu1 %v5323_v26 }
 0x2b2   :  { %1465 = vmatpush.bf16.msrb.mxu1 %v5332_v50 }
 0x2b6   :  { %1466 = vmatpush.bf16.msrb.mxu1 %v5339_v25 }
 0x2d6   :  { %v910_v27 = vpop.f32.mrf.mxu1 }
 0x2d7   :  { %v911_v22 = vadd.f32 1e-05, %v910_v27  ;;  %v5463_v27 = vld [vmem:[%s6677_s2] sm:$0x7] }
 0x2dc   :  { %v949_v15 = vpop.f32.mrf.mxu2 }
 0x2dd   :  { %v950_v42 = vadd.f32 1e-05, %v949_v15  ;;  %v1053_v15 = vperm.slane %v5463_v27, 0 }
 0x2de   :  { %v912_v61 = vpop.f32.mrf.mxu1 }
 0x2e4   :  { %v951_v63 = vpop.f32.mrf.mxu2 }
 0x2ed   :  { %v936_v4 = vpop.f32.mrf.mxu0 }
 0x2ee   :  { %v923_v3 = vpop.f32.mrf.mxu3  ;;  %v975_v35 = vpop.f32.mrf.mxu1 }
 0x2ef   :  { %v924_v23 = vadd.f32 %v923_v3, %v911_v22 }
 0x2f1   :  { %v937_v40 = vadd.f32 %v936_v4, %v924_v23  ;;  %v5465_v4 = vld [vmem:[#allocation7] sm:$0x7] }
 0x2f3   :  { %4895 = vrsqrt.f32 %v937_v40  ;;  %vm1024_vm0 = vweird.f32 %v937_v40 }
 0x2f5   :  { %v938_v17 = vpop.f32.mrf.mxu0 }
 0x2f6   :  { %v925_v7 = vpop.f32.mrf.mxu3  ;;  %v977_v36 = vpop.f32.mrf.mxu1 }
 0x2f7   :  { %v1064_v7 = vperm.slane %v5465_v4, 0 }
 0x2f9   :  { %v4896_v8 = vpop.eup %4895 }
 0x2fa   :  { %v1019_v18 = vmul.f32 %v4896_v8, %v937_v40  ;;  %vm1025_vm15 = vweird.f32 %v4896_v8 }
 0x2fb   :  { %vm1026_vm12 = vmor %vm1024_vm0, %vm1025_vm15 }
 0x2fc   :  { %v1020_v0 = vmul.f32 %v4896_v8, %v1019_v18 }
 0x2fd   :  { %v962_v25 = vpop.f32.mrf.mxu0 }
 0x2fe   :  { %v1021_v24 = vmul.f32 0.5, %v1020_v0  ;;  %v988_v50 = vpop.f32.mrf.mxu3  ;;  %v963_v26 = vadd.f32 %v962_v25, %v950_v42  ;;  %v1001_v61 = vpop.f32.mrf.mxu1 }
 0x2ff   :  { %v1080_v42 = vpop.permute.xlu1 %1079 }
 0x300   :  { %v1022_v63 = vsub.f32 1.5, %v1021_v24  ;;  %v976_v22 = vadd.f32 %v975_v35, %v963_v26  ;;  %v989_v26 = vadd.f32 1e-05, %v988_v50 }
 0x302   :  { %v1023_v3 = vmul.f32 %v4896_v8, %v1022_v63  ;;  %4897 = vrsqrt.f32 %v976_v22  ;;  %v1002_v28 = vadd.f32 %v1001_v61, %v989_v26  ;;  %vm1034_vm15 = vweird.f32 %v976_v22 }
 0x303   :  { %v1054_v61 = vperm.slane %v5463_v27, 1 }
 0x304   :  { %v1027_v23 = vsel %vm1026_vm12, %v4896_v8, %v1023_v3  ;;  %vm130_vm12 = vcmask 269316  }
 0x305   :  { %v1048_v25 = vmul.f32 %v1027_v23, %v5414_v46  ;;  %v964_v17 = vpop.f32.mrf.mxu0  ;;  %v5470_v23 = vld [vmem:[#allocation2 + $0x40] sm:$0xff] }
 0x306   :  { %v990_v36 = vpop.f32.mrf.mxu3  ;;  %v1003_v18 = vpop.f32.mrf.mxu1  ;;  %131 = vst.msk [vmem:[#allocation2 + $0x10] sm:$0xf0] %vm130_vm12, %v5470_v23 }
 0x307   :  { %v1059_v0 = vmul.f32 %v1053_v15, %v1048_v25  ;;  %150 = vst.msk [vmem:[#allocation2 + $0x28] sm:$0xf0] %vm149_vm14, %v5470_v23  ;;  %vm6735_vm14 = vcmask 1048348  }
 0x308   :  { %v4898_v24 = vpop.eup %4897  ;;  %161 = vst.msk [vmem:[#allocation2 + $0x30] sm:$0xf0] %vm160_vm9, %v5470_v23  ;;  %vm6797_vm9 = vcmask 678912  }
 0x309   :  { %v1070_v35 = vadd.f32 %v1064_v7, %v1059_v0  ;;  %v1029_v40 = vmul.f32 %v4898_v24, %v976_v22  ;;  %vm1035_vm0 = vweird.f32 %v4898_v24 }
 0x30a   :  { %vm1036_vm8 = vmor %vm1034_vm15, %vm1035_vm0 }
 0x30b   :  { %v1082_v63 = vmul.f32 %v1080_v42, %v1070_v35  ;;  %vm1073_vm3 = vcmp.gt.f32.partialorder %v1070_v35, 0.0  ;;  %v1030_v49 = vmul.f32 %v4898_v24, %v1029_v40 }
 0x30d   :  { %v1085_v1 = vsel %vm1073_vm3, %v1070_v35, %v1082_v63  ;;  %v1031_v43 = vmul.f32 0.5, %v1030_v49 }
 0x30e   :  { %v1014_v8 = vpop.f32.mrf.mxu3  ;;  %v1090_v3 = vrot.slane %v1085_v1, 4 }
 0x30f   :  { %v1015_v46 = vadd.f32 %v1014_v8, %v1002_v28  ;;  %v1032_v15 = vsub.f32 1.5, %v1031_v43  ;;  %v1065_v28 = vperm.slane %v5465_v4, 1 }
 0x310   :  { %1092 = vrot.lane.b32.xlu2 %v1090_v3, %s5055_s3  ;;  %v1066_v3 = vperm.slane %v5465_v4, 2 }
 0x311   :  { %4899 = vrsqrt.f32 %v1015_v46  ;;  %v1033_v50 = vmul.f32 %v4898_v24, %v1032_v15  ;;  %vm1044_vm0 = vweird.f32 %v1015_v46 }
 0x313   :  { %v1037_v49 = vsel %vm1036_vm8, %v4898_v24, %v1033_v50 }
 0x314   :  { %v1049_v1 = vmul.f32 %v1037_v49, %v5422_v14  ;;  %v1055_v14 = vperm.slane %v5463_v27, 2 }
 0x316   :  { %v1016_v25 = vpop.f32.mrf.mxu3  ;;  %v1060_v17 = vmul.f32 %v1054_v61, %v1049_v1 }
 0x317   :  { %v4900_v7 = vpop.eup %4899 }
 0x318   :  { %v1039_v36 = vmul.f32 %v4900_v7, %v1015_v46  ;;  %v1071_v43 = vadd.f32 %v1065_v28, %v1060_v17  ;;  %vm1045_vm12 = vweird.f32 %v4900_v7 }
 0x319   :  { %vm1046_vm8 = vmor %vm1044_vm0, %vm1045_vm12  ;;  %vm140_vm12 = vcmask 540044   ;;  %vm146_vm0 = vcmask 1048084  }
 0x31a   :  { %v1040_v18 = vmul.f32 %v4900_v7, %v1039_v36  ;;  %v1083_v0 = vmul.f32 %v1080_v42, %v1071_v43  ;;  %vm1074_vm3 = vcmp.gt.f32.partialorder %v1071_v43, 0.0  ;;  %141 = vst.msk [vmem:[#allocation2 + $0x18] sm:$0xf0] %vm140_vm12, %v5470_v23  ;;  %vm166_vm12 = vcmask 31744  }
 0x31b   :  { %147 = vst.msk [vmem:[#allocation2 + $0x18] sm:$0xf0] %vm146_vm0, %v5470_v23  ;;  %vm1135_vm0 = vcmask 130052  }
 0x31c   :  { %v1041_v26 = vmul.f32 0.5, %v1040_v18  ;;  %v1086_v35 = vsel %vm1074_vm3, %v1071_v43, %v1083_v0  ;;  %vm6733_vm3 = vcmask 1047820  }
 0x31d   :  { %v1091_v22 = vrot.slane %v1086_v35, 4 }
 0x31e   :  { %v1042_v40 = vsub.f32 1.5, %v1041_v26 }
 0x31f   :  { %1105 = vrot.lane.b32.xlu1 %v1091_v22, %s5056_s11  ;;  %1094 = vrot.lane.b32.xlu0 %v1091_v22, %s5055_s3 }
 0x320   :  { %v1043_v63 = vmul.f32 %v4900_v7, %v1042_v40  ;;  %v4485_v40 = vld [vmem:[%s6679_s4 + $0x4] sm:$0xf] }
 0x322   :  { %v1047_v24 = vsel %vm1046_vm8, %v4900_v7, %v1043_v63  ;;  %vm134_vm8 = vcmask 269312  }
 0x323   :  { %v1050_v8 = vmul.f32 %v1047_v24, %v5429_v58  ;;  %v1156_v58 = vld [vmem:[#allocation2 + $0x8] sm:$0xff]  ;;  %135 = vst.msk [vmem:[#allocation2 + $0x50] sm:$0xff] %vm134_vm8, %v5470_v23 }
 0x325   :  { %v1061_v15 = vmul.f32 %v1055_v14, %v1050_v8 }
 0x327   :  { %v1072_v50 = vadd.f32 %v1066_v3, %v1061_v15 }
 0x329   :  { %vm1075_vm15 = vcmp.gt.f32.partialorder %v1072_v50, 0.0  ;;  %v1084_v61 = vmul.f32 %v1080_v42, %v1072_v50 }
 0x32b   :  { %v1087_v49 = vsel %vm1075_vm15, %v1072_v50, %v1084_v61  ;;  %vm6734_vm15 = vcmask 941060  }
 0x32c   :  { %v1104_v1 = vrot.slane %v1087_v49, 4 }
 0x32e   :  { %1107 = vrot.lane.b32.xlu2 %v1104_v1, %s5056_s11 }
 0x36a   :  { %v1093_v46 = vpop.permute.xlu2 %1092 }
 0x36b   :  { %1100 = vst.msk [vmem:[#allocation2 + $0x10] sm:$0xf0] %vm6733_vm3, %v1093_v46  ;;  %vm6736_vm3 = vcmask 400388  }
 0x372   :  { %v1157_v27 = vld [vmem:[#allocation2 + $0x10] sm:$0xff] }
 0x373   :  { %v1159_v4 = vpack.c.bf16 %v1157_v27, %v1156_v58 }
 0x375   :  { %1163 = vrot.lane.b32.xlu2 %v1159_v4, %s5057_s12  ;;  %1145 = vrot.lane.b32.xlu0 %v1159_v4, %s5033_s30 }
 0x376   :  { %1124 = vrot.lane.b32.xlu1 %v1159_v4, %s5058_s13 }
 0x388   :  { %v1108_v42 = vpop.permute.xlu2 %1107 }
 0x391   :  { %v1106_v28 = vpop.permute.xlu1 %1105  ;;  %v1095_v25 = vpop.permute.xlu0 %1094 }
 0x392   :  { %v1110_v7 = vsel %vm6797_vm9, %v1106_v28, %v1108_v42  ;;  %1114 = vst.msk [vmem:[#allocation2 + $0x28] sm:$0xf0] %vm6735_vm14, %v1106_v28  ;;  %v1096_v17 = vsel %vm134_vm8, %v1093_v46, %v1095_v25  ;;  %vm1214_vm14 = vcmask 1043584  }
 0x393   :  { %1116 = vst.msk [vmem:[#allocation2 + $0x30] sm:$0xf0] %vm6734_vm15, %v1110_v7  ;;  %vm5525_vm15 = vmor %vm1135_vm0, %vm6762_vm7 }
 0x394   :  { %1102 = vst.msk [vmem:[#allocation2 + $0x18] sm:$0xf0] %vm6736_vm3, %v1096_v17  ;;  %vm1215_vm3 = vcmask 261124  }
 0x395   :  { %vm5533_vm0 = vmor %vm1215_vm3, %vm1214_vm14  ;;  %vm1170_vm3 = vcmask 15360   ;;  %vm1236_vm14 = vcmask 654336  }
 0x399   :  { %v1250_v0 = vld [vmem:[#allocation2 + $0x28] sm:$0xff] }
 0x39a   :  { %v1251_v26 = vld [vmem:[#allocation2 + $0x30] sm:$0xff] }
 0x39b   :  { %v1195_v36 = vld [vmem:[#allocation2 + $0x18] sm:$0xff]  ;;  %v5502_v35 = vpack.c.bf16 %v1251_v26, %v1250_v0 }
 0x39c   :  { %v5496_v43 = vpack.c.bf16 %v1195_v36, %v1157_v27  ;;  %v1121_v18 = vpack.c.bf16 %v1195_v36, %v1195_v36 }
 0x39e   :  { %1198 = vrot.lane.b32.xlu1 %v5496_v43, %s5047_s21  ;;  %1188 = vrot.lane.b32.xlu0 %v5496_v43, %s5042_s16  ;;  %v5520_v22 = vrot.slane %v5496_v43, 6 }
 0x39f   :  { %1126 = vrot.lane.b32.xlu2 %v1121_v18, %s5058_s13 }
 0x3a6   :  { %1178 = vrot.lane.b32.xlu1 %v5496_v43, %s5050_s24  ;;  %1165 = vrot.lane.b32.xlu0 %v1121_v18, %s5057_s12 }
 0x3a7   :  { %1254 = vrot.lane.b32.xlu2 %v5502_v35, %s5045_s19 }
 0x3ae   :  { %1147 = vrot.lane.b32.xlu1 %v1121_v18, %s5033_s30  ;;  %1264 = vrot.lane.b32.xlu0 %v5502_v35, %s5046_s20  ;;  %s5069_s30 = smov 60  }
 0x3af   :  { %1233 = vrot.lane.b32.xlu2 %v5502_v35, %s5059_s14  ;;  %s4187_s14 = sshll.u32 %s6681_s6, 4  ;;  %s4188_s14 = int_to_ptr.hbm [resolvable:$true] %s4187_s14 }
 0x3b6   :  { %1244 = vrot.lane.b32.xlu0 %v5502_v35, %s5053_s27  ;;  %1208 = vrot.lane.b32.xlu1 %v5502_v35, %s5060_s0  ;;  %s5078_s0 = smov 128  }
 0x3b7   :  { %1222 = vrot.lane.b32.xlu2 %v5502_v35, %s5061_s15  ;;  %s5079_s15 = smov 8  }
 0x3be   :  { %1691 = vperm.xlu0 %4893, %v4485_v40  }
 0x3c6   :  { %1807 = vrot.lane.b32.xlu0 %v5520_v22, %s5050_s24 }
 0x3cf   :  { %v1164_v63 = vpop.permute.xlu2 %1163 }
 0x3d0   :  { %v1167_v18 = vrot.slane %v1164_v63, 4 }
 0x3e7   :  { %v1146_v49 = vpop.permute.xlu0 %1145 }
 0x3e8   :  { %v1125_v14 = vpop.permute.xlu1 %1124 }
 0x3e9   :  { %v1128_v8 = vrot.slane %v1125_v14, 4 }
 0x3f9   :  { %v1127_v24 = vpop.permute.xlu2 %1126 }
 0x3fa   :  { %v1129_v3 = vrot.slane %v1127_v24, 4 }
 0x3fc   :  { %v1131_v50 = vsel %vm6762_vm7, %v1128_v8, %v1129_v3 }
 0x3fd   :  { %v1133_v61 = vsel %vm166_vm12, %v1125_v14, %v1131_v50  ;;  %vm1152_vm12 = vcmask 23552  }
 0x3fe   :  { %1137 = vst.msk [vmem:[#allocation3] sm:$0xff] %vm5525_vm15, %v1133_v61 }
 0x401   :  { %v1255_v1 = vpop.permute.xlu2 %1254 }
 0x402   :  { %v1256_v27 = vrot.slane %v1255_v1, 4 }
 0x404   :  { %v1257_v36 = vsel %vm6737_vm4, %v1255_v1, %v1256_v27  ;;  %vm1225_vm4 = vcmask 662528  }
 0x409   :  { %v1234_v17 = vpop.permute.xlu2 %1233 }
 0x40a   :  { %v1235_v40 = vrot.slane %v1234_v17, 4 }
 0x410   :  { %v1199_v46 = vpop.permute.xlu1 %1198  ;;  %v1189_v58 = vpop.permute.xlu0 %1188 }
 0x411   :  { %v1200_v4 = vrot.slane %v1199_v46, 4  ;;  %v1190_v42 = vrot.slane %v1189_v58, 4  ;;  %v1223_v27 = vpop.permute.xlu2 %1222 }
 0x413   :  { %v1201_v28 = vsel %vm314_vm10, %v1199_v46, %v1200_v4  ;;  %v1191_v7 = vsel %vm6770_vm5, %v1189_v58, %v1190_v42  ;;  %v1237_v46 = vsel %vm1236_vm14, %v1234_v17, %v1235_v40  ;;  %v1149_v4 = vrot.slane %v1146_v49, 4 }
 0x414   :  { %1203 = vst.msk [vmem:[#allocation3 + $0x3c] sm:$0xff] %vm5525_vm15, %v1201_v28  ;;  %vm1211_vm14 = vcmask 670720  }
 0x415   :  { %1193 = vst.msk [vmem:[#allocation3 + $0x30] sm:$0xff] %vm5525_vm15, %v1191_v7  ;;  %v1224_v7 = vrot.slane %v1223_v27, 4 }
 0x416   :  { %1259 = vst.msk [vmem:[#allocation3 + $0x34] sm:$0xff] %vm5533_vm0, %v1257_v36 }
 0x418   :  { %v1179_v0 = vpop.permute.xlu1 %1178  ;;  %v1166_v26 = vpop.permute.xlu0 %1165 }
 0x419   :  { %v1180_v14 = vrot.slane %v1179_v0, 4  ;;  %v1168_v24 = vrot.slane %v1166_v26, 4 }
 0x41b   :  { %v1181_v8 = vsel %vm6765_vm13, %v1179_v0, %v1180_v14  ;;  %v1169_v3 = vsel %vm6762_vm7, %v1167_v18, %v1168_v24  ;;  %v4790_v50 = vld [vmem:[#allocation3 + $0x38] sm:$0xf0]  ;;  %v1226_v14 = vsel %vm1225_vm4, %v1223_v27, %v1224_v7  ;;  %v4441_v7 = vld [vmem:[#allocation3] sm:$0xf]  ;;  %vm1332_vm4 = vcmask 392192  }
 0x41c   :  { %1183 = vst.msk [vmem:[#allocation3 + $0x24] sm:$0xff] %vm5525_vm15, %v1181_v8  ;;  %v1171_v61 = vsel %vm1170_vm3, %v1164_v63, %v1169_v3  ;;  %v4465_v1 = vld [vmem:[#allocation3 + $0x30] sm:$0xf]  ;;  %vm6873_vm3 = vcmask 359424  }
 0x41d   :  { %1173 = vst.msk [vmem:[#allocation3 + $0x18] sm:$0xff] %vm5525_vm15, %v1171_v61  ;;  %v4466_v58 = vor.u32 %v4790_v50, %v4465_v1  ;;  %v4789_v1 = vld [vmem:[#allocation3 + $0x34] sm:$0xf] }
 0x41e   :  { %1239 = vst.msk [vmem:[#allocation3 + $0x1c] sm:$0xff] %vm5533_vm0, %v1237_v46 }
 0x41f   :  { %1341 = vmatpush.bf16.msrb.mxu0 %v4466_v58 }
 0x420   :  { %v1148_v42 = vpop.permute.xlu1 %1147  ;;  %v1265_v28 = vpop.permute.xlu0 %1264 }
 0x421   :  { %v1150_v36 = vrot.slane %v1148_v42, 4  ;;  %v1266_v18 = vrot.slane %v1265_v28, 4 }
 0x423   :  { %v1151_v63 = vsel %vm6762_vm7, %v1149_v4, %v1150_v36  ;;  %v1267_v17 = vsel %vm6873_vm3, %v1265_v28, %v1266_v18  ;;  %v4787_v0 = vld [vmem:[#allocation3 + $0x20] sm:$0xf0]  ;;  %v4473_v4 = vld [vmem:[#allocation3 + $0x38] sm:$0xf]  ;;  %vm6887_vm3 = vcmask 261120  }
 0x424   :  { %v1153_v26 = vsel %vm1152_vm12, %v1146_v49, %v1151_v63  ;;  %1269 = vst.msk [vmem:[#allocation3 + $0x40] sm:$0xff] %vm5533_vm0, %v1267_v17  ;;  %v4453_v40 = vld [vmem:[#allocation3 + $0x18] sm:$0xf]  ;;  %vm6874_vm12 = vcmask 375808  }
 0x425   :  { %1155 = vst.msk [vmem:[#allocation3 + $0xc] sm:$0xff] %vm5525_vm15, %v1153_v26  ;;  %v4454_v24 = vor.u32 %v4787_v0, %v4453_v40  ;;  %v4438_v63 = vld [vmem:[%s6676_s1 + $0x2] sm:$0x3]  ;;  %v4786_v0 = vld [vmem:[#allocation3 + $0x1c] sm:$0xf] }
 0x426   :  { %1228 = vst.msk [vmem:[#allocation3 + $0x10] sm:$0xff] %vm5533_vm0, %v1226_v14  ;;  %v4461_v40 = vld [vmem:[#allocation3 + $0x20] sm:$0xf] }
 0x427   :  { %1342 = vmatpush.bf16.msrb.mxu0 %v4454_v24 }
 0x428   :  { %v1245_v8 = vpop.permute.xlu0 %1244  ;;  %v1209_v3 = vpop.permute.xlu1 %1208 }
 0x429   :  { %v1246_v50 = vrot.slane %v1245_v8, 4  ;;  %v1210_v61 = vrot.slane %v1209_v3, 4 }
 0x42b   :  { %v1247_v49 = vsel %vm6874_vm12, %v1245_v8, %v1246_v50  ;;  %v1212_v46 = vsel %vm1211_vm14, %v1209_v3, %v1210_v61  ;;  %v4467_v58 = vld [vmem:[#allocation3 + $0x3c] sm:$0xf0]  ;;  %v4791_v27 = vld [vmem:[#allocation3 + $0x40] sm:$0xf0]  ;;  %vm6888_vm14 = vmmov %vm6887_vm3 }
 0x42c   :  { %1249 = vst.msk [vmem:[#allocation3 + $0x28] sm:$0xff] %vm5533_vm0, %v1247_v49  ;;  %v4470_v42 = vor.u32 %v4789_v1, %v4467_v58  ;;  %v4474_v28 = vor.u32 %v4791_v27, %v4473_v4  ;;  %v4784_v36 = vld [vmem:[#allocation3 + $0x8] sm:$0xf0]  ;;  %vm6889_vm12 = vmmov %vm6887_vm3 }
 0x42d   :  { %1217 = vst.msk [vmem:[#allocation3 + $0x4] sm:$0xff] %vm5533_vm0, %v1212_v46  ;;  %v4442_v18 = vor.u32 %v4784_v36, %v4441_v7  ;;  %v4443_v61 = vld [vmem:[#allocation3 + $0xc] sm:$0xf0]  ;;  %v4785_v1 = vld [vmem:[#allocation3 + $0x10] sm:$0xf0] }
 0x42e   :  { %1354 = vmatpush.bf16.msra.mxu2 %v4470_v42  ;;  %1367 = vmatpush.bf16.msra.mxu3 %v4474_v28  ;;  %v6875_v42 = vld [vmem:[#allocation40_spill] sm:$0xff]  ;;  %v6876_v28 = vld [vmem:[#allocation37_spill] sm:$0xff]  ;;  %v6877_v7 = vld [vmem:[#allocation27_spill] sm:$0xff] }
 0x42f   :  { %1343 = vmatpush.bf16.msrb.mxu0 %v4442_v18  ;;  %v6878_v36 = vld [vmem:[#allocation44_spill] sm:$0xff]  ;;  %v6879_v18 = vld [vmem:[#allocation41_spill] sm:$0xff] }
 0x430   :  { %v5569_v17 = vpop.permute.xlu0 %1691 }
 0x432   :  { %4475 = vmatmul.msk.bf16.vlgmr.msrb.gmra.mxu0 %vm1332_vm4, %v4438_v63 }
 0x433   :  { %1381 = vmatpush.bf16.msra.mxu0 %v5181_v48  ;;  %v4455_v26 = vld [vmem:[#allocation3 + $0x24] sm:$0xf0]  ;;  %v4788_v14 = vld [vmem:[#allocation3 + $0x28] sm:$0xf0] }
 0x434   :  { %v4458_v24 = vor.u32 %v4786_v0, %v4455_v26  ;;  %v4462_v8 = vor.u32 %v4788_v14, %v4461_v40  ;;  %v4783_v3 = vld [vmem:[#allocation3 + $0x4] sm:$0xf]  ;;  %v4449_v50 = vld [vmem:[#allocation3 + $0x8] sm:$0xf]  ;;  %v6882_v26 = vld [vmem:[#allocation31_spill] sm:$0xff] }
 0x435   :  { %v4446_v46 = vor.u32 %v4783_v3, %v4443_v61  ;;  %v4450_v58 = vor.u32 %v4785_v1, %v4449_v50  ;;  %v6881_v0 = vld [vmem:[#allocation46_spill] sm:$0xff]  ;;  %v6883_v40 = vld [vmem:[#allocation32_spill] sm:$0xff] }
 0x436   :  { %1355 = vmatpush.bf16.msra.mxu2 %v4458_v24  ;;  %1368 = vmatpush.bf16.msra.mxu3 %v4462_v8  ;;  %v6884_v14 = vld [vmem:[#allocation48_spill] sm:$0xff]  ;;  %v6885_v24 = vld [vmem:[#allocation33_spill] sm:$0xff] }
 0x437   :  { %1382 = vmatpush.bf16.msra.mxu0 %v5186_v54  ;;  %v6886_v8 = vld [vmem:[#allocation49_spill] sm:$0xff] }
 0x438   :  { %v1808_v49 = vpop.permute.xlu0 %1807 }
 0x439   :  { %v1811_v4 = vrot.slane %v1808_v49, 4 }
 0x43a   :  { %1356 = vmatpush.bf16.msra.mxu2 %v4446_v46  ;;  %1369 = vmatpush.bf16.msra.mxu3 %v4450_v58 }
 0x43b   :  { %1383 = vmatpush.bf16.msra.mxu0 %v5194_v2  ;;  %v1813_v27 = vsel %vm6765_vm13, %v1808_v49, %v1811_v4 }
 0x43c   :  { %1817 = vst.msk [vmem:[#allocation3 + $0x30] sm:$0xcc] %vm5144_vm11, %v1813_v27 }
 0x43d   :  { %4476 = vmatmul.msk.bf16.vlgmr.msra.gmra.mxu2 %vm1332_vm4, %v4438_v63  ;;  %4477 = vmatmul.msk.bf16.vlgmr.msra.gmra.mxu3 %vm1332_vm4, %v4438_v63  ;;  %v6880_v63 = vld [vmem:[#allocation30_spill] sm:$0xff]  ;;  %vm6897_vm4 = vmmov %vm6887_vm3 }
 0x43e   :  { %1420 = vmatpush.bf16.msrb.mxu3 %v5207_v20  ;;  %1413 = vmatpush.bf16.msrb.mxu2 %v5234_v51 }
 0x43f   :  { %1384 = vmatpush.bf16.msra.mxu0 %v5203_v12 }
 0x442   :  { %1421 = vmatpush.bf16.msrb.mxu3 %v5215_v32  ;;  %1414 = vmatpush.bf16.msrb.mxu2 %v5283_v53 }
 0x443   :  { %1385 = vmatpush.bf16.msra.mxu0 %v5212_v29 }
 0x446   :  { %1433 = vmatpush.bf16.msra.mxu2 %v5287_v57  ;;  %1422 = vmatpush.bf16.msrb.mxu3 %v5226_v41 }
 0x447   :  { %1386 = vmatpush.bf16.msra.mxu0 %v5221_v38 }
 0x44a   :  { %1434 = vmatpush.bf16.msra.mxu2 %v5295_v11  ;;  %1423 = vmatpush.bf16.msrb.mxu3 %v5237_v52 }
 0x44b   :  { %1387 = vmatpush.bf16.msra.mxu0 %v5232_v47 }
 0x44e   :  { %1435 = vmatpush.bf16.msra.mxu2 %v5307_v39  ;;  %1424 = vmatpush.bf16.msrb.mxu3 %v5245_v60 }
 0x44f   :  { %1388 = vmatpush.bf16.msra.mxu0 %v5276_v37 }
 0x452   :  { %1436 = vmatpush.bf16.msra.mxu2 %v6875_v42  ;;  %1425 = vmatpush.bf16.msrb.mxu3 %v6877_v7 }
 0x453   :  { %1452 = vmatpush.bf16.msrb.mxu0 %v6876_v28 }
 0x456   :  { %1437 = vmatpush.bf16.msra.mxu2 %v6878_v36  ;;  %1426 = vmatpush.bf16.msrb.mxu3 %v6880_v63 }
 0x457   :  { %1453 = vmatpush.bf16.msrb.mxu0 %v6879_v18 }
 0x45a   :  { %1438 = vmatpush.bf16.msra.mxu2 %v6881_v0  ;;  %1427 = vmatpush.bf16.msrb.mxu3 %v6882_v26 }
 0x45e   :  { %1472 = vmatpush.bf16.msra.mxu3 %v6883_v40  ;;  %1439 = vmatpush.bf16.msra.mxu2 %v6884_v14 }
 0x462   :  { %1473 = vmatpush.bf16.msra.mxu3 %v6885_v24  ;;  %1440 = vmatpush.bf16.msra.mxu2 %v6886_v8 }
 0x466   :  { %1474 = vmatpush.bf16.msra.mxu3 %v5273_v31 }
 0x46a   :  { %1475 = vmatpush.bf16.msra.mxu3 %v5280_v45 }
 0x46e   :  { %1476 = vmatpush.bf16.msra.mxu3 %v5293_v10 }
 0x472   :  { %1477 = vmatpush.bf16.msra.mxu3 %v5305_v33 }
 0x476   :  { %1478 = vmatpush.bf16.msra.mxu3 %v5314_v56 }
 0x47a   :  { %1479 = vmatpush.bf16.msra.mxu3 %v5325_v30 }
 0x4af   :  { %v5613_v3 = vpop.f32.mrf.mxu0 }
 0x4b0   :  { %v1375_v50 = vpack.c.bf16 %v5613_v3, %v5613_v3 }
 0x4b2   :  { %1389 = vmatmul.bf16.vlgmr.msra.gmra.mxu0 %v1375_v50  ;;  %1428 = vmatmul.bf16.vlgmr.msrb.gmra.mxu3 %v1375_v50 }
 0x4b3   :  { %1491 = vmatpush.bf16.msra.mxu0 %v5349_v16  ;;  %1549 = vmatpush.bf16.msrb.mxu3 %v5207_v20 }
 0x4b7   :  { %v1347_v61 = vpop.f32.mrf.mxu0  ;;  %1492 = vmatpush.bf16.msra.mxu0 %v5355_v19  ;;  %1550 = vmatpush.bf16.msrb.mxu3 %v5215_v32 }
 0x4b8   :  { %v6891_v61 = vld [vmem:[#allocation36_spill] sm:$0xff] }
 0x4bb   :  { %1551 = vmatpush.bf16.msrb.mxu3 %v5226_v41 }
 0x4bf   :  { %1552 = vmatpush.bf16.msrb.mxu3 %v5237_v52 }
 0x4c0   :  { %v5623_v1 = vpop.f32.mrf.mxu2  ;;  %v5625_v49 = vpop.f32.mrf.mxu3 }
 0x4c1   :  { %v1376_v46 = vpack.c.bf16 %v5623_v1, %v5623_v1  ;;  %v1377_v58 = vpack.c.bf16 %v5625_v49, %v5625_v49 }
 0x4c3   :  { %1402 = vmatmul.bf16.vlgmr.msra.gmra.mxu1 %v1376_v46  ;;  %4478 = vmatmul.msk.bf16.vlgmr.msrb.gmra.mxu2 %vm6887_vm3, %v1377_v58 }
 0x4c4   :  { %4479 = vmatmul.msk.bf16.vlgmr.msrb.gmra.mxu0 %vm6888_vm14, %v1377_v58  ;;  %1480 = vmatmul.bf16.vlgmr.msra.gmra.mxu3 %v1376_v46  ;;  %vm6898_vm14 = vmmov %vm6887_vm3 }
 0x4c5   :  { %1510 = vmatpush.bf16.msrb.mxu2 %v5181_v48  ;;  %1523 = vmatpush.bf16.msrb.mxu0 %v5190_v59 }
 0x4c6   :  { %1553 = vmatpush.bf16.msrb.mxu3 %v5245_v60  ;;  %1542 = vmatpush.bf16.msra.mxu1 %v5234_v51 }
 0x4c8   :  { %v1360_v4 = vpop.f32.mrf.mxu2  ;;  %v1373_v27 = vpop.f32.mrf.mxu3 }
 0x4c9   :  { %1511 = vmatpush.bf16.msrb.mxu2 %v5186_v54  ;;  %1524 = vmatpush.bf16.msrb.mxu0 %v5201_v5  ;;  %v6894_v4 = vld [vmem:[#allocation42_spill] sm:$0xff]  ;;  %v6895_v27 = vld [vmem:[#allocation45_spill] sm:$0xff] }
 0x4ca   :  { %1554 = vmatpush.bf16.msrb.mxu3 %v6877_v7  ;;  %1543 = vmatpush.bf16.msra.mxu1 %v5283_v53 }
 0x4cd   :  { %1512 = vmatpush.bf16.msrb.mxu2 %v5194_v2  ;;  %1525 = vmatpush.bf16.msrb.mxu0 %v5210_v21 }
 0x4ce   :  { %1555 = vmatpush.bf16.msrb.mxu3 %v6880_v63 }
 0x4d1   :  { %1513 = vmatpush.bf16.msrb.mxu2 %v5203_v12  ;;  %1526 = vmatpush.bf16.msrb.mxu0 %v5218_v34 }
 0x4d2   :  { %1556 = vmatpush.bf16.msrb.mxu3 %v6882_v26 }
 0x4d3   :  { %1441 = vmatmul.bf16.vlgmr.msra.gmra.mxu2 %v1376_v46  ;;  %1467 = vmatmul.bf16.vlgmr.msrb.gmra.mxu1 %v1375_v50  ;;  %v6890_v50 = vld [vmem:[#allocation35_spill] sm:$0xff]  ;;  %v6892_v46 = vld [vmem:[#allocation38_spill] sm:$0xff] }
 0x4d4   :  { %4480 = vmatmul.msk.bf16.vlgmr.msra.gmra.mxu0 %vm6889_vm12, %v1377_v58  ;;  %1562 = vmatpush.bf16.msrb.mxu1 %v5287_v57  ;;  %v6893_v58 = vld [vmem:[#allocation39_spill] sm:$0xff] }
 0x4d5   :  { %1514 = vmatpush.bf16.msrb.mxu2 %v5212_v29  ;;  %1527 = vmatpush.bf16.msrb.mxu0 %v5229_v44 }
 0x4d6   :  { %1620 = vmatpush.bf16.msra.mxu3 %v5349_v16 }
 0x4d8   :  { %1563 = vmatpush.bf16.msrb.mxu1 %v5295_v11 }
 0x4d9   :  { %1515 = vmatpush.bf16.msrb.mxu2 %v5221_v38  ;;  %1528 = vmatpush.bf16.msrb.mxu0 %v5240_v55 }
 0x4da   :  { %1621 = vmatpush.bf16.msra.mxu3 %v5355_v19  ;;  %v6896_v19 = vld [vmem:[#allocation47_spill] sm:$0xff] }
 0x4dc   :  { %1564 = vmatpush.bf16.msrb.mxu1 %v5307_v39 }
 0x4dd   :  { %1516 = vmatpush.bf16.msrb.mxu2 %v5232_v47  ;;  %1529 = vmatpush.bf16.msrb.mxu0 %v5248_v62 }
 0x4e0   :  { %1565 = vmatpush.bf16.msrb.mxu1 %v6875_v42 }
 0x4e1   :  { %1517 = vmatpush.bf16.msrb.mxu2 %v5276_v37  ;;  %1530 = vmatpush.bf16.msrb.mxu0 %v5254_v9 }
 0x4e4   :  { %1566 = vmatpush.bf16.msrb.mxu1 %v6878_v36 }
 0x4e5   :  { %1581 = vmatpush.bf16.msra.mxu2 %v6876_v28  ;;  %1588 = vmatpush.bf16.msra.mxu0 %v5256_v13 }
 0x4e8   :  { %1567 = vmatpush.bf16.msrb.mxu1 %v6881_v0 }
 0x4e9   :  { %1582 = vmatpush.bf16.msra.mxu2 %v6879_v18  ;;  %1589 = vmatpush.bf16.msra.mxu0 %v6890_v50 }
 0x4ec   :  { %1568 = vmatpush.bf16.msrb.mxu1 %v6884_v14 }
 0x4ed   :  { %1590 = vmatpush.bf16.msra.mxu0 %v6891_v61 }
 0x4f0   :  { %1569 = vmatpush.bf16.msrb.mxu1 %v6886_v8 }
 0x4f1   :  { %1591 = vmatpush.bf16.msra.mxu0 %v6892_v46 }
 0x4f5   :  { %1592 = vmatpush.bf16.msra.mxu0 %v6893_v58 }
 0x4f9   :  { %1593 = vmatpush.bf16.msra.mxu0 %v6894_v4 }
 0x4fd   :  { %1594 = vmatpush.bf16.msra.mxu0 %v6895_v27 }
 0x501   :  { %1595 = vmatpush.bf16.msra.mxu0 %v6896_v19 }
 0x52f   :  { %v1390_v16 = vpop.f32.mrf.mxu0 }
 0x535   :  { %v1429_v26 = vpop.f32.mrf.mxu3 }
 0x537   :  { %v1392_v63 = vpop.f32.mrf.mxu0 }
 0x53d   :  { %v1431_v0 = vpop.f32.mrf.mxu3 }
 0x540   :  { %v1403_v36 = vpop.f32.mrf.mxu1 }
 0x541   :  { %v1455_v7 = vpop.f32.mrf.mxu0  ;;  %v1404_v61 = vadd.f32 %v1403_v36, %v1390_v16 }
 0x546   :  { %v1416_v14 = vpop.f32.mrf.mxu2 }
 0x547   :  { %v1417_v42 = vadd.f32 %v1416_v14, %v1404_v61  ;;  %v1481_v46 = vpop.f32.mrf.mxu3 }
 0x548   :  { %v1405_v60 = vpop.f32.mrf.mxu1 }
 0x549   :  { %v5677_v8 = vsub.f32 %v5613_v3, %v1417_v42  ;;  %v1457_v58 = vpop.f32.mrf.mxu0 }
 0x54b   :  { %v1501_v27 = vmul.f32 %v5677_v8, %v5677_v8 }
 0x54d   :  { %v1504_v4 = vpack.c.bf16 %v1501_v27, %v1501_v27 }
 0x54e   :  { %v1418_v19 = vpop.f32.mrf.mxu2 }
 0x54f   :  { %v1483_v50 = vpop.f32.mrf.mxu3  ;;  %1518 = vmatmul.bf16.vlgmr.msrb.gmra.mxu2 %v1504_v4  ;;  %1557 = vmatmul.bf16.vlgmr.msrb.gmra.mxu3 %v1504_v4 }
 0x550   :  { %v1468_v63 = vpop.f32.mrf.mxu1  ;;  %1601 = vmatpush.bf16.msrb.mxu2 %v6883_v40 }
 0x551   :  { %v1482_v16 = vadd.f32 %v1481_v46, %v1468_v63  ;;  %v1494_v36 = vpop.f32.mrf.mxu0 }
 0x553   :  { %v1495_v0 = vadd.f32 %v1494_v36, %v1482_v16 }
 0x554   :  { %1602 = vmatpush.bf16.msrb.mxu2 %v6885_v24 }
 0x555   :  { %v5684_v60 = vsub.f32 %v5625_v49, %v1495_v0 }
 0x556   :  { %v1442_v42 = vpop.f32.mrf.mxu2 }
 0x557   :  { %v1503_v14 = vmul.f32 %v5684_v60, %v5684_v60  ;;  %v1443_v3 = vadd.f32 %v1442_v42, %v1429_v26 }
 0x558   :  { %v1470_v19 = vpop.f32.mrf.mxu1  ;;  %1603 = vmatpush.bf16.msrb.mxu2 %v5273_v31 }
 0x559   :  { %v1506_v50 = vpack.c.bf16 %v1503_v14, %v1503_v14  ;;  %v1456_v61 = vadd.f32 %v1455_v7, %v1443_v3  ;;  %v1496_v58 = vpop.f32.mrf.mxu0 }
 0x55b   :  { %v5690_v46 = vsub.f32 %v5623_v1, %v1456_v61  ;;  %4481 = vmatmul.msk.bf16.vlgmr.msra.gmra.mxu1 %vm6897_vm4, %v1506_v50 }
 0x55c   :  { %1604 = vmatpush.bf16.msrb.mxu2 %v5280_v45 }
 0x55d   :  { %v1502_v49 = vmul.f32 %v5690_v46, %v5690_v46 }
 0x55e   :  { %v1444_v27 = vpop.f32.mrf.mxu2 }
 0x55f   :  { %v1505_v63 = vpack.c.bf16 %v1502_v49, %v1502_v49  ;;  %4482 = vmatmul.msk.bf16.vlgmr.msra.gmra.mxu2 %vm6887_vm3, %v1506_v50  ;;  %4483 = vmatmul.msk.bf16.vlgmr.msra.gmra.mxu3 %vm6898_vm14, %v1506_v50 }
 0x560   :  { %1605 = vmatpush.bf16.msrb.mxu2 %v5293_v10 }
 0x561   :  { %1531 = vmatmul.bf16.vlgmr.msrb.gmra.mxu0 %v1505_v63 }
 0x564   :  { %1606 = vmatpush.bf16.msrb.mxu2 %v5305_v33 }
 0x568   :  { %1607 = vmatpush.bf16.msrb.mxu2 %v5314_v56 }
 0x56b   :  { %1570 = vmatmul.bf16.vlgmr.msrb.gmra.mxu1 %v1505_v63 }
 0x56c   :  { %1608 = vmatpush.bf16.msrb.mxu2 %v5325_v30 }
 0x56f   :  { %1609 = vmatmul.bf16.vlgmr.msrb.gmra.mxu2 %v1505_v63 }
 0x570   :  { %2148 = vmatpush.bf16.msra.mxu2 %v5181_v48 }
 0x571   :  { %1596 = vmatmul.bf16.vlgmr.msra.gmra.mxu0 %v1504_v4 }
 0x574   :  { %2149 = vmatpush.bf16.msra.mxu2 %v5186_v54 }
 0x578   :  { %2150 = vmatpush.bf16.msra.mxu2 %v5194_v2 }
 0x57c   :  { %2151 = vmatpush.bf16.msra.mxu2 %v5203_v12 }
 0x580   :  { %2152 = vmatpush.bf16.msra.mxu2 %v5212_v29 }
 0x584   :  { %2153 = vmatpush.bf16.msra.mxu2 %v5221_v38 }
 0x588   :  { %2154 = vmatpush.bf16.msra.mxu2 %v5232_v47 }
 0x58c   :  { %2155 = vmatpush.bf16.msra.mxu2 %v5276_v37 }
 0x590   :  { %2219 = vmatpush.bf16.msrb.mxu2 %v6876_v28 }
 0x594   :  { %2220 = vmatpush.bf16.msrb.mxu2 %v6879_v18 }
 0x5d2   :  { %v1519_v7 = vpop.f32.mrf.mxu2  ;;  %v1558_v26 = vpop.f32.mrf.mxu3 }
 0x5d3   :  { %v1520_v36 = vadd.f32 1e-05, %v1519_v7  ;;  %v1559_v58 = vadd.f32 1e-05, %v1558_v26 }
 0x5d8   :  { %v1545_v1 = vpop.f32.mrf.mxu1 }
 0x5da   :  { %v1521_v4 = vpop.f32.mrf.mxu2  ;;  %v1560_v16 = vpop.f32.mrf.mxu3 }
 0x5de   :  { %v1532_v0 = vpop.f32.mrf.mxu0 }
 0x5df   :  { %v1533_v42 = vadd.f32 %v1532_v0, %v1520_v36 }
 0x5e0   :  { %v1547_v14 = vpop.f32.mrf.mxu1 }
 0x5e1   :  { %v1546_v3 = vadd.f32 %v1545_v1, %v1533_v42  ;;  %v4484_v1 = vld [vmem:[%s6677_s2 + $0x3] sm:$0x7]  ;;  %v1673_v14 = vld [vmem:[#allocation7 + $0x3] sm:$0x7] }
 0x5e2   :  { %v1584_v19 = vpop.f32.mrf.mxu2  ;;  %v1623_v50 = vpop.f32.mrf.mxu3 }
 0x5e3   :  { %4901 = vrsqrt.f32 %v1546_v3  ;;  %vm1633_vm4 = vweird.f32 %v1546_v3 }
 0x5e6   :  { %v1534_v61 = vpop.f32.mrf.mxu0 }
 0x5e8   :  { %v1571_v49 = vpop.f32.mrf.mxu1 }
 0x5e9   :  { %v4902_v27 = vpop.eup %4901  ;;  %v1572_v63 = vadd.f32 %v1571_v49, %v1559_v58  ;;  %v1675_v49 = vperm.slane %v1673_v14, 0 }
 0x5ea   :  { %v1628_v28 = vmul.f32 %v4902_v27, %v1546_v3  ;;  %v1586_v18 = vpop.f32.mrf.mxu2  ;;  %v1625_v37 = vpop.f32.mrf.mxu3  ;;  %vm1634_vm12 = vweird.f32 %v4902_v27 }
 0x5eb   :  { %v1585_v47 = vadd.f32 %v1584_v19, %v1572_v63  ;;  %vm1635_vm3 = vmor %vm1633_vm4, %vm1634_vm12  ;;  %v1663_v18 = vperm.slane %v4484_v1, 0 }
 0x5ec   :  { %v1629_v38 = vmul.f32 %v4902_v27, %v1628_v28 }
 0x5ed   :  { %4903 = vrsqrt.f32 %v1585_v47  ;;  %vm1643_vm12 = vweird.f32 %v1585_v47 }
 0x5ee   :  { %v1630_v4 = vmul.f32 0.5, %v1629_v38  ;;  %v1597_v7 = vpop.f32.mrf.mxu0 }
 0x5ef   :  { %v1598_v0 = vadd.f32 1e-05, %v1597_v7 }
 0x5f0   :  { %v1631_v16 = vsub.f32 1.5, %v1630_v4  ;;  %v1573_v36 = vpop.f32.mrf.mxu1 }
 0x5f2   :  { %v1632_v26 = vmul.f32 %v4902_v27, %v1631_v16  ;;  %v1610_v42 = vpop.f32.mrf.mxu2 }
 0x5f3   :  { %v4904_v61 = vpop.eup %4903  ;;  %v1611_v37 = vadd.f32 %v1610_v42, %v1598_v0 }
 0x5f4   :  { %v1636_v28 = vsel %vm1635_vm3, %v4902_v27, %v1632_v26  ;;  %v1638_v19 = vmul.f32 %v4904_v61, %v1585_v47  ;;  %vm1644_vm14 = vweird.f32 %v4904_v61  ;;  %v1664_v26 = vperm.slane %v4484_v1, 1 }
 0x5f5   :  { %v1624_v38 = vadd.f32 %v1623_v50, %v1611_v37  ;;  %v1657_v58 = vmul.f32 %v1636_v28, %v5677_v8  ;;  %vm1645_vm4 = vmor %vm1643_vm12, %vm1644_vm14 }
 0x5f6   :  { %v1639_v63 = vmul.f32 %v4904_v61, %v1638_v19  ;;  %v1599_v4 = vpop.f32.mrf.mxu0 }
 0x5f7   :  { %4905 = vrsqrt.f32 %v1624_v38  ;;  %v1669_v36 = vmul.f32 %v1663_v18, %v1657_v58  ;;  %v1676_v18 = vperm.slane %v1673_v14, 1  ;;  %vm1653_vm14 = vweird.f32 %v1624_v38 }
 0x5f8   :  { %v1640_v29 = vmul.f32 0.5, %v1639_v63 }
 0x5f9   :  { %v1681_v7 = vadd.f32 %v1675_v49, %v1669_v36  ;;  %v1677_v36 = vperm.slane %v1673_v14, 2 }
 0x5fa   :  { %v1641_v16 = vsub.f32 1.5, %v1640_v29  ;;  %v1612_v3 = vpop.f32.mrf.mxu2 }
 0x5fb   :  { %vm1684_vm7 = vcmp.gt.f32.partialorder %v1681_v7, 0.0  ;;  %v1694_v12 = vmul.f32 %v5569_v17, %v1681_v7 }
 0x5fc   :  { %v1642_v0 = vmul.f32 %v4904_v61, %v1641_v16 }
 0x5fd   :  { %v4906_v27 = vpop.eup %4905  ;;  %v1697_v50 = vsel %vm1684_vm7, %v1681_v7, %v1694_v12 }
 0x5fe   :  { %v1646_v8 = vsel %vm1645_vm4, %v4904_v61, %v1642_v0  ;;  %v1648_v42 = vmul.f32 %v4906_v27, %v1624_v38  ;;  %1702 = vrot.lane.b32.xlu1 %v1697_v50, %s5055_s3  ;;  %vm1654_vm3 = vweird.f32 %v4906_v27  ;;  %v1665_v61 = vperm.slane %v4484_v1, 2  ;;  %v1747_v50 = vld [vmem:[#allocation2 + $0x10] sm:$0xff] }
 0x5ff   :  { %v1658_v37 = vmul.f32 %v1646_v8, %v5690_v46  ;;  %vm1655_vm7 = vmor %vm1653_vm14, %vm1654_vm3  ;;  %vm151_vm4 = vcmask 1048080   ;;  %vm154_vm3 = vcmask 809984   ;;  %vm164_vm14 = vcmask 1048472  }
 0x600   :  { %v1649_v28 = vmul.f32 %v4906_v27, %v1648_v42  ;;  %155 = vst.msk [vmem:[#allocation2 + $0x68] sm:$0xff] %vm154_vm3, %v5470_v23  ;;  %vm6767_vm3 = vcmask 936960  }
 0x601   :  { %v1670_v29 = vmul.f32 %v1664_v26, %v1658_v37  ;;  %165 = vst.msk [vmem:[#allocation2 + $0x70] sm:$0xff] %vm164_vm14, %v5470_v23  ;;  %v1776_v26 = vld [vmem:[#allocation2 + $0x48] sm:$0xf]  ;;  %vm6899_vm14 = vcmask 1041408  }
 0x602   :  { %v1650_v19 = vmul.f32 0.5, %v1649_v28 }
 0x603   :  { %v1682_v58 = vadd.f32 %v1676_v18, %v1670_v29 }
 0x604   :  { %v1651_v49 = vsub.f32 1.5, %v1650_v19 }
 0x605   :  { %vm1685_vm13 = vcmp.gt.f32.partialorder %v1682_v58, 0.0  ;;  %v1695_v47 = vmul.f32 %v5569_v17, %v1682_v58 }
 0x606   :  { %v1652_v63 = vmul.f32 %v4906_v27, %v1651_v49 }
 0x607   :  { %v1698_v12 = vsel %vm1685_vm13, %v1682_v58, %v1695_v47  ;;  %vm142_vm13 = vcmask 540040  }
 0x608   :  { %v1656_v4 = vsel %vm1655_vm7, %v4906_v27, %v1652_v63  ;;  %1704 = vrot.lane.b32.xlu2 %v1698_v12, %s5055_s3  ;;  %1714 = vrot.lane.b32.xlu1 %v1698_v12, %s5056_s11  ;;  %143 = vst.msk [vmem:[#allocation2 + $0x58] sm:$0xff] %vm142_vm13, %v5470_v23  ;;  %vm6768_vm7 = vcmask 1043720   ;;  %v1746_v27 = vld [vmem:[#allocation2 + $0x8] sm:$0xff]  ;;  %vm1755_vm13 = vcmask 1045508  }
 0x609   :  { %v1659_v46 = vmul.f32 %v1656_v4, %v5684_v60  ;;  %152 = vst.msk [vmem:[#allocation2 + $0x58] sm:$0xff] %vm151_vm4, %v5470_v23  ;;  %vm6769_vm4 = vcmask 1044248   ;;  %v1748_v23 = vld [vmem:[#allocation2 + $0x48] sm:$0xf]  ;;  %v1750_v18 = vpack.c.bf16 %v1747_v50, %v1746_v27 }
 0x60b   :  { %v1671_v7 = vmul.f32 %v1665_v61, %v1659_v46  ;;  %v6900_v46 = vmov 0 }
 0x60d   :  { %v1683_v16 = vadd.f32 %v1677_v36, %v1671_v7 }
 0x60f   :  { %vm1686_vm12 = vcmp.gt.f32.partialorder %v1683_v16, 0.0  ;;  %v1696_v3 = vmul.f32 %v5569_v17, %v1683_v16 }
 0x610   :  { %1851 = vrot.lane.b32.xlu1 %v5520_v22, %s5047_s21 }
 0x611   :  { %v1699_v38 = vsel %vm1686_vm12, %v1683_v16, %v1696_v3  ;;  %vm6766_vm12 = vcmask 396288   ;;  %v1804_v3 = vrot.slane %v5520_v22, 4  ;;  %v1982_v22 = vrot.slane %v5502_v35, 6 }
 0x612   :  { %1716 = vrot.lane.b32.xlu2 %v1699_v38, %s5056_s11 }
 0x61a   :  { %1827 = vrot.lane.b32.xlu2 %v5496_v43, %s5042_s16 }
 0x662   :  { %v1705_v17 = vpop.permute.xlu2 %1704 }
 0x66c   :  { %v1717_v60 = vpop.permute.xlu2 %1716 }
 0x670   :  { %v1703_v1 = vpop.permute.xlu1 %1702 }
 0x671   :  { %v1706_v14 = vsel %vm134_vm8, %v1703_v1, %v1705_v17  ;;  %1710 = vst.msk [vmem:[#allocation2 + $0x50] sm:$0xf] %vm6768_vm7, %v1703_v1  ;;  %v1757_v17 = vrot.slane %v1750_v18, 6  ;;  %vm6904_vm7 = vcmask 367616  }
 0x672   :  { %1712 = vst.msk [vmem:[#allocation2 + $0x58] sm:$0xf] %vm6766_vm12, %v1706_v14  ;;  %vm5741_vm12 = vmor %vm6899_vm14, %vm1755_vm13  ;;  %vm1788_vm13 = vcmask 310272   ;;  %vm1767_vm14 = vcmask 318464  }
 0x673   :  { %v6901_v46 = vsel %vm5741_vm12, 4294967295, %v6900_v46 }
 0x674   :  { %v1828_v43 = vpop.permute.xlu2 %1827  ;;  %6902 = vst [vmem:[#allocation32_spill] sm:$0xff] %v6901_v46 }
 0x675   :  { %v1831_v0 = vrot.slane %v1828_v43, 4 }
 0x677   :  { %v1833_v8 = vsel %vm6770_vm5, %v1828_v43, %v1831_v0  ;;  %v1758_v43 = vrot.slane %v1757_v17, 4 }
 0x678   :  { %1837 = vst.msk [vmem:[#allocation3 + $0x48] sm:$0xff] %vm5525_vm15, %v1833_v8  ;;  %v1777_v42 = vld [vmem:[#allocation2 + $0x50] sm:$0xf] }
 0x679   :  { %v1821_v37 = vld [vmem:[#allocation2 + $0x50] sm:$0xf]  ;;  %v1779_v28 = vpack.c.bf16 %v1777_v42, %v1776_v26  ;;  %v1822_v29 = vld [vmem:[#allocation2 + $0x58] sm:$0xf] }
 0x67a   :  { %v1797_v19 = vld [vmem:[#allocation2 + $0x50] sm:$0xf]  ;;  %v1798_v58 = vld [vmem:[#allocation2 + $0x58] sm:$0xf]  ;;  %v1715_v49 = vpop.permute.xlu1 %1714  ;;  %v1824_v47 = vpack.c.bf16 %v1822_v29, %v1821_v37  ;;  %v1983_v29 = vrot.slane %v1982_v22, 4 }
 0x67b   :  { %v1800_v63 = vpack.c.bf16 %v1798_v58, %v1797_v19  ;;  %v1749_v12 = vld [vmem:[#allocation2 + $0x50] sm:$0xf]  ;;  %v1842_v4 = vld [vmem:[#allocation2 + $0x58] sm:$0xf]  ;;  %v1718_v36 = vsel %vm6797_vm9, %v1715_v49, %v1717_v60  ;;  %1722 = vst.msk [vmem:[#allocation2 + $0x68] sm:$0xf] %vm6769_vm4, %v1715_v49  ;;  %1784 = vrot.lane.b32.xlu2 %v1779_v28, %s5062_s28 }
 0x67c   :  { %v1841_v61 = vld [vmem:[#allocation2 + $0x50] sm:$0xf]  ;;  %v1751_v7 = vpack.c.bf16 %v1749_v12, %v1748_v23  ;;  %1724 = vst.msk [vmem:[#allocation2 + $0x70] sm:$0xf] %vm6767_vm3, %v1718_v36  ;;  %1829 = vrot.lane.b32.xlu0 %v1824_v47, %s5042_s16  ;;  %v1727_v28 = vld [vmem:[#allocation2 + $0x48] sm:$0xf] }
 0x67d   :  { %v1844_v16 = vpack.c.bf16 %v1842_v4, %v1841_v61  ;;  %v1805_v38 = vrot.slane %v1800_v63, 6  ;;  %v1728_v58 = vld [vmem:[#allocation2 + $0x50] sm:$0xf]  ;;  %v5767_v4 = vld [vmem:[#allocation2 + $0x28] sm:$0xff]  ;;  %vm1739_vm3 = vcmask 326656   ;;  %vm6906_vm4 = vcmask 785408  }
 0x67e   :  { %v1759_v14 = vrot.slane %v1751_v7, 6  ;;  %v1730_v47 = vpack.c.bf16 %v1728_v58, %v1727_v28  ;;  %v1931_v36 = vld [vmem:[#allocation2 + $0x30] sm:$0xff] }
 0x67f   :  { %v1806_v1 = vsel %vm5741_vm12, %v1804_v3, %v1805_v38  ;;  %v1849_v60 = vrot.slane %v1844_v16, 6  ;;  %v5771_v7 = vpack.c.bf16 %v1931_v36, %v5767_v4 }
 0x680   :  { %1809 = vrot.lane.b32.xlu1 %v1806_v1, %s5050_s24  ;;  %v1760_v27 = vsel %vm5741_vm12, %v1758_v43, %v1759_v14 }
 0x681   :  { %v1850_v8 = vsel %vm5741_vm12, %v1804_v3, %v1849_v60  ;;  %v1938_v38 = vrot.slane %v5771_v7, 6 }
 0x682   :  { %v1852_v0 = vpop.permute.xlu1 %1851  ;;  %v1976_v50 = vld [vmem:[#allocation2 + $0x68] sm:$0xf] }
 0x683   :  { %v1855_v26 = vrot.slane %v1852_v0, 4  ;;  %1763 = vrot.lane.b32.xlu2 %v1760_v27, %s5063_s29  ;;  %v1977_v23 = vld [vmem:[#allocation2 + $0x70] sm:$0xf]  ;;  %v1956_v63 = vld [vmem:[#allocation2 + $0x68] sm:$0xf] }
 0x684   :  { %1853 = vrot.lane.b32.xlu0 %v1850_v8, %s5047_s21  ;;  %v1979_v42 = vpack.c.bf16 %v1977_v23, %v1976_v50  ;;  %v1957_v12 = vld [vmem:[#allocation2 + $0x70] sm:$0xf]  ;;  %v1932_v16 = vld [vmem:[#allocation2 + $0x68] sm:$0xf]  ;;  %v1939_v50 = vrot.slane %v1938_v38, 4 }
 0x685   :  { %v1857_v37 = vsel %vm314_vm10, %v1852_v0, %v1855_v26  ;;  %v1959_v61 = vpack.c.bf16 %v1957_v12, %v1956_v63  ;;  %v1933_v3 = vld [vmem:[#allocation2 + $0x70] sm:$0xf]  ;;  %v1911_v1 = vld [vmem:[#allocation2 + $0x68] sm:$0xf] }
 0x686   :  { %1861 = vst.msk [vmem:[#allocation3 + $0x54] sm:$0xcc] %vm5144_vm11, %v1857_v37  ;;  %v1984_v19 = vrot.slane %v1979_v42, 6  ;;  %v1912_v14 = vld [vmem:[#allocation2 + $0x70] sm:$0xf] }
 0x687   :  { %v1886_v60 = vld [vmem:[#allocation2 + $0x68] sm:$0xf]  ;;  %v1887_v43 = vld [vmem:[#allocation2 + $0x70] sm:$0xf]  ;;  %v4545_v37 = vld [vmem:[%s6679_s4 + $0x8] sm:$0xf] }
 0x688   :  { %v1985_v49 = vsel %vm5741_vm12, %v1983_v29, %v1984_v19  ;;  %v1889_v27 = vpack.c.bf16 %v1887_v43, %v1886_v60  ;;  %v1865_v8 = vld [vmem:[#allocation2 + $0x68] sm:$0xf]  ;;  %v1866_v23 = vld [vmem:[#allocation2 + $0x70] sm:$0xf] }
 0x689   :  { %1988 = vrot.lane.b32.xlu1 %v1985_v49, %s5046_s20  ;;  %v1868_v42 = vpack.c.bf16 %v1866_v23, %v1865_v8  ;;  %v6943_v8 = vld [vmem:[#allocation41_spill] sm:$0xff] }
 0x68a   :  { %v1894_v26 = vrot.slane %v1889_v27, 6 }
 0x68b   :  { %1735 = vrot.lane.b32.xlu2 %v1730_v47, %s5064_s7 }
 0x68c   :  { %1782 = vrot.lane.b32.xlu0 %v1750_v18, %s5062_s28 }
 0x691   :  { %1733 = vrot.lane.b32.xlu1 %v1750_v18, %s5064_s7  ;;  %v1935_v18 = vpack.c.bf16 %v1933_v3, %v1932_v16 }
 0x693   :  { %1964 = vrot.lane.b32.xlu2 %v1959_v61, %s5045_s19  ;;  %v1940_v0 = vrot.slane %v1935_v18, 6 }
 0x694   :  { %1761 = vrot.lane.b32.xlu0 %v1757_v17, %s5063_s29  ;;  %v1914_v17 = vpack.c.bf16 %v1912_v14, %v1911_v1 }
 0x699   :  { %1962 = vrot.lane.b32.xlu1 %v5502_v35, %s5045_s19  ;;  %v1941_v35 = vsel %vm5741_vm12, %v1939_v50, %v1940_v0 }
 0x69b   :  { %1942 = vrot.lane.b32.xlu2 %v1938_v38, %s5053_s27 }
 0x69c   :  { %1986 = vrot.lane.b32.xlu0 %v1982_v22, %s5046_s20  ;;  %v1895_v22 = vsel %vm5741_vm12, %v1939_v50, %v1894_v26 }
 0x6a1   :  { %1919 = vrot.lane.b32.xlu1 %v1914_v17, %s5065_s8  ;;  %v6941_v17 = vld [vmem:[#allocation34_spill] sm:$0xff] }
 0x6a3   :  { %1917 = vrot.lane.b32.xlu2 %v5771_v7, %s5065_s8 }
 0x6a4   :  { %1944 = vrot.lane.b32.xlu0 %v1941_v35, %s5053_s27 }
 0x6a9   :  { %1898 = vrot.lane.b32.xlu1 %v1895_v22, %s5066_s9 }
 0x6ab   :  { %1896 = vrot.lane.b32.xlu2 %v1938_v38, %s5066_s9  ;;  %s5074_s9 = smov 127  }
 0x6ac   :  { %1871 = vrot.lane.b32.xlu0 %v5771_v7, %s5067_s10 }
 0x6b1   :  { %1873 = vrot.lane.b32.xlu1 %v1868_v42, %s5067_s10 }
 0x6b4   :  { %2458 = vperm.xlu0 %4893, %v4545_v37  }
 0x6d5   :  { %v1785_v28 = vpop.permute.xlu2 %1784 }
 0x6d6   :  { %v1787_v29 = vrot.slane %v1785_v28, 4 }
 0x6d8   :  { %v1790_v19 = vsel %vm1788_vm13, %v1785_v28, %v1787_v29 }
 0x6d9   :  { %1794 = vst.msk [vmem:[#allocation3 + $0x30] sm:$0x33] %vm5135_vm6, %v1790_v19 }
 0x6dd   :  { %v1764_v49 = vpop.permute.xlu2 %1763 }
 0x6de   :  { %v1766_v47 = vrot.slane %v1764_v49, 4 }
 0x6e0   :  { %v1769_v63 = vsel %vm1767_vm14, %v1764_v49, %v1766_v47 }
 0x6e1   :  { %1773 = vst.msk [vmem:[#allocation3 + $0x18] sm:$0xff] %vm5525_vm15, %v1769_v63 }
 0x6e5   :  { %v1736_v12 = vpop.permute.xlu2 %1735 }
 0x6e6   :  { %v1738_v61 = vrot.slane %v1736_v12, 4 }
 0x6e8   :  { %v1741_v36 = vsel %vm1739_vm3, %v1736_v12, %v1738_v61 }
 0x6e9   :  { %1745 = vst.msk [vmem:[#allocation3 + $0xc] sm:$0x33] %vm5135_vm6, %v1741_v36 }
 0x6ed   :  { %v1965_v16 = vpop.permute.xlu2 %1964 }
 0x6ee   :  { %v1967_v3 = vrot.slane %v1965_v16, 4  ;;  %v1830_v38 = vpop.permute.xlu0 %1829 }
 0x6ef   :  { %v1832_v18 = vrot.slane %v1830_v38, 4 }
 0x6f0   :  { %v1969_v60 = vsel %vm6904_vm7, %v1965_v16, %v1967_v3  ;;  %vm6909_vm7 = vcmask 359424  }
 0x6f1   :  { %v1834_v1 = vsel %vm6770_vm5, %v1830_v38, %v1832_v18  ;;  %vm6907_vm5 = vcmask 375808  }
 0x6f2   :  { %v1810_v14 = vpop.permute.xlu1 %1809  ;;  %1838 = vst.msk [vmem:[#allocation3 + $0x54] sm:$0x33] %vm5135_vm6, %v1834_v1 }
 0x6f3   :  { %v1812_v43 = vrot.slane %v1810_v14, 4  ;;  %1973 = vst.msk [vmem:[#allocation3 + $0x58] sm:$0x33] %vm5157_vm2, %v1969_v60 }
 0x6f5   :  { %v1814_v0 = vsel %vm6906_vm4, %v1810_v14, %v1812_v43  ;;  %v1943_v27 = vpop.permute.xlu2 %1942  ;;  %vm1923_vm4 = vcmask 949248  }
 0x6f6   :  { %1818 = vst.msk [vmem:[#allocation3 + $0x3c] sm:$0xff] %vm5525_vm15, %v1814_v0  ;;  %v1946_v50 = vrot.slane %v1943_v27, 4  ;;  %v1854_v35 = vpop.permute.xlu0 %1853 }
 0x6f7   :  { %v1856_v26 = vrot.slane %v1854_v35, 4 }
 0x6f8   :  { %v1948_v22 = vsel %vm6907_vm5, %v1943_v27, %v1946_v50  ;;  %vm1902_vm5 = vcmask 957440  }
 0x6f9   :  { %1952 = vst.msk [vmem:[#allocation3 + $0x34] sm:$0xcc] %vm5165_vm1, %v1948_v22  ;;  %v1858_v23 = vsel %vm314_vm10, %v1854_v35, %v1856_v26 }
 0x6fa   :  { %1862 = vst.msk [vmem:[#allocation3 + $0x60] sm:$0xff] %vm5525_vm15, %v1858_v23 }
 0x6fb   :  { %v1989_v42 = vpop.permute.xlu1 %1988 }
 0x6fc   :  { %v1991_v37 = vrot.slane %v1989_v42, 4 }
 0x6fd   :  { %v1918_v28 = vpop.permute.xlu2 %1917 }
 0x6fe   :  { %v1993_v29 = vsel %vm6909_vm7, %v1989_v42, %v1991_v37  ;;  %v1921_v19 = vrot.slane %v1918_v28, 4  ;;  %v1783_v49 = vpop.permute.xlu0 %1782  ;;  %v4802_v42 = vld [vmem:[#allocation3 + $0x50] sm:$0xf0] }
 0x6ff   :  { %1997 = vst.msk [vmem:[#allocation3 + $0x64] sm:$0xff] %vm5533_vm0, %v1993_v29  ;;  %v1786_v47 = vrot.slane %v1783_v49, 4 }
 0x700   :  { %v1924_v12 = vsel %vm1923_vm4, %v1918_v28, %v1921_v19 }
 0x701   :  { %v1789_v63 = vsel %vm1788_vm13, %v1783_v49, %v1786_v47  ;;  %v4525_v47 = vld [vmem:[#allocation3 + $0x48] sm:$0xf] }
 0x702   :  { %1793 = vst.msk [vmem:[#allocation3 + $0x24] sm:$0xff] %vm5525_vm15, %v1789_v63 }
 0x703   :  { %1928 = vst.msk [vmem:[#allocation3 + $0x28] sm:$0xff] %vm5533_vm0, %v1924_v12  ;;  %v1734_v61 = vpop.permute.xlu1 %1733 }
 0x704   :  { %v1737_v36 = vrot.slane %v1734_v61, 4 }
 0x705   :  { %v1897_v16 = vpop.permute.xlu2 %1896 }
 0x706   :  { %v1740_v3 = vsel %vm1739_vm3, %v1734_v61, %v1737_v36  ;;  %v1900_v38 = vrot.slane %v1897_v16, 4  ;;  %v1762_v18 = vpop.permute.xlu0 %1761  ;;  %v2016_v1 = vld [vmem:[#allocation3 + $0x60] sm:$0xff]  ;;  %v2017_v14 = vld [vmem:[#allocation3 + $0x68] sm:$0xf]  ;;  %vm6910_vm3 = vcmask 1043456   ;;  %v4526_v61 = vor.u32 %v4802_v42, %v4525_v47 }
 0x707   :  { %1744 = vst.msk [vmem:[#allocation3] sm:$0xff] %vm5525_vm15, %v1740_v3  ;;  %v1765_v60 = vrot.slane %v1762_v18, 4  ;;  %v2060_v43 = vunpack.c.l.b16 %v2016_v1  ;;  %v2061_v0 = vunpack.c.h.b16 %v2016_v1  ;;  %v2062_v27 = vunpack.c.l.b16 %v2017_v14  ;;  %vm6911_vm13 = vmmov %vm6910_vm3 }
 0x708   :  { %v1903_v23 = vsel %vm1902_vm5, %v1897_v16, %v1900_v38  ;;  %vm6912_vm7 = vmmov %vm6910_vm3  ;;  %v4799_v16 = vld [vmem:[#allocation3 + $0x38] sm:$0xf0]  ;;  %v4513_v38 = vld [vmem:[#allocation3 + $0x30] sm:$0xf] }
 0x709   :  { %v1768_v50 = vsel %vm1767_vm14, %v1762_v18, %v1765_v60  ;;  %v2075_v35 = vpack.c.b16 %v2060_v43, %v2060_v43  ;;  %v2076_v26 = vpack.c.b16 %v2061_v0, %v2061_v0  ;;  %v2077_v22 = vpack.c.b16 %v2062_v27, %v2062_v27  ;;  %v4796_v14 = vld [vmem:[#allocation3 + $0x20] sm:$0xf0]  ;;  %v4501_v43 = vld [vmem:[#allocation3 + $0x18] sm:$0xf] }
 0x70a   :  { %1772 = vst.msk [vmem:[#allocation3 + $0xc] sm:$0xcc] %vm5144_vm11, %v1768_v50  ;;  %vm6913_vm14 = vcmask 367616   ;;  %v4514_v18 = vor.u32 %v4799_v16, %v4513_v38  ;;  %v4502_v50 = vor.u32 %v4796_v14, %v4501_v43 }
 0x70b   :  { %1907 = vst.msk [vmem:[#allocation3 + $0x10] sm:$0xcc] %vm5165_vm1, %v1903_v23  ;;  %v1963_v37 = vpop.permute.xlu1 %1962  ;;  %v2095_v28 = vsel %vm6910_vm3, %v2075_v35, 0  ;;  %v2098_v29 = vsel %vm6911_vm13, %v2076_v26, 0  ;;  %v2101_v19 = vsel %vm6912_vm7, %v2077_v22, 0  ;;  %vm6914_vm3 = vcmask 359424  }
 0x70c   :  { %v1966_v49 = vrot.slane %v1963_v37, 4  ;;  %2106 = vmatpush.bf16.msra.mxu1 %v2095_v28  ;;  %2119 = vmatpush.bf16.msrb.mxu3 %v2098_v29  ;;  %vm6915_vm13 = vcmask 375808   ;;  %vm1877_vm7 = vcmask 965632  }
 0x70d   :  { %2132 = vmatpush.bf16.msrb.mxu0 %v2101_v19 }
 0x70e   :  { %v1968_v63 = vsel %vm6913_vm14, %v1963_v37, %v1966_v49  ;;  %v1987_v12 = vpop.permute.xlu0 %1986  ;;  %v4489_v22 = vld [vmem:[#allocation3] sm:$0xf] }
 0x70f   :  { %1972 = vst.msk [vmem:[#allocation3 + $0x4c] sm:$0xff] %vm5533_vm0, %v1968_v63  ;;  %v1990_v36 = vrot.slane %v1987_v12, 4 }
 0x710   :  { %2107 = vmatpush.bf16.msra.mxu1 %v4526_v61  ;;  %v4486_v61 = vld [vmem:[%s6676_s1 + $0x4] sm:$0x3] }
 0x711   :  { %v1992_v3 = vsel %vm6914_vm3, %v1987_v12, %v1990_v36  ;;  %v4793_v26 = vld [vmem:[#allocation3 + $0x8] sm:$0xf0] }
 0x712   :  { %1996 = vst.msk [vmem:[#allocation3 + $0x58] sm:$0xcc] %vm5165_vm1, %v1992_v3  ;;  %v4490_v19 = vor.u32 %v4793_v26, %v4489_v22 }
 0x713   :  { %v1920_v1 = vpop.permute.xlu1 %1919 }
 0x714   :  { %v1922_v60 = vrot.slane %v1920_v1, 4  ;;  %2108 = vmatpush.bf16.msra.mxu1 %v4514_v18 }
 0x716   :  { %v1925_v0 = vsel %vm1923_vm4, %v1920_v1, %v1922_v60  ;;  %v1945_v27 = vpop.permute.xlu0 %1944  ;;  %v4801_v23 = vld [vmem:[#allocation3 + $0x4c] sm:$0xf]  ;;  %v4533_v28 = vld [vmem:[#allocation3 + $0x50] sm:$0xf]  ;;  %vm2090_vm4 = vcmask 588800  }
 0x717   :  { %1929 = vst.msk [vmem:[#allocation3 + $0x34] sm:$0x33] %vm5157_vm2, %v1925_v0  ;;  %v1947_v35 = vrot.slane %v1945_v27, 4 }
 0x718   :  { %2109 = vmatpush.bf16.msra.mxu1 %v4502_v50 }
 0x719   :  { %v1949_v42 = vsel %vm6915_vm13, %v1945_v27, %v1947_v35  ;;  %v4527_v37 = vld [vmem:[#allocation3 + $0x54] sm:$0xf0]  ;;  %v4803_v29 = vld [vmem:[#allocation3 + $0x58] sm:$0xf0]  ;;  %v4503_v35 = vld [vmem:[#allocation3 + $0x24] sm:$0xf0] }
 0x71a   :  { %1953 = vst.msk [vmem:[#allocation3 + $0x40] sm:$0xff] %vm5533_vm0, %v1949_v42  ;;  %v4530_v49 = vor.u32 %v4801_v23, %v4527_v37  ;;  %v4534_v47 = vor.u32 %v4803_v29, %v4533_v28  ;;  %v4797_v42 = vld [vmem:[#allocation3 + $0x28] sm:$0xf0] }
 0x71b   :  { %v1899_v63 = vpop.permute.xlu1 %1898 }
 0x71c   :  { %v1901_v12 = vrot.slane %v1899_v63, 4  ;;  %2110 = vmatpush.bf16.msra.mxu1 %v4490_v19  ;;  %2120 = vmatpush.bf16.msrb.mxu3 %v4530_v49 }
 0x71d   :  { %2133 = vmatpush.bf16.msrb.mxu0 %v4534_v47 }
 0x71e   :  { %v1904_v36 = vsel %vm1902_vm5, %v1899_v63, %v1901_v12  ;;  %v1872_v16 = vpop.permute.xlu0 %1871  ;;  %v4798_v38 = vld [vmem:[#allocation3 + $0x34] sm:$0xf]  ;;  %v4521_v14 = vld [vmem:[#allocation3 + $0x38] sm:$0xf]  ;;  %vm6934_vm5 = vcmask 261120  }
 0x71f   :  { %1908 = vst.msk [vmem:[#allocation3 + $0x1c] sm:$0xff] %vm5533_vm0, %v1904_v36  ;;  %v1875_v3 = vrot.slane %v1872_v16, 4  ;;  %4535 = vmatmul.msk.bf16.vlgmr.msra.gmra.mxu1 %vm2090_vm4, %v4486_v61  ;;  %v6917_v36 = vld [vmem:[#allocation25_spill] sm:$0xff]  ;;  %vm6935_vm14 = vmmov %vm6934_vm5 }
 0x720   :  { %2161 = vmatpush.bf16.msrb.mxu1 %v5190_v59  ;;  %vm6936_vm3 = vmmov %vm6934_vm5 }
 0x721   :  { %v1878_v18 = vsel %vm1877_vm7, %v1872_v16, %v1875_v3  ;;  %v4515_v1 = vld [vmem:[#allocation3 + $0x3c] sm:$0xf0]  ;;  %v4800_v60 = vld [vmem:[#allocation3 + $0x40] sm:$0xf0]  ;;  %v6918_v16 = vld [vmem:[#allocation40_spill] sm:$0xff] }
 0x722   :  { %1882 = vst.msk [vmem:[#allocation3 + $0x4] sm:$0xff] %vm5533_vm0, %v1878_v18  ;;  %v4518_v43 = vor.u32 %v4798_v38, %v4515_v1  ;;  %v4522_v0 = vor.u32 %v4800_v60, %v4521_v14  ;;  %v6919_v3 = vld [vmem:[#allocation36_spill] sm:$0xff]  ;;  %v6920_v38 = vld [vmem:[#allocation27_spill] sm:$0xff]  ;;  %v6922_v1 = vld [vmem:[#allocation38_spill] sm:$0xff] }
 0x723   :  { %v1874_v27 = vpop.permute.xlu1 %1873  ;;  %v6921_v18 = vld [vmem:[#allocation44_spill] sm:$0xff]  ;;  %v6923_v14 = vld [vmem:[#allocation30_spill] sm:$0xff]  ;;  %vm6944_vm13 = vmmov %vm6936_vm3 }
 0x724   :  { %2162 = vmatpush.bf16.msrb.mxu1 %v5201_v5  ;;  %v1876_v50 = vrot.slane %v1874_v27, 4  ;;  %2121 = vmatpush.bf16.msrb.mxu3 %v4518_v43  ;;  %v6924_v60 = vld [vmem:[#allocation46_spill] sm:$0xff]  ;;  %v6925_v43 = vld [vmem:[#allocation39_spill] sm:$0xff] }
 0x725   :  { %2134 = vmatpush.bf16.msrb.mxu0 %v4522_v0  ;;  %v6926_v0 = vld [vmem:[#allocation31_spill] sm:$0xff] }
 0x726   :  { %v1879_v26 = vsel %vm1877_vm7, %v1874_v27, %v1876_v50  ;;  %v4795_v22 = vld [vmem:[#allocation3 + $0x1c] sm:$0xf]  ;;  %v4509_v23 = vld [vmem:[#allocation3 + $0x20] sm:$0xf]  ;;  %v6927_v27 = vld [vmem:[#allocation50_spill] sm:$0xff] }
 0x727   :  { %1883 = vst.msk [vmem:[#allocation3 + $0x10] sm:$0x33] %vm5157_vm2, %v1879_v26  ;;  %v4506_v37 = vor.u32 %v4795_v22, %v4503_v35  ;;  %v4510_v28 = vor.u32 %v4797_v42, %v4509_v23  ;;  %v6928_v50 = vld [vmem:[#allocation48_spill] sm:$0xff]  ;;  %v6929_v35 = vld [vmem:[#allocation42_spill] sm:$0xff]  ;;  %v6930_v26 = vld [vmem:[#allocation51_spill] sm:$0xff] }
 0x728   :  { %2163 = vmatpush.bf16.msrb.mxu1 %v5210_v21  ;;  %v6931_v22 = vld [vmem:[#allocation49_spill] sm:$0xff]  ;;  %v6933_v42 = vld [vmem:[#allocation47_spill] sm:$0xff]  ;;  %vm6946_vm7 = vmmov %vm6936_vm3 }
 0x729   :  { %2122 = vmatpush.bf16.msrb.mxu3 %v4506_v37  ;;  %2135 = vmatpush.bf16.msrb.mxu0 %v4510_v28  ;;  %v4792_v29 = vld [vmem:[#allocation3 + $0x4] sm:$0xf]  ;;  %v4497_v49 = vld [vmem:[#allocation3 + $0x8] sm:$0xf]  ;;  %v6932_v23 = vld [vmem:[#allocation45_spill] sm:$0xff] }
 0x72c   :  { %2164 = vmatpush.bf16.msrb.mxu1 %v5218_v34 }
 0x72e   :  { %v4491_v19 = vld [vmem:[#allocation3 + $0xc] sm:$0xf0]  ;;  %v4794_v47 = vld [vmem:[#allocation3 + $0x10] sm:$0xf0] }
 0x72f   :  { %v4494_v63 = vor.u32 %v4792_v29, %v4491_v19  ;;  %v4498_v12 = vor.u32 %v4794_v47, %v4497_v49 }
 0x730   :  { %2165 = vmatpush.bf16.msrb.mxu1 %v5229_v44 }
 0x731   :  { %2123 = vmatpush.bf16.msrb.mxu3 %v4494_v63  ;;  %2136 = vmatpush.bf16.msrb.mxu0 %v4498_v12 }
 0x734   :  { %2166 = vmatpush.bf16.msrb.mxu1 %v5240_v55  ;;  %4536 = vmatmul.msk.bf16.vlgmr.msrb.gmra.mxu3 %vm2090_vm4, %v4486_v61 }
 0x735   :  { %2187 = vmatpush.bf16.msra.mxu0 %v5207_v20  ;;  %2180 = vmatpush.bf16.msra.mxu3 %v5234_v51 }
 0x736   :  { %4537 = vmatmul.msk.bf16.vlgmr.msrb.gmra.mxu0 %vm2090_vm4, %v4486_v61  ;;  %v6916_v61 = vld [vmem:[#allocation35_spill] sm:$0xff]  ;;  %vm6945_vm4 = vmmov %vm6936_vm3 }
 0x738   :  { %2167 = vmatpush.bf16.msrb.mxu1 %v5248_v62 }
 0x739   :  { %2188 = vmatpush.bf16.msra.mxu0 %v5215_v32  ;;  %2181 = vmatpush.bf16.msra.mxu3 %v5283_v53 }
 0x73c   :  { %2168 = vmatpush.bf16.msrb.mxu1 %v5254_v9 }
 0x73d   :  { %2200 = vmatpush.bf16.msrb.mxu3 %v5287_v57  ;;  %2189 = vmatpush.bf16.msra.mxu0 %v5226_v41 }
 0x740   :  { %2226 = vmatpush.bf16.msra.mxu1 %v5256_v13 }
 0x741   :  { %2201 = vmatpush.bf16.msrb.mxu3 %v5295_v11  ;;  %2190 = vmatpush.bf16.msra.mxu0 %v5237_v52 }
 0x744   :  { %2227 = vmatpush.bf16.msra.mxu1 %v6916_v61 }
 0x745   :  { %2202 = vmatpush.bf16.msrb.mxu3 %v5307_v39  ;;  %2191 = vmatpush.bf16.msra.mxu0 %v6917_v36 }
 0x748   :  { %2228 = vmatpush.bf16.msra.mxu1 %v6919_v3 }
 0x749   :  { %2203 = vmatpush.bf16.msrb.mxu3 %v6918_v16  ;;  %2192 = vmatpush.bf16.msra.mxu0 %v6920_v38 }
 0x74c   :  { %2229 = vmatpush.bf16.msra.mxu1 %v6922_v1 }
 0x74d   :  { %2204 = vmatpush.bf16.msrb.mxu3 %v6921_v18  ;;  %2193 = vmatpush.bf16.msra.mxu0 %v6923_v14 }
 0x750   :  { %2230 = vmatpush.bf16.msra.mxu1 %v6925_v43 }
 0x751   :  { %2205 = vmatpush.bf16.msrb.mxu3 %v6924_v60  ;;  %2194 = vmatpush.bf16.msra.mxu0 %v6926_v0 }
 0x754   :  { %2231 = vmatpush.bf16.msra.mxu1 %v6929_v35 }
 0x755   :  { %2258 = vmatpush.bf16.msrb.mxu0 %v6927_v27  ;;  %2206 = vmatpush.bf16.msrb.mxu3 %v6928_v50 }
 0x758   :  { %2232 = vmatpush.bf16.msra.mxu1 %v6932_v23 }
 0x759   :  { %2259 = vmatpush.bf16.msrb.mxu0 %v6930_v26  ;;  %2207 = vmatpush.bf16.msrb.mxu3 %v6931_v22 }
 0x75c   :  { %2233 = vmatpush.bf16.msra.mxu1 %v6933_v42 }
 0x79c   :  { %v5896_v37 = vpop.f32.mrf.mxu1 }
 0x79d   :  { %v2142_v28 = vpack.c.bf16 %v5896_v37, %v5896_v37 }
 0x79f   :  { %2156 = vmatmul.bf16.vlgmr.msra.gmra.mxu2 %v2142_v28  ;;  %2195 = vmatmul.bf16.vlgmr.msra.gmra.mxu0 %v2142_v28 }
 0x7a0   :  { %2239 = vmatpush.bf16.msra.mxu2 %v6883_v40  ;;  %2290 = vmatpush.bf16.msra.mxu0 %v5190_v59 }
 0x7a4   :  { %v2114_v29 = vpop.f32.mrf.mxu1  ;;  %2240 = vmatpush.bf16.msra.mxu2 %v6885_v24  ;;  %2291 = vmatpush.bf16.msra.mxu0 %v5201_v5 }
 0x7a8   :  { %2241 = vmatpush.bf16.msra.mxu2 %v5273_v31  ;;  %2292 = vmatpush.bf16.msra.mxu0 %v5210_v21 }
 0x7ac   :  { %2242 = vmatpush.bf16.msra.mxu2 %v5280_v45  ;;  %2293 = vmatpush.bf16.msra.mxu0 %v5218_v34 }
 0x7b0   :  { %2243 = vmatpush.bf16.msra.mxu2 %v5293_v10  ;;  %2294 = vmatpush.bf16.msra.mxu0 %v5229_v44 }
 0x7b3   :  { %v5910_v19 = vpop.f32.mrf.mxu0 }
 0x7b4   :  { %v2144_v49 = vpack.c.bf16 %v5910_v19, %v5910_v19  ;;  %2244 = vmatpush.bf16.msra.mxu2 %v5305_v33  ;;  %2295 = vmatpush.bf16.msra.mxu0 %v5240_v55 }
 0x7b6   :  { %4538 = vmatmul.msk.bf16.vlgmr.msra.gmra.mxu3 %vm6934_vm5, %v2144_v49  ;;  %4539 = vmatmul.msk.bf16.vlgmr.msrb.gmra.mxu2 %vm6935_vm14, %v2144_v49 }
 0x7b7   :  { %4540 = vmatmul.msk.bf16.vlgmr.msrb.gmra.mxu0 %vm6936_vm3, %v2144_v49  ;;  %2277 = vmatpush.bf16.msra.mxu3 %v5181_v48  ;;  %v5920_v47 = vpop.f32.mrf.mxu3  ;;  %v6937_v49 = vld [vmem:[#allocation18_spill] sm:$0xff] }
 0x7b8   :  { %v2143_v63 = vpack.c.bf16 %v5920_v47, %v5920_v47  ;;  %2245 = vmatpush.bf16.msra.mxu2 %v5314_v56  ;;  %2296 = vmatpush.bf16.msra.mxu0 %v5248_v62 }
 0x7ba   :  { %2169 = vmatmul.bf16.vlgmr.msrb.gmra.mxu1 %v2143_v63 }
 0x7bb   :  { %v2140_v12 = vpop.f32.mrf.mxu0  ;;  %2278 = vmatpush.bf16.msra.mxu3 %v5186_v54  ;;  %2309 = vmatpush.bf16.msrb.mxu1 %v5234_v51 }
 0x7bc   :  { %2246 = vmatpush.bf16.msra.mxu2 %v5325_v30  ;;  %2297 = vmatpush.bf16.msra.mxu0 %v5254_v9  ;;  %v6938_v12 = vld [vmem:[#allocation19_spill] sm:$0xff] }
 0x7bf   :  { %2279 = vmatpush.bf16.msra.mxu3 %v5194_v2  ;;  %v2127_v29 = vpop.f32.mrf.mxu3  ;;  %2310 = vmatpush.bf16.msrb.mxu1 %v5283_v53 }
 0x7c0   :  { %2316 = vmatpush.bf16.msrb.mxu2 %v5207_v20  ;;  %2355 = vmatpush.bf16.msrb.mxu0 %v5256_v13  ;;  %v6939_v29 = vld [vmem:[#allocation20_spill] sm:$0xff] }
 0x7c3   :  { %2280 = vmatpush.bf16.msra.mxu3 %v6937_v49 }
 0x7c4   :  { %2317 = vmatpush.bf16.msrb.mxu2 %v5215_v32  ;;  %2356 = vmatpush.bf16.msrb.mxu0 %v6916_v61 }
 0x7c6   :  { %2208 = vmatmul.bf16.vlgmr.msrb.gmra.mxu3 %v2143_v63  ;;  %2247 = vmatmul.bf16.vlgmr.msra.gmra.mxu2 %v2143_v63  ;;  %v6940_v63 = vld [vmem:[#allocation22_spill] sm:$0xff] }
 0x7c7   :  { %2281 = vmatpush.bf16.msra.mxu3 %v6938_v12 }
 0x7c8   :  { %2318 = vmatpush.bf16.msrb.mxu2 %v5226_v41  ;;  %2357 = vmatpush.bf16.msrb.mxu0 %v6919_v3 }
 0x7ca   :  { %2234 = vmatmul.bf16.vlgmr.msra.gmra.mxu1 %v2142_v28  ;;  %v6942_v28 = vld [vmem:[#allocation37_spill] sm:$0xff] }
 0x7cb   :  { %2282 = vmatpush.bf16.msra.mxu3 %v6939_v29  ;;  %2329 = vmatpush.bf16.msra.mxu1 %v5287_v57 }
 0x7cc   :  { %2319 = vmatpush.bf16.msrb.mxu2 %v5237_v52  ;;  %2358 = vmatpush.bf16.msrb.mxu0 %v6922_v1 }
 0x7cf   :  { %2283 = vmatpush.bf16.msra.mxu3 %v6940_v63  ;;  %2330 = vmatpush.bf16.msra.mxu1 %v5295_v11 }
 0x7d0   :  { %2320 = vmatpush.bf16.msrb.mxu2 %v6917_v36  ;;  %2359 = vmatpush.bf16.msrb.mxu0 %v6925_v43 }
 0x7d3   :  { %2284 = vmatpush.bf16.msra.mxu3 %v6941_v17  ;;  %2331 = vmatpush.bf16.msra.mxu1 %v5307_v39 }
 0x7d4   :  { %2321 = vmatpush.bf16.msrb.mxu2 %v6920_v38  ;;  %2360 = vmatpush.bf16.msrb.mxu0 %v6929_v35 }
 0x7d7   :  { %2348 = vmatpush.bf16.msrb.mxu3 %v6942_v28  ;;  %2332 = vmatpush.bf16.msra.mxu1 %v6918_v16 }
 0x7d8   :  { %2322 = vmatpush.bf16.msrb.mxu2 %v6923_v14  ;;  %2361 = vmatpush.bf16.msrb.mxu0 %v6932_v23 }
 0x7db   :  { %2349 = vmatpush.bf16.msrb.mxu3 %v6943_v8  ;;  %2333 = vmatpush.bf16.msra.mxu1 %v6921_v18 }
 0x7dc   :  { %2323 = vmatpush.bf16.msrb.mxu2 %v6926_v0  ;;  %2362 = vmatpush.bf16.msrb.mxu0 %v6933_v42 }
 0x7df   :  { %2334 = vmatpush.bf16.msra.mxu1 %v6924_v60 }
 0x7e0   :  { %2387 = vmatpush.bf16.msra.mxu2 %v6927_v27 }
 0x7e3   :  { %2335 = vmatpush.bf16.msra.mxu1 %v6928_v50 }
 0x7e4   :  { %2388 = vmatpush.bf16.msra.mxu2 %v6930_v26 }
 0x7e7   :  { %2336 = vmatpush.bf16.msra.mxu1 %v6931_v22 }
 0x81c   :  { %v2196_v6 = vpop.f32.mrf.mxu0 }
 0x822   :  { %v2157_v46 = vpop.f32.mrf.mxu2 }
 0x824   :  { %v2198_v8 = vpop.f32.mrf.mxu0 }
 0x82a   :  { %v2159_v14 = vpop.f32.mrf.mxu2 }
 0x834   :  { %v2261_v28 = vpop.f32.mrf.mxu0 }
 0x837   :  { %v2170_v0 = vpop.f32.mrf.mxu1 }
 0x838   :  { %v2171_v27 = vadd.f32 %v2170_v0, %v2157_v46 }
 0x839   :  { %v2183_v38 = vpop.f32.mrf.mxu3  ;;  %v2222_v17 = vpop.f32.mrf.mxu2 }
 0x83a   :  { %v2184_v18 = vadd.f32 %v2183_v38, %v2171_v27 }
 0x83c   :  { %v2263_v16 = vpop.f32.mrf.mxu0  ;;  %v5966_v36 = vsub.f32 %v5896_v37, %v2184_v18 }
 0x83e   :  { %v2268_v26 = vmul.f32 %v5966_v36, %v5966_v36 }
 0x83f   :  { %v2172_v50 = vpop.f32.mrf.mxu1 }
 0x840   :  { %v2271_v22 = vpack.c.bf16 %v2268_v26, %v2268_v26 }
 0x841   :  { %v2185_v60 = vpop.f32.mrf.mxu3  ;;  %v2224_v63 = vpop.f32.mrf.mxu2 }
 0x842   :  { %2285 = vmatmul.bf16.vlgmr.msra.gmra.mxu3 %v2271_v22  ;;  %2324 = vmatmul.bf16.vlgmr.msrb.gmra.mxu2 %v2271_v22 }
 0x843   :  { %2368 = vmatpush.bf16.msra.mxu3 %v6883_v40 }
 0x847   :  { %v2235_v14 = vpop.f32.mrf.mxu1  ;;  %2369 = vmatpush.bf16.msra.mxu3 %v6885_v24 }
 0x849   :  { %v2209_v8 = vpop.f32.mrf.mxu3  ;;  %v2248_v16 = vpop.f32.mrf.mxu2 }
 0x84a   :  { %v2210_v46 = vadd.f32 %v2209_v8, %v2196_v6  ;;  %v2249_v38 = vadd.f32 %v2248_v16, %v2235_v14 }
 0x84b   :  { %2370 = vmatpush.bf16.msra.mxu3 %v5273_v31 }
 0x84c   :  { %v2223_v18 = vadd.f32 %v2222_v17, %v2210_v46  ;;  %v2262_v0 = vadd.f32 %v2261_v28, %v2249_v38 }
 0x84e   :  { %v5974_v27 = vsub.f32 %v5920_v47, %v2223_v18  ;;  %v5977_v60 = vsub.f32 %v5910_v19, %v2262_v0 }
 0x84f   :  { %v2237_v6 = vpop.f32.mrf.mxu1  ;;  %2371 = vmatpush.bf16.msra.mxu3 %v5280_v45 }
 0x850   :  { %v2269_v50 = vmul.f32 %v5974_v27, %v5974_v27  ;;  %v2270_v26 = vmul.f32 %v5977_v60, %v5977_v60 }
 0x851   :  { %v2211_v37 = vpop.f32.mrf.mxu3  ;;  %v2250_v63 = vpop.f32.mrf.mxu2 }
 0x852   :  { %v2272_v17 = vpack.c.bf16 %v2269_v50, %v2269_v50  ;;  %v2273_v28 = vpack.c.bf16 %v2270_v26, %v2270_v26 }
 0x853   :  { %2372 = vmatpush.bf16.msra.mxu3 %v5293_v10 }
 0x854   :  { %2298 = vmatmul.bf16.vlgmr.msra.gmra.mxu0 %v2272_v17  ;;  %4541 = vmatmul.msk.bf16.vlgmr.msrb.gmra.mxu1 %vm6944_vm13, %v2273_v28 }
 0x855   :  { %4542 = vmatmul.msk.bf16.vlgmr.msrb.gmra.mxu3 %vm6945_vm4, %v2273_v28  ;;  %4543 = vmatmul.msk.bf16.vlgmr.msra.gmra.mxu2 %vm6946_vm7, %v2273_v28 }
 0x857   :  { %2373 = vmatpush.bf16.msra.mxu3 %v5305_v33 }
 0x85b   :  { %2374 = vmatpush.bf16.msra.mxu3 %v5314_v56 }
 0x85f   :  { %2375 = vmatpush.bf16.msra.mxu3 %v5325_v30 }
 0x863   :  { %2919 = vmatpush.bf16.msrb.mxu3 %v5190_v59 }
 0x864   :  { %2363 = vmatmul.bf16.vlgmr.msrb.gmra.mxu0 %v2271_v22  ;;  %2337 = vmatmul.bf16.vlgmr.msra.gmra.mxu1 %v2272_v17 }
 0x865   :  { %2376 = vmatmul.bf16.vlgmr.msra.gmra.mxu3 %v2272_v17 }
 0x867   :  { %2920 = vmatpush.bf16.msrb.mxu3 %v5201_v5 }
 0x86b   :  { %2921 = vmatpush.bf16.msrb.mxu3 %v5210_v21 }
 0x86f   :  { %2922 = vmatpush.bf16.msrb.mxu3 %v5218_v34 }
 0x873   :  { %2923 = vmatpush.bf16.msrb.mxu3 %v5229_v44 }
 0x877   :  { %2924 = vmatpush.bf16.msrb.mxu3 %v5240_v55 }
 0x87b   :  { %2925 = vmatpush.bf16.msrb.mxu3 %v5248_v62 }
 0x87f   :  { %2926 = vmatpush.bf16.msrb.mxu3 %v5254_v9 }
 0x883   :  { %2984 = vmatpush.bf16.msra.mxu3 %v5256_v13 }
 0x887   :  { %2985 = vmatpush.bf16.msra.mxu3 %v6916_v61 }
 0x88b   :  { %2986 = vmatpush.bf16.msra.mxu3 %v6919_v3 }
 0x88f   :  { %2987 = vmatpush.bf16.msra.mxu3 %v6922_v1 }
 0x893   :  { %2988 = vmatpush.bf16.msra.mxu3 %v6925_v43 }
 0x897   :  { %2989 = vmatpush.bf16.msra.mxu3 %v6929_v35 }
 0x89b   :  { %2990 = vmatpush.bf16.msra.mxu3 %v6932_v23 }
 0x89f   :  { %2991 = vmatpush.bf16.msra.mxu3 %v6933_v42 }
 0x8c5   :  { %v2286_v22 = vpop.f32.mrf.mxu3  ;;  %v2325_v19 = vpop.f32.mrf.mxu2 }
 0x8c6   :  { %v2287_v14 = vadd.f32 1e-05, %v2286_v22  ;;  %v2326_v23 = vadd.f32 1e-05, %v2325_v19 }
 0x8cd   :  { %v2288_v47 = vpop.f32.mrf.mxu3  ;;  %v2327_v8 = vpop.f32.mrf.mxu2 }
 0x8d1   :  { %v2299_v46 = vpop.f32.mrf.mxu0  ;;  %v2312_v38 = vpop.f32.mrf.mxu1 }
 0x8d2   :  { %v2300_v16 = vadd.f32 %v2299_v46, %v2287_v14  ;;  %v4544_v14 = vld [vmem:[%s6677_s2 + $0x6] sm:$0x7] }
 0x8d4   :  { %v2313_v18 = vadd.f32 %v2312_v38, %v2300_v16  ;;  %v2440_v38 = vld [vmem:[#allocation7 + $0x6] sm:$0x7] }
 0x8d6   :  { %4907 = vrsqrt.f32 %v2313_v18  ;;  %vm2400_vm14 = vweird.f32 %v2313_v18 }
 0x8d8   :  { %v2351_v0 = vpop.f32.mrf.mxu3  ;;  %v2390_v50 = vpop.f32.mrf.mxu2 }
 0x8d9   :  { %v2301_v26 = vpop.f32.mrf.mxu0  ;;  %v2314_v37 = vpop.f32.mrf.mxu1 }
 0x8da   :  { %v2430_v26 = vperm.slane %v4544_v14, 0 }
 0x8dc   :  { %v4908_v6 = vpop.eup %4907 }
 0x8dd   :  { %v2395_v17 = vmul.f32 %v4908_v6, %v2313_v18  ;;  %vm2401_vm5 = vweird.f32 %v4908_v6 }
 0x8de   :  { %vm2402_vm3 = vmor %vm2400_vm14, %vm2401_vm5 }
 0x8df   :  { %v2396_v63 = vmul.f32 %v4908_v6, %v2395_v17 }
 0x8e0   :  { %v2353_v28 = vpop.f32.mrf.mxu3  ;;  %v2392_v35 = vpop.f32.mrf.mxu2 }
 0x8e1   :  { %v2397_v42 = vmul.f32 0.5, %v2396_v63  ;;  %v2364_v43 = vpop.f32.mrf.mxu0  ;;  %v2338_v47 = vpop.f32.mrf.mxu1  ;;  %v2442_v63 = vperm.slane %v2440_v38, 0 }
 0x8e2   :  { %v2339_v22 = vadd.f32 %v2338_v47, %v2326_v23  ;;  %v2365_v19 = vadd.f32 1e-05, %v2364_v43 }
 0x8e3   :  { %v2398_v8 = vsub.f32 1.5, %v2397_v42 }
 0x8e4   :  { %v2352_v16 = vadd.f32 %v2351_v0, %v2339_v22 }
 0x8e5   :  { %v2399_v46 = vmul.f32 %v4908_v6, %v2398_v8  ;;  %v2459_v8 = vpop.permute.xlu0 %2458 }
 0x8e6   :  { %4909 = vrsqrt.f32 %v2352_v16  ;;  %vm2410_vm7 = vweird.f32 %v2352_v16 }
 0x8e7   :  { %v2403_v37 = vsel %vm2402_vm3, %v4908_v6, %v2399_v46 }
 0x8e8   :  { %v2424_v35 = vmul.f32 %v2403_v37, %v5966_v36  ;;  %v2377_v17 = vpop.f32.mrf.mxu3 }
 0x8e9   :  { %v2378_v42 = vadd.f32 %v2377_v17, %v2365_v19  ;;  %v2366_v28 = vpop.f32.mrf.mxu0  ;;  %v2340_v23 = vpop.f32.mrf.mxu1 }
 0x8ea   :  { %v2436_v47 = vmul.f32 %v2430_v26, %v2424_v35  ;;  %v2431_v35 = vperm.slane %v4544_v14, 1  ;;  %v2443_v28 = vperm.slane %v2440_v38, 1 }
 0x8eb   :  { %v2391_v1 = vadd.f32 %v2390_v50, %v2378_v42 }
 0x8ec   :  { %v2448_v3 = vadd.f32 %v2442_v63, %v2436_v47  ;;  %v4910_v61 = vpop.eup %4909 }
 0x8ed   :  { %4911 = vrsqrt.f32 %v2391_v1  ;;  %v2405_v18 = vmul.f32 %v4910_v61, %v2352_v16  ;;  %vm2411_vm4 = vweird.f32 %v4910_v61  ;;  %vm2420_vm3 = vweird.f32 %v2391_v1 }
 0x8ee   :  { %vm2451_vm13 = vcmp.gt.f32.partialorder %v2448_v3, 0.0  ;;  %v2461_v0 = vmul.f32 %v2459_v8, %v2448_v3  ;;  %vm2412_vm5 = vmor %vm2410_vm7, %vm2411_vm4  ;;  %vm6948_vm7 = vcmask 400388  }
 0x8ef   :  { %v2406_v22 = vmul.f32 %v4910_v61, %v2405_v18 }
 0x8f0   :  { %v2379_v6 = vpop.f32.mrf.mxu3  ;;  %v2464_v46 = vsel %vm2451_vm13, %v2448_v3, %v2461_v0 }
 0x8f1   :  { %v2469_v43 = vrot.slane %v2464_v46, 4  ;;  %v2407_v13 = vmul.f32 0.5, %v2406_v22  ;;  %v2444_v6 = vperm.slane %v2440_v38, 2  ;;  %v6025_v38 = vld [vmem:[#allocation2 + $0x8] sm:$0xff] }
 0x8f3   :  { %v4912_v36 = vpop.eup %4911  ;;  %2471 = vrot.lane.b32.xlu1 %v2469_v43, %s5055_s3  ;;  %v2408_v37 = vsub.f32 1.5, %v2407_v13  ;;  %v2432_v13 = vperm.slane %v4544_v14, 2  ;;  %v2593_v14 = vld [vmem:[#allocation2 + $0x10] sm:$0xff] }
 0x8f4   :  { %v2415_v19 = vmul.f32 %v4912_v36, %v2391_v1  ;;  %vm2421_vm14 = vweird.f32 %v4912_v36 }
 0x8f5   :  { %v2409_v26 = vmul.f32 %v4910_v61, %v2408_v37  ;;  %vm2422_vm13 = vmor %vm2420_vm3, %vm2421_vm14  ;;  %vm6949_vm14 = vcmask 1048348   ;;  %vm6950_vm3 = vcmask 678912  }
 0x8f6   :  { %v2416_v50 = vmul.f32 %v4912_v36, %v2415_v19  ;;  %v2574_v19 = vld [vmem:[#allocation2 + $0x18] sm:$0xff] }
 0x8f7   :  { %v2413_v17 = vsel %vm2412_vm5, %v4910_v61, %v2409_v26  ;;  %vm2546_vm5 = vcmask 900096  }
 0x8f8   :  { %v2417_v63 = vmul.f32 0.5, %v2416_v50  ;;  %v2425_v42 = vmul.f32 %v2413_v17, %v5974_v27  ;;  %v2597_v50 = vpack.c.bf16 %v2574_v19, %v2593_v14 }
 0x8fa   :  { %v2418_v23 = vsub.f32 1.5, %v2417_v63  ;;  %v2437_v3 = vmul.f32 %v2431_v35, %v2425_v42  ;;  %v6032_v35 = vld [vmem:[#allocation2 + $0x20] sm:$0xff] }
 0x8fb   :  { %v2658_v17 = vpack.c.bf16 %v5767_v4, %v6032_v35 }
 0x8fc   :  { %v2419_v47 = vmul.f32 %v4912_v36, %v2418_v23  ;;  %v2449_v18 = vadd.f32 %v2443_v28, %v2437_v3 }
 0x8fe   :  { %v2423_v0 = vsel %vm2422_vm13, %v4912_v36, %v2419_v47  ;;  %vm2452_vm9 = vcmp.gt.f32.partialorder %v2449_v18, 0.0  ;;  %v2462_v16 = vmul.f32 %v2459_v8, %v2449_v18  ;;  %vm6951_vm13 = vcmask 941060  }
 0x8ff   :  { %v2426_v22 = vmul.f32 %v2423_v0, %v5977_v60  ;;  %v4926_v60 = vld [vmem:[#allocation2 + $0x10] sm:$0xff] }
 0x900   :  { %v2465_v46 = vsel %vm2452_vm9, %v2449_v18, %v2462_v16  ;;  %v2577_v36 = vpack.c.bf16 %v2574_v19, %v4926_v60  ;;  %vm6947_vm9 = vcmask 1047820   ;;  %v6043_v18 = vld [vmem:[#allocation2 + $0x40] sm:$0xff] }
 0x901   :  { %v2438_v61 = vmul.f32 %v2432_v13, %v2426_v22  ;;  %v2470_v43 = vrot.slane %v2465_v46, 4 }
 0x903   :  { %v2450_v37 = vadd.f32 %v2444_v6, %v2438_v61  ;;  %2482 = vrot.lane.b32.xlu0 %v2470_v43, %s5056_s11  ;;  %2473 = vrot.lane.b32.xlu2 %v2470_v43, %s5055_s3 }
 0x905   :  { %vm2453_vm4 = vcmp.gt.f32.partialorder %v2450_v37, 0.0  ;;  %v2463_v27 = vmul.f32 %v2459_v8, %v2450_v37  ;;  %v6029_v8 = vpack.c.bf16 %v2593_v14, %v6025_v38 }
 0x907   :  { %v2466_v1 = vsel %vm2453_vm4, %v2450_v37, %v2463_v27  ;;  %vm6952_vm4 = vcmask 777216  }
 0x908   :  { %v2481_v26 = vrot.slane %v2466_v1, 4 }
 0x90a   :  { %2484 = vrot.lane.b32.xlu1 %v2481_v26, %s5056_s11 }
 0x90b   :  { %2581 = vrot.lane.b32.xlu0 %v2577_v36, %s5042_s16  ;;  %2601 = vrot.lane.b32.xlu2 %v2597_v50, %s5047_s21 }
 0x912   :  { %2723 = vrot.lane.b32.xlu1 %v5771_v7, %s5046_s20 }
 0x913   :  { %2683 = vrot.lane.b32.xlu0 %v5771_v7, %s5053_s27  ;;  %2703 = vrot.lane.b32.xlu2 %v5771_v7, %s5045_s19 }
 0x91a   :  { %2561 = vrot.lane.b32.xlu1 %v2597_v50, %s5050_s24 }
 0x91b   :  { %2540 = vrot.lane.b32.xlu2 %v6029_v8, %s5068_s18 }
 0x922   :  { %2662 = vrot.lane.b32.xlu1 %v2658_v17, %s5069_s30 }
 0x95d   :  { %v2474_v63 = vpop.permute.xlu2 %2473 }
 0x965   :  { %v2472_v7 = vpop.permute.xlu1 %2471  ;;  %v2602_v42 = vpop.permute.xlu2 %2601 }
 0x966   :  { %v2475_v28 = vsel %vm134_vm8, %v2472_v7, %v2474_v63  ;;  %2478 = vst.msk [vmem:[#allocation2 + $0x50] sm:$0xf0] %vm6947_vm9, %v2472_v7  ;;  %v2605_v23 = vrot.slane %v2602_v42, 4  ;;  %vm6953_vm9 = vcmask 367616  }
 0x967   :  { %2479 = vst.msk [vmem:[#allocation2 + $0x58] sm:$0xf0] %vm6948_vm7, %v2475_v28  ;;  %vm6954_vm7 = vcmask 359424  }
 0x968   :  { %v2607_v3 = vsel %vm314_vm10, %v2602_v42, %v2605_v23 }
 0x969   :  { %2611 = vst.msk [vmem:[#allocation3 + $0x78] sm:$0xff] %vm5525_vm15, %v2607_v3 }
 0x96d   :  { %v2535_v47 = vld [vmem:[#allocation2 + $0x50] sm:$0xff]  ;;  %v2704_v4 = vpop.permute.xlu2 %2703 }
 0x96e   :  { %v2537_v13 = vpack.c.bf16 %v2535_v47, %v6043_v18  ;;  %v2556_v0 = vld [vmem:[#allocation2 + $0x58] sm:$0xff]  ;;  %v2707_v27 = vrot.slane %v2704_v4, 4 }
 0x96f   :  { %v6046_v22 = vpack.c.bf16 %v2556_v0, %v2535_v47 }
 0x970   :  { %2542 = vrot.lane.b32.xlu0 %v2537_v13, %s5068_s18  ;;  %v2709_v14 = vsel %vm6953_vm9, %v2704_v4, %v2707_v27  ;;  %vm6958_vm9 = vcmask 777216  }
 0x971   :  { %2563 = vrot.lane.b32.xlu2 %v6046_v22, %s5050_s24  ;;  %2583 = vrot.lane.b32.xlu1 %v6046_v22, %s5042_s16 }
 0x975   :  { %v2483_v16 = vpop.permute.xlu0 %2482  ;;  %v2541_v6 = vpop.permute.xlu2 %2540 }
 0x976   :  { %2489 = vst.msk [vmem:[#allocation2 + $0x68] sm:$0xf0] %vm6949_vm14, %v2483_v16  ;;  %v2544_v46 = vrot.slane %v2541_v6, 4  ;;  %vm6955_vm14 = vcmask 785408  }
 0x978   :  { %2603 = vrot.lane.b32.xlu0 %v6046_v22, %s5047_s21  ;;  %v2547_v61 = vsel %vm2546_vm5, %v2541_v6, %v2544_v46 }
 0x979   :  { %2521 = vrot.lane.b32.xlu1 %v2537_v13, %s5070_s22  ;;  %2551 = vst.msk [vmem:[#allocation3 + $0x30] sm:$0xff] %vm5525_vm15, %v2547_v61 }
 0x97c   :  { %v2485_v43 = vpop.permute.xlu1 %2484 }
 0x97d   :  { %v2486_v37 = vsel %vm6950_vm3, %v2483_v16, %v2485_v43  ;;  %v2582_v1 = vpop.permute.xlu0 %2581  ;;  %v2717_v50 = vld [vmem:[#allocation2 + $0x68] sm:$0xff]  ;;  %vm6956_vm3 = vcmask 375808  }
 0x97e   :  { %2490 = vst.msk [vmem:[#allocation2 + $0x70] sm:$0xf0] %vm6951_vm13, %v2486_v37  ;;  %v2585_v19 = vrot.slane %v2582_v1, 4  ;;  %v2659_v47 = vpack.c.bf16 %v2717_v50, %v6043_v18  ;;  %v6088_v16 = vld [vmem:[#allocation2 + $0x28] sm:$0xff]  ;;  %vm2668_vm13 = vcmask 490496  }
 0x97f   :  { %v2637_v61 = vpack.c.bf16 %v6088_v16, %v6032_v35 }
 0x980   :  { %2519 = vrot.lane.b32.xlu0 %v6029_v8, %s5070_s22  ;;  %v2587_v26 = vsel %vm6952_vm4, %v2582_v1, %v2585_v19  ;;  %vm6957_vm4 = vmmov %vm6955_vm14 }
 0x981   :  { %2591 = vst.msk [vmem:[#allocation3 + $0x60] sm:$0xff] %vm5525_vm15, %v2587_v26 }
 0x982   :  { %2713 = vst.msk [vmem:[#allocation3 + $0x64] sm:$0xff] %vm5533_vm0, %v2709_v14 }
 0x984   :  { %v2724_v60 = vpop.permute.xlu1 %2723 }
 0x985   :  { %v2727_v36 = vrot.slane %v2724_v60, 4  ;;  %v2718_v17 = vld [vmem:[#allocation2 + $0x70] sm:$0xff]  ;;  %v2684_v42 = vpop.permute.xlu0 %2683 }
 0x986   :  { %v6067_v63 = vpack.c.bf16 %v2718_v17, %v2717_v50  ;;  %v2687_v28 = vrot.slane %v2684_v42, 4 }
 0x987   :  { %v2729_v7 = vsel %vm6954_vm7, %v2724_v60, %v2727_v36  ;;  %vm2525_vm7 = vcmask 908288  }
 0x988   :  { %2733 = vst.msk [vmem:[#allocation3 + $0x7c] sm:$0xff] %vm5533_vm0, %v2729_v7  ;;  %2725 = vrot.lane.b32.xlu2 %v6067_v63, %s5046_s20  ;;  %2685 = vrot.lane.b32.xlu1 %v6067_v63, %s5053_s27  ;;  %v2689_v0 = vsel %vm6956_vm3, %v2684_v42, %v2687_v28 }
 0x989   :  { %2705 = vrot.lane.b32.xlu0 %v6067_v63, %s5045_s19 }
 0x98c   :  { %v2562_v23 = vpop.permute.xlu1 %2561 }
 0x98d   :  { %v2565_v3 = vrot.slane %v2562_v23, 4 }
 0x98f   :  { %v2567_v4 = vsel %vm6955_vm14, %v2562_v23, %v2565_v3  ;;  %vm2647_vm14 = vcmask 498688  }
 0x990   :  { %2571 = vst.msk [vmem:[#allocation3 + $0x48] sm:$0xff] %vm5525_vm15, %v2567_v4  ;;  %2664 = vrot.lane.b32.xlu2 %v2659_v47, %s5069_s30  ;;  %2499 = vrot.lane.b32.xlu1 %v6029_v8, %s5043_s17 }
 0x991   :  { %2693 = vst.msk [vmem:[#allocation3 + $0x4c] sm:$0xff] %vm5533_vm0, %v2689_v0  ;;  %2643 = vrot.lane.b32.xlu0 %v2659_v47, %s5071_s23 }
 0x994   :  { %v2663_v6 = vpop.permute.xlu1 %2662 }
 0x995   :  { %v2666_v46 = vrot.slane %v2663_v6, 4 }
 0x997   :  { %v2669_v43 = vsel %vm2668_vm13, %v2663_v6, %v2666_v46 }
 0x998   :  { %2673 = vst.msk [vmem:[#allocation3 + $0x34] sm:$0xff] %vm5533_vm0, %v2669_v43  ;;  %2623 = vrot.lane.b32.xlu1 %v2659_v47, %s5052_s26  ;;  %2641 = vrot.lane.b32.xlu2 %v2637_v61, %s5071_s23 }
 0x999   :  { %2621 = vrot.lane.b32.xlu0 %v2637_v61, %s5052_s26 }
 0x9a0   :  { %2501 = vrot.lane.b32.xlu2 %v2537_v13, %s5043_s17 }
 0x9cb   :  { %v2564_v8 = vpop.permute.xlu2 %2563 }
 0x9cc   :  { %v2566_v37 = vrot.slane %v2564_v8, 4 }
 0x9ce   :  { %v2568_v27 = vsel %vm6957_vm4, %v2564_v8, %v2566_v37  ;;  %v4609_v37 = vld [vmem:[#allocation3 + $0x78] sm:$0xf]  ;;  %vm6961_vm4 = vcmask 367616  }
 0x9cf   :  { %2572 = vst.msk [vmem:[#allocation3 + $0x54] sm:$0xff] %vm5525_vm15, %v2568_v27  ;;  %v4819_v27 = vld [vmem:[#allocation3 + $0x7c] sm:$0xf] }
 0x9e2   :  { %v2726_v35 = vpop.permute.xlu2 %2725  ;;  %v2543_v1 = vpop.permute.xlu0 %2542 }
 0x9e3   :  { %v2545_v19 = vrot.slane %v2543_v1, 4  ;;  %v2584_v26 = vpop.permute.xlu1 %2583  ;;  %v2728_v17 = vrot.slane %v2726_v35, 4 }
 0x9e4   :  { %v2586_v14 = vrot.slane %v2584_v26, 4 }
 0x9e5   :  { %v2548_v60 = vsel %vm2546_vm5, %v2543_v1, %v2545_v19  ;;  %vm6959_vm5 = vcmask 359424   ;;  %v4617_v19 = vld [vmem:[#allocation3 + $0x80] sm:$0xf] }
 0x9e6   :  { %2552 = vst.msk [vmem:[#allocation3 + $0x3c] sm:$0xff] %vm5525_vm15, %v2548_v60  ;;  %v2588_v36 = vsel %vm6958_vm9, %v2584_v26, %v2586_v14  ;;  %v2730_v0 = vsel %vm6959_vm5, %v2726_v35, %v2728_v17 }
 0x9e7   :  { %2592 = vst.msk [vmem:[#allocation3 + $0x6c] sm:$0xff] %vm5525_vm15, %v2588_v36 }
 0x9ea   :  { %v2665_v13 = vpop.permute.xlu2 %2664  ;;  %v2604_v50 = vpop.permute.xlu0 %2603 }
 0x9eb   :  { %v2667_v7 = vrot.slane %v2665_v13, 4  ;;  %v2606_v42 = vrot.slane %v2604_v50, 4  ;;  %v2522_v28 = vpop.permute.xlu1 %2521 }
 0x9ec   :  { %v2524_v23 = vrot.slane %v2522_v28, 4 }
 0x9ed   :  { %v2670_v3 = vsel %vm2668_vm13, %v2665_v13, %v2667_v7  ;;  %v2608_v47 = vsel %vm314_vm10, %v2604_v50, %v2606_v42  ;;  %v4597_v42 = vld [vmem:[#allocation3 + $0x60] sm:$0xf]  ;;  %vm6960_vm13 = vcmask 916480  }
 0x9ee   :  { %2674 = vst.msk [vmem:[#allocation3 + $0x40] sm:$0xff] %vm5533_vm0, %v2670_v3  ;;  %v2527_v4 = vsel %vm2525_vm7, %v2522_v28, %v2524_v23  ;;  %v4817_v50 = vld [vmem:[#allocation3 + $0x68] sm:$0xf0]  ;;  %v3250_v28 = vld [vmem:[#allocation2 + $0x80] sm:$0xf]  ;;  %vm6962_vm9 = vmmov %vm6960_vm13 }
 0x9ef   :  { %2612 = vst.msk [vmem:[#allocation3 + $0x84] sm:$0xff] %vm5525_vm15, %v2608_v47  ;;  %v3251_v23 = vld [vmem:[#allocation2 + $0x88] sm:$0xf] }
 0x9f0   :  { %2734 = vst.msk [vmem:[#allocation3 + $0x88] sm:$0xff] %vm5533_vm0, %v2730_v0  ;;  %v4598_v0 = vor.u32 %v4817_v50, %v4597_v42  ;;  %v4816_v42 = vld [vmem:[#allocation3 + $0x64] sm:$0xf] }
 0x9f1   :  { %2531 = vst.msk [vmem:[#allocation3 + $0x24] sm:$0xff] %vm5525_vm15, %v2527_v4 }
 0x9f2   :  { %v2642_v6 = vpop.permute.xlu2 %2641  ;;  %v2520_v46 = vpop.permute.xlu0 %2519 }
 0x9f3   :  { %v2645_v61 = vrot.slane %v2642_v6, 4  ;;  %v2523_v43 = vrot.slane %v2520_v46, 4 }
 0x9f5   :  { %v2526_v8 = vsel %vm2525_vm7, %v2520_v46, %v2523_v43  ;;  %v2648_v35 = vsel %vm2647_vm14, %v2642_v6, %v2645_v61  ;;  %v4814_v46 = vld [vmem:[#allocation3 + $0x50] sm:$0xf0]  ;;  %vm6963_vm7 = vcmask 506880  }
 0x9f6   :  { %2530 = vst.msk [vmem:[#allocation3 + $0x18] sm:$0xff] %vm5525_vm15, %v2526_v8  ;;  %v4820_v1 = vld [vmem:[#allocation3 + $0x80] sm:$0xf0]  ;;  %v3254_v8 = vpack.c.bf16 %v3251_v23, %v3250_v28  ;;  %vm6964_vm5 = vmmov %vm6963_vm7 }
 0x9f7   :  { %2652 = vst.msk [vmem:[#allocation3 + $0x1c] sm:$0xff] %vm5533_vm0, %v2648_v35  ;;  %v4610_v26 = vor.u32 %v4820_v1, %v4609_v37  ;;  %v4611_v14 = vld [vmem:[#allocation3 + $0x84] sm:$0xf0]  ;;  %v4821_v60 = vld [vmem:[#allocation3 + $0x88] sm:$0xf0] }
 0x9f8   :  { %v4614_v36 = vor.u32 %v4819_v27, %v4611_v14  ;;  %v4618_v13 = vor.u32 %v4821_v60, %v4617_v19  ;;  %v4585_v27 = vld [vmem:[#allocation3 + $0x48] sm:$0xf]  ;;  %v4811_v1 = vld [vmem:[#allocation3 + $0x38] sm:$0xf0]  ;;  %v4573_v60 = vld [vmem:[#allocation3 + $0x30] sm:$0xf] }
 0x9f9   :  { %2863 = vmatpush.bf16.msrb.mxu1 %v4610_v26  ;;  %v4586_v35 = vor.u32 %v4814_v46, %v4585_v27  ;;  %v4574_v50 = vor.u32 %v4811_v1, %v4573_v60  ;;  %v4808_v23 = vld [vmem:[#allocation3 + $0x20] sm:$0xf0]  ;;  %v4593_v1 = vld [vmem:[#allocation3 + $0x50] sm:$0xf] }
 0x9fa   :  { %2876 = vmatpush.bf16.msrb.mxu2 %v4614_v36  ;;  %2889 = vmatpush.bf16.msra.mxu0 %v4618_v13  ;;  %v2686_v17 = vpop.permute.xlu1 %2685  ;;  %v2502_v7 = vpop.permute.xlu2 %2501 }
 0x9fb   :  { %v2688_v3 = vrot.slane %v2686_v17, 4  ;;  %v2504_v47 = vrot.slane %v2502_v7, 4  ;;  %v2706_v4 = vpop.permute.xlu0 %2705 }
 0x9fc   :  { %v2708_v6 = vrot.slane %v2706_v4, 4 }
 0x9fd   :  { %v2690_v61 = vsel %vm6956_vm3, %v2686_v17, %v2688_v3  ;;  %v2506_v43 = vsel %vm6960_vm13, %v2502_v7, %v2504_v47  ;;  %2864 = vmatpush.bf16.msrb.mxu1 %v4598_v0  ;;  %v4561_v19 = vld [vmem:[#allocation3 + $0x18] sm:$0xf]  ;;  %v4605_v3 = vld [vmem:[#allocation3 + $0x68] sm:$0xf] }
 0x9fe   :  { %2694 = vst.msk [vmem:[#allocation3 + $0x58] sm:$0xff] %vm5533_vm0, %v2690_v61  ;;  %v2710_v37 = vsel %vm6961_vm4, %v2706_v4, %v2708_v6  ;;  %v6134_v26 = vld [vmem:[#allocation3 + $0x1c] sm:$0xf]  ;;  %v4562_v47 = vor.u32 %v4808_v23, %v4561_v19  ;;  %v4810_v23 = vld [vmem:[#allocation3 + $0x34] sm:$0xf]  ;;  %vm6983_vm4 = vcmask 261120  }
 0x9ff   :  { %2510 = vst.msk [vmem:[#allocation3 + $0xc] sm:$0xff] %vm5525_vm15, %v2506_v43 }
 0xa00   :  { %2714 = vst.msk [vmem:[#allocation3 + $0x70] sm:$0xff] %vm5533_vm0, %v2710_v37 }
 0xa01   :  { %2865 = vmatpush.bf16.msrb.mxu1 %v4586_v35  ;;  %3257 = vst.msk [vmem:[#allocation3 + $0x18] sm:$0x33] %vm5135_vm6, %v3254_v8  ;;  %v4813_v35 = vld [vmem:[#allocation3 + $0x4c] sm:$0xf] }
 0xa02   :  { %v2500_v14 = vpop.permute.xlu1 %2499 }
 0xa03   :  { %v2503_v36 = vrot.slane %v2500_v14, 4  ;;  %v2644_v13 = vpop.permute.xlu0 %2643 }
 0xa04   :  { %v2646_v17 = vrot.slane %v2644_v13, 4 }
 0xa05   :  { %v2505_v7 = vsel %vm6962_vm9, %v2500_v14, %v2503_v36  ;;  %2866 = vmatpush.bf16.msrb.mxu1 %v4574_v50  ;;  %v4587_v61 = vld [vmem:[#allocation3 + $0x54] sm:$0xf0]  ;;  %v4815_v43 = vld [vmem:[#allocation3 + $0x58] sm:$0xf0]  ;;  %vm6984_vm9 = vmmov %vm6983_vm4 }
 0xa06   :  { %2509 = vst.msk [vmem:[#allocation3] sm:$0xff] %vm5525_vm15, %v2505_v7  ;;  %v2649_v28 = vsel %vm2647_vm14, %v2644_v13, %v2646_v17  ;;  %v4590_v60 = vor.u32 %v4813_v35, %v4587_v61  ;;  %v4594_v36 = vor.u32 %v4815_v43, %v4593_v1  ;;  %v4575_v13 = vld [vmem:[#allocation3 + $0x3c] sm:$0xf0]  ;;  %v4805_v17 = vld [vmem:[#allocation3 + $0x8] sm:$0xf0]  ;;  %vm6965_vm14 = vcmask 785408  }
 0xa07   :  { %2653 = vst.msk [vmem:[#allocation3 + $0x28] sm:$0xff] %vm5533_vm0, %v2649_v28  ;;  %v4599_v4 = vld [vmem:[#allocation3 + $0x6c] sm:$0xf0]  ;;  %v4818_v0 = vld [vmem:[#allocation3 + $0x70] sm:$0xf0]  ;;  %v6154_v61 = vld [vmem:[#allocation2] sm:$0xff]  ;;  %v6162_v35 = vpack.c.bf16 %v6043_v18, %v6043_v18 }
 0xa08   :  { %v4602_v6 = vor.u32 %v4816_v42, %v4599_v4  ;;  %v4606_v46 = vor.u32 %v4818_v0, %v4605_v3  ;;  %v4812_v7 = vld [vmem:[#allocation3 + $0x40] sm:$0xf0]  ;;  %v4581_v3 = vld [vmem:[#allocation3 + $0x38] sm:$0xf]  ;;  %v4546_v0 = vld [vmem:[%s6676_s1 + $0x6] sm:$0x3] }
 0xa09   :  { %2867 = vmatpush.bf16.msrb.mxu1 %v4562_v47  ;;  %v4578_v47 = vor.u32 %v4810_v23, %v4575_v13  ;;  %v4582_v4 = vor.u32 %v4812_v7, %v4581_v3  ;;  %v4569_v43 = vld [vmem:[#allocation3 + $0x20] sm:$0xf]  ;;  %vm6966_vm3 = vmmov %vm6965_vm14  ;;  %v6968_v13 = vld [vmem:[#allocation22_spill] sm:$0xff] }
 0xa0a   :  { %2877 = vmatpush.bf16.msrb.mxu2 %v4602_v6  ;;  %2890 = vmatpush.bf16.msra.mxu0 %v4606_v46  ;;  %v2624_v8 = vpop.permute.xlu1 %2623  ;;  %vm6967_vm13 = vmmov %vm6966_vm3  ;;  %v6972_v7 = vld [vmem:[#allocation27_spill] sm:$0xff]  ;;  %v6975_v23 = vld [vmem:[#allocation30_spill] sm:$0xff] }
 0xa0b   :  { %v2626_v37 = vrot.slane %v2624_v8, 4  ;;  %v2622_v27 = vpop.permute.xlu0 %2621  ;;  %v6976_v3 = vld [vmem:[#allocation41_spill] sm:$0xff] }
 0xa0c   :  { %v2625_v14 = vrot.slane %v2622_v27, 4 }
 0xa0d   :  { %v2628_v19 = vsel %vm6963_vm7, %v2624_v8, %v2626_v37  ;;  %v4549_v50 = vld [vmem:[#allocation3] sm:$0xf]  ;;  %v3252_v8 = vpack.c.bf16 %v6025_v38, %v6154_v61  ;;  %vm6985_vm7 = vmmov %vm6983_vm4 }
 0xa0e   :  { %2632 = vst.msk [vmem:[#allocation3 + $0x10] sm:$0xff] %vm5533_vm0, %v2628_v19  ;;  %v2627_v42 = vsel %vm6964_vm5, %v2622_v27, %v2625_v14  ;;  %2878 = vmatpush.bf16.msrb.mxu2 %v4590_v60  ;;  %2891 = vmatpush.bf16.msra.mxu0 %v4594_v36  ;;  %v4550_v28 = vor.u32 %v4805_v17, %v4549_v50  ;;  %v4563_v6 = vld [vmem:[#allocation3 + $0x24] sm:$0xf0]  ;;  %v4809_v46 = vld [vmem:[#allocation3 + $0x28] sm:$0xf0]  ;;  %v6969_v19 = vld [vmem:[#allocation25_spill] sm:$0xff] }
 0xa0f   :  { %2631 = vst.msk [vmem:[#allocation3 + $0x4] sm:$0xff] %vm5533_vm0, %v2627_v42  ;;  %v4566_v37 = vor.u32 %v6134_v26, %v4563_v6  ;;  %v4570_v27 = vor.u32 %v4809_v46, %v4569_v43  ;;  %v6970_v50 = vld [vmem:[#allocation40_spill] sm:$0xff]  ;;  %v6971_v17 = vld [vmem:[#allocation34_spill] sm:$0xff]  ;;  %v6973_v42 = vld [vmem:[#allocation37_spill] sm:$0xff] }
 0xa10   :  { %2868 = vmatpush.bf16.msrb.mxu1 %v4550_v28  ;;  %v6974_v28 = vld [vmem:[#allocation44_spill] sm:$0xff]  ;;  %v6980_v6 = vld [vmem:[#allocation49_spill] sm:$0xff]  ;;  %vm6994_vm5 = vmmov %vm6983_vm4 }
 0xa12   :  { %2879 = vmatpush.bf16.msrb.mxu2 %v4578_v47  ;;  %2892 = vmatpush.bf16.msra.mxu0 %v4582_v4  ;;  %v6977_v47 = vld [vmem:[#allocation46_spill] sm:$0xff]  ;;  %v6978_v4 = vld [vmem:[#allocation31_spill] sm:$0xff] }
 0xa13   :  { %4619 = vmatmul.msk.bf16.vlgmr.msrb.gmra.mxu1 %vm6965_vm14, %v4546_v0  ;;  %vm6995_vm14 = vmmov %vm6983_vm4 }
 0xa14   :  { %2906 = vmatpush.bf16.msra.mxu1 %v5181_v48 }
 0xa15   :  { %v4551_v1 = vld [vmem:[#allocation3 + $0xc] sm:$0xf0]  ;;  %v4806_v14 = vld [vmem:[#allocation3 + $0x10] sm:$0xf0] }
 0xa16   :  { %2880 = vmatpush.bf16.msrb.mxu2 %v4566_v37  ;;  %2893 = vmatpush.bf16.msra.mxu0 %v4570_v27  ;;  %v4804_v60 = vld [vmem:[#allocation3 + $0x4] sm:$0xf]  ;;  %3256 = vst.msk [vmem:[#allocation3 + $0xc] sm:$0xff] %vm5525_vm15, %v6162_v35  ;;  %v4557_v36 = vld [vmem:[#allocation3 + $0x8] sm:$0xf]  ;;  %v6982_v27 = vld [vmem:[#allocation51_spill] sm:$0xff] }
 0xa17   :  { %v4554_v38 = vor.u32 %v4804_v60, %v4551_v1  ;;  %3255 = vst.msk [vmem:[#allocation3] sm:$0xff] %vm5525_vm15, %v3252_v8  ;;  %v4558_v26 = vor.u32 %v4806_v14, %v4557_v36  ;;  %v6981_v8 = vld [vmem:[#allocation50_spill] sm:$0xff] }
 0xa18   :  { %2907 = vmatpush.bf16.msra.mxu1 %v5186_v54 }
 0xa1a   :  { %2881 = vmatpush.bf16.msrb.mxu2 %v4554_v38  ;;  %2894 = vmatpush.bf16.msra.mxu0 %v4558_v26 }
 0xa1c   :  { %2908 = vmatpush.bf16.msra.mxu1 %v5194_v2 }
 0xa1d   :  { %4620 = vmatmul.msk.bf16.vlgmr.msrb.gmra.mxu2 %vm6966_vm3, %v4546_v0  ;;  %4621 = vmatmul.msk.bf16.vlgmr.msra.gmra.mxu0 %vm6967_vm13, %v4546_v0  ;;  %v6979_v0 = vld [vmem:[#allocation48_spill] sm:$0xff]  ;;  %vm6996_vm3 = vmmov %vm6983_vm4 }
 0xa1e   :  { %2945 = vmatpush.bf16.msrb.mxu0 %v5207_v20  ;;  %2938 = vmatpush.bf16.msra.mxu2 %v5234_v51 }
 0xa20   :  { %2909 = vmatpush.bf16.msra.mxu1 %v6937_v49 }
 0xa22   :  { %2946 = vmatpush.bf16.msrb.mxu0 %v5215_v32  ;;  %2939 = vmatpush.bf16.msra.mxu2 %v5283_v53 }
 0xa24   :  { %2910 = vmatpush.bf16.msra.mxu1 %v6938_v12 }
 0xa26   :  { %2958 = vmatpush.bf16.msrb.mxu2 %v5287_v57  ;;  %2947 = vmatpush.bf16.msrb.mxu0 %v5226_v41 }
 0xa28   :  { %2911 = vmatpush.bf16.msra.mxu1 %v6939_v29 }
 0xa2a   :  { %2959 = vmatpush.bf16.msrb.mxu2 %v5295_v11  ;;  %2948 = vmatpush.bf16.msrb.mxu0 %v5237_v52 }
 0xa2c   :  { %2912 = vmatpush.bf16.msra.mxu1 %v6968_v13 }
 0xa2e   :  { %2960 = vmatpush.bf16.msrb.mxu2 %v5307_v39  ;;  %2949 = vmatpush.bf16.msrb.mxu0 %v6969_v19 }
 0xa30   :  { %2913 = vmatpush.bf16.msra.mxu1 %v6971_v17 }
 0xa32   :  { %2961 = vmatpush.bf16.msrb.mxu2 %v6970_v50  ;;  %2950 = vmatpush.bf16.msrb.mxu0 %v6972_v7 }
 0xa34   :  { %2977 = vmatpush.bf16.msrb.mxu1 %v6973_v42 }
 0xa36   :  { %2962 = vmatpush.bf16.msrb.mxu2 %v6974_v28  ;;  %2951 = vmatpush.bf16.msrb.mxu0 %v6975_v23 }
 0xa38   :  { %2978 = vmatpush.bf16.msrb.mxu1 %v6976_v3 }
 0xa3a   :  { %2963 = vmatpush.bf16.msrb.mxu2 %v6977_v47  ;;  %2952 = vmatpush.bf16.msrb.mxu0 %v6978_v4 }
 0xa3e   :  { %2997 = vmatpush.bf16.msra.mxu0 %v6883_v40  ;;  %2964 = vmatpush.bf16.msrb.mxu2 %v6979_v0 }
 0xa42   :  { %2998 = vmatpush.bf16.msra.mxu0 %v6885_v24  ;;  %2965 = vmatpush.bf16.msrb.mxu2 %v6980_v6 }
 0xa46   :  { %2999 = vmatpush.bf16.msra.mxu0 %v5273_v31 }
 0xa4a   :  { %3000 = vmatpush.bf16.msra.mxu0 %v5280_v45 }
 0xa4e   :  { %3001 = vmatpush.bf16.msra.mxu0 %v5293_v10 }
 0xa52   :  { %3002 = vmatpush.bf16.msra.mxu0 %v5305_v33 }
 0xa56   :  { %3003 = vmatpush.bf16.msra.mxu0 %v5314_v56 }
 0xa5a   :  { %3004 = vmatpush.bf16.msra.mxu0 %v5325_v30 }
 0xa90   :  { %v6206_v46 = vpop.f32.mrf.mxu1 }
 0xa91   :  { %v2900_v43 = vpack.c.bf16 %v6206_v46, %v6206_v46 }
 0xa93   :  { %2914 = vmatmul.bf16.vlgmr.msra.gmra.mxu1 %v2900_v43  ;;  %2953 = vmatmul.bf16.vlgmr.msrb.gmra.mxu0 %v2900_v43 }
 0xa94   :  { %3016 = vmatpush.bf16.msra.mxu1 %v6981_v8  ;;  %3074 = vmatpush.bf16.msrb.mxu0 %v5207_v20 }
 0xa98   :  { %v2872_v37 = vpop.f32.mrf.mxu1  ;;  %3017 = vmatpush.bf16.msra.mxu1 %v6982_v27  ;;  %3075 = vmatpush.bf16.msrb.mxu0 %v5215_v32 }
 0xa99   :  { %v6987_v37 = vld [vmem:[#allocation35_spill] sm:$0xff] }
 0xa9a   :  { %v6214_v1 = vpop.f32.mrf.mxu0 }
 0xa9b   :  { %v2902_v14 = vpack.c.bf16 %v6214_v1, %v6214_v1 }
 0xa9c   :  { %3076 = vmatpush.bf16.msrb.mxu0 %v5226_v41 }
 0xa9d   :  { %4622 = vmatmul.msk.bf16.vlgmr.msra.gmra.mxu2 %vm6983_vm4, %v2902_v14 }
 0xa9e   :  { %3035 = vmatpush.bf16.msra.mxu2 %v5181_v48 }
 0xaa0   :  { %v6221_v60 = vpop.f32.mrf.mxu2  ;;  %3077 = vmatpush.bf16.msrb.mxu0 %v5237_v52 }
 0xaa1   :  { %v2901_v36 = vpack.c.bf16 %v6221_v60, %v6221_v60 }
 0xaa2   :  { %v2898_v38 = vpop.f32.mrf.mxu0  ;;  %3036 = vmatpush.bf16.msra.mxu2 %v5186_v54 }
 0xaa3   :  { %2927 = vmatmul.bf16.vlgmr.msrb.gmra.mxu3 %v2901_v36  ;;  %4623 = vmatmul.msk.bf16.vlgmr.msrb.gmra.mxu1 %vm6984_vm9, %v2902_v14  ;;  %v6990_v38 = vld [vmem:[#allocation39_spill] sm:$0xff] }
 0xaa4   :  { %3005 = vmatmul.bf16.vlgmr.msra.gmra.mxu0 %v2901_v36  ;;  %3048 = vmatpush.bf16.msrb.mxu1 %v5190_v59 }
 0xaa5   :  { %3078 = vmatpush.bf16.msrb.mxu0 %v6969_v19  ;;  %3067 = vmatpush.bf16.msrb.mxu3 %v5234_v51 }
 0xaa6   :  { %3037 = vmatpush.bf16.msra.mxu2 %v5194_v2 }
 0xaa8   :  { %v2885_v26 = vpop.f32.mrf.mxu2  ;;  %3049 = vmatpush.bf16.msrb.mxu1 %v5201_v5 }
 0xaa9   :  { %3079 = vmatpush.bf16.msrb.mxu0 %v6972_v7  ;;  %3068 = vmatpush.bf16.msrb.mxu3 %v5283_v53  ;;  %v6991_v26 = vld [vmem:[#allocation42_spill] sm:$0xff] }
 0xaaa   :  { %3038 = vmatpush.bf16.msra.mxu2 %v6937_v49 }
 0xaac   :  { %3050 = vmatpush.bf16.msrb.mxu1 %v5210_v21 }
 0xaad   :  { %2966 = vmatmul.bf16.vlgmr.msrb.gmra.mxu2 %v2901_v36  ;;  %3080 = vmatpush.bf16.msrb.mxu0 %v6975_v23  ;;  %v6989_v36 = vld [vmem:[#allocation38_spill] sm:$0xff] }
 0xaae   :  { %3039 = vmatpush.bf16.msra.mxu2 %v6938_v12 }
 0xab0   :  { %3051 = vmatpush.bf16.msrb.mxu1 %v5218_v34 }
 0xab1   :  { %3081 = vmatpush.bf16.msrb.mxu0 %v6978_v4 }
 0xab2   :  { %3040 = vmatpush.bf16.msra.mxu2 %v6939_v29 }
 0xab3   :  { %2992 = vmatmul.bf16.vlgmr.msra.gmra.mxu3 %v2900_v43  ;;  %4624 = vmatmul.msk.bf16.vlgmr.msra.gmra.mxu1 %vm6985_vm7, %v2902_v14  ;;  %v6986_v43 = vld [vmem:[#allocation29_spill] sm:$0xff]  ;;  %v6988_v14 = vld [vmem:[#allocation36_spill] sm:$0xff] }
 0xab4   :  { %3052 = vmatpush.bf16.msrb.mxu1 %v5229_v44  ;;  %3087 = vmatpush.bf16.msra.mxu3 %v5287_v57 }
 0xab5   :  { %3145 = vmatpush.bf16.msra.mxu0 %v6981_v8  ;;  %v6993_v8 = vld [vmem:[#allocation47_spill] sm:$0xff] }
 0xab6   :  { %3041 = vmatpush.bf16.msra.mxu2 %v6968_v13 }
 0xab8   :  { %3053 = vmatpush.bf16.msrb.mxu1 %v5240_v55  ;;  %3088 = vmatpush.bf16.msra.mxu3 %v5295_v11 }
 0xab9   :  { %3146 = vmatpush.bf16.msra.mxu0 %v6982_v27  ;;  %v6992_v27 = vld [vmem:[#allocation45_spill] sm:$0xff] }
 0xaba   :  { %3042 = vmatpush.bf16.msra.mxu2 %v6971_v17 }
 0xabc   :  { %3054 = vmatpush.bf16.msrb.mxu1 %v5248_v62  ;;  %3089 = vmatpush.bf16.msra.mxu3 %v5307_v39 }
 0xabe   :  { %3106 = vmatpush.bf16.msrb.mxu2 %v6973_v42 }
 0xac0   :  { %3055 = vmatpush.bf16.msrb.mxu1 %v5254_v9  ;;  %3090 = vmatpush.bf16.msra.mxu3 %v6970_v50 }
 0xac2   :  { %3107 = vmatpush.bf16.msrb.mxu2 %v6976_v3 }
 0xac4   :  { %3113 = vmatpush.bf16.msra.mxu1 %v6986_v43  ;;  %3091 = vmatpush.bf16.msra.mxu3 %v6974_v28 }
 0xac8   :  { %3114 = vmatpush.bf16.msra.mxu1 %v6987_v37  ;;  %3092 = vmatpush.bf16.msra.mxu3 %v6977_v47 }
 0xacc   :  { %3115 = vmatpush.bf16.msra.mxu1 %v6988_v14  ;;  %3093 = vmatpush.bf16.msra.mxu3 %v6979_v0 }
 0xad0   :  { %3116 = vmatpush.bf16.msra.mxu1 %v6989_v36  ;;  %3094 = vmatpush.bf16.msra.mxu3 %v6980_v6 }
 0xad4   :  { %3117 = vmatpush.bf16.msra.mxu1 %v6990_v38 }
 0xad8   :  { %3118 = vmatpush.bf16.msra.mxu1 %v6991_v26 }
 0xadc   :  { %3119 = vmatpush.bf16.msra.mxu1 %v6992_v27 }
 0xae0   :  { %3120 = vmatpush.bf16.msra.mxu1 %v6993_v8 }
 0xb10   :  { %v2915_v4 = vpop.f32.mrf.mxu1  ;;  %v2954_v37 = vpop.f32.mrf.mxu0 }
 0xb18   :  { %v2917_v43 = vpop.f32.mrf.mxu1  ;;  %v2956_v23 = vpop.f32.mrf.mxu0 }
 0xb20   :  { %v2941_v9 = vpop.f32.mrf.mxu2  ;;  %v2980_v14 = vpop.f32.mrf.mxu1 }
 0xb21   :  { %v3006_v7 = vpop.f32.mrf.mxu0 }
 0xb26   :  { %v2928_v62 = vpop.f32.mrf.mxu3 }
 0xb27   :  { %v2929_v19 = vadd.f32 %v2928_v62, %v2915_v4  ;;  %v4629_v62 = vld [vmem:[%s6679_s4 + $0xc] sm:$0xf] }
 0xb28   :  { %v2943_v36 = vpop.f32.mrf.mxu2  ;;  %v2982_v55 = vpop.f32.mrf.mxu1  ;;  %3216 = vperm.xlu2 %4894, %v4629_v62  }
 0xb29   :  { %v2942_v52 = vadd.f32 %v2941_v9, %v2929_v19  ;;  %v3008_v44 = vpop.f32.mrf.mxu0 }
 0xb2b   :  { %v6270_v38 = vsub.f32 %v6206_v46, %v2942_v52 }
 0xb2d   :  { %v3026_v27 = vmul.f32 %v6270_v38, %v6270_v38 }
 0xb2e   :  { %v2930_v8 = vpop.f32.mrf.mxu3 }
 0xb2f   :  { %v3029_v26 = vpack.c.bf16 %v3026_v27, %v3026_v27 }
 0xb30   :  { %v2967_v3 = vpop.f32.mrf.mxu2  ;;  %v3019_v43 = vpop.f32.mrf.mxu1 }
 0xb31   :  { %v2968_v23 = vadd.f32 %v2967_v3, %v2954_v37  ;;  %3043 = vmatmul.bf16.vlgmr.msra.gmra.mxu2 %v3029_v26  ;;  %3082 = vmatmul.bf16.vlgmr.msrb.gmra.mxu0 %v3029_v26 }
 0xb32   :  { %3126 = vmatpush.bf16.msra.mxu2 %v6883_v40 }
 0xb33   :  { %v2981_v44 = vadd.f32 %v2980_v14, %v2968_v23 }
 0xb35   :  { %v6279_v52 = vsub.f32 %v6221_v60, %v2981_v44 }
 0xb36   :  { %v2993_v55 = vpop.f32.mrf.mxu3  ;;  %3127 = vmatpush.bf16.msra.mxu2 %v6885_v24 }
 0xb37   :  { %v3027_v9 = vmul.f32 %v6279_v52, %v6279_v52  ;;  %v3007_v19 = vadd.f32 %v3006_v7, %v2993_v55 }
 0xb38   :  { %v2969_v3 = vpop.f32.mrf.mxu2  ;;  %v3021_v4 = vpop.f32.mrf.mxu1 }
 0xb39   :  { %v3030_v46 = vpack.c.bf16 %v3027_v9, %v3027_v9  ;;  %v3020_v8 = vadd.f32 %v3019_v43, %v3007_v19 }
 0xb3a   :  { %3128 = vmatpush.bf16.msra.mxu2 %v5273_v31 }
 0xb3b   :  { %v6286_v27 = vsub.f32 %v6214_v1, %v3020_v8  ;;  %3056 = vmatmul.bf16.vlgmr.msrb.gmra.mxu1 %v3030_v46 }
 0xb3d   :  { %v3028_v60 = vmul.f32 %v6286_v27, %v6286_v27 }
 0xb3e   :  { %v2995_v37 = vpop.f32.mrf.mxu3  ;;  %3129 = vmatpush.bf16.msra.mxu2 %v5280_v45 }
 0xb3f   :  { %v3031_v14 = vpack.c.bf16 %v3028_v60, %v3028_v60 }
 0xb41   :  { %4625 = vmatmul.msk.bf16.vlgmr.msrb.gmra.mxu3 %vm6994_vm5, %v3031_v14  ;;  %4626 = vmatmul.msk.bf16.vlgmr.msrb.gmra.mxu2 %vm6995_vm14, %v3031_v14 }
 0xb42   :  { %4627 = vmatmul.msk.bf16.vlgmr.msra.gmra.mxu0 %vm6996_vm3, %v3031_v14  ;;  %3130 = vmatpush.bf16.msra.mxu2 %v5293_v10 }
 0xb46   :  { %3131 = vmatpush.bf16.msra.mxu2 %v5305_v33 }
 0xb4a   :  { %3132 = vmatpush.bf16.msra.mxu2 %v5314_v56 }
 0xb4b   :  { %3121 = vmatmul.bf16.vlgmr.msra.gmra.mxu1 %v3029_v26 }
 0xb4e   :  { %3133 = vmatpush.bf16.msra.mxu2 %v5325_v30 }
 0xb51   :  { %3095 = vmatmul.bf16.vlgmr.msra.gmra.mxu3 %v3030_v46  ;;  %3134 = vmatmul.bf16.vlgmr.msra.gmra.mxu2 %v3030_v46 }
 0xb52   :  { %3845 = vmatpush.bf16.msrb.mxu2 %v5181_v48 }
 0xb56   :  { %3846 = vmatpush.bf16.msrb.mxu2 %v5186_v54 }
 0xb5a   :  { %3847 = vmatpush.bf16.msrb.mxu2 %v5194_v2 }
 0xb5e   :  { %3848 = vmatpush.bf16.msrb.mxu2 %v6937_v49 }
 0xb62   :  { %3849 = vmatpush.bf16.msrb.mxu2 %v6938_v12 }
 0xb66   :  { %3850 = vmatpush.bf16.msrb.mxu2 %v6939_v29 }
 0xb6a   :  { %3851 = vmatpush.bf16.msrb.mxu2 %v6968_v13 }
 0xb6e   :  { %3852 = vmatpush.bf16.msrb.mxu2 %v6971_v17 }
 0xb72   :  { %3897 = vmatpush.bf16.msra.mxu2 %v5287_v57 }
 0xb76   :  { %3898 = vmatpush.bf16.msra.mxu2 %v5295_v11 }
 0xb7a   :  { %3899 = vmatpush.bf16.msra.mxu2 %v5307_v39 }
 0xb7e   :  { %3900 = vmatpush.bf16.msra.mxu2 %v6970_v50 }
 0xb82   :  { %3901 = vmatpush.bf16.msra.mxu2 %v6974_v28 }
 0xb86   :  { %3902 = vmatpush.bf16.msra.mxu2 %v6977_v47 }
 0xb8a   :  { %3903 = vmatpush.bf16.msra.mxu2 %v6979_v0 }
 0xb8e   :  { %3904 = vmatpush.bf16.msra.mxu2 %v6980_v6 }
 0xbae   :  { %v3083_v7 = vpop.f32.mrf.mxu0 }
 0xbb4   :  { %v3044_v1 = vpop.f32.mrf.mxu2 }
 0xbb5   :  { %v3045_v44 = vadd.f32 1e-05, %v3044_v1 }
 0xbb6   :  { %v3085_v36 = vpop.f32.mrf.mxu0 }
 0xbb7   :  { %v3084_v36 = vadd.f32 1e-05, %v3083_v7 }
 0xbb8   :  { %v3057_v26 = vpop.f32.mrf.mxu1 }
 0xbb9   :  { %v3058_v55 = vadd.f32 %v3057_v26, %v3045_v44  ;;  %v4628_v26 = vld [vmem:[%s6677_s2 + $0x9] sm:$0x7] }
 0xbbc   :  { %v3046_v43 = vpop.f32.mrf.mxu2 }
 0xbbf   :  { %v3148_v23 = vpop.f32.mrf.mxu0 }
 0xbc0   :  { %v3059_v62 = vpop.f32.mrf.mxu1 }
 0xbc4   :  { %v3070_v9 = vpop.f32.mrf.mxu3  ;;  %v3109_v19 = vpop.f32.mrf.mxu2 }
 0xbc5   :  { %v3071_v3 = vadd.f32 %v3070_v9, %v3058_v55 }
 0xbc7   :  { %4913 = vrsqrt.f32 %v3071_v3  ;;  %v3150_v4 = vpop.f32.mrf.mxu0  ;;  %vm3158_vm4 = vweird.f32 %v3071_v3 }
 0xbc8   :  { %v3122_v46 = vpop.f32.mrf.mxu1  ;;  %v3198_v4 = vld [vmem:[#allocation7 + $0x9] sm:$0x7] }
 0xbc9   :  { %v3123_v28 = vadd.f32 1e-05, %v3122_v46  ;;  %v3217_v46 = vpop.permute.xlu2 %3216 }
 0xbcc   :  { %v3072_v8 = vpop.f32.mrf.mxu3  ;;  %v3111_v60 = vpop.f32.mrf.mxu2 }
 0xbcd   :  { %v4914_v37 = vpop.eup %4913 }
 0xbce   :  { %v3153_v14 = vmul.f32 %v4914_v37, %v3071_v3  ;;  %vm3159_vm13 = vweird.f32 %v4914_v37 }
 0xbcf   :  { %vm3160_vm9 = vmor %vm3158_vm4, %vm3159_vm13 }
 0xbd0   :  { %v3154_v6 = vmul.f32 %v4914_v37, %v3153_v14  ;;  %v3124_v0 = vpop.f32.mrf.mxu1 }
 0xbd1   :  { %v3188_v0 = vperm.slane %v4628_v26, 0 }
 0xbd2   :  { %v3155_v47 = vmul.f32 0.5, %v3154_v6 }
 0xbd4   :  { %v3156_v43 = vsub.f32 1.5, %v3155_v47  ;;  %v3096_v62 = vpop.f32.mrf.mxu3  ;;  %v3135_v1 = vpop.f32.mrf.mxu2  ;;  %v3200_v47 = vperm.slane %v3198_v4, 0 }
 0xbd5   :  { %v3097_v44 = vadd.f32 %v3096_v62, %v3084_v36  ;;  %v3136_v55 = vadd.f32 %v3135_v1, %v3123_v28 }
 0xbd6   :  { %v3157_v9 = vmul.f32 %v4914_v37, %v3156_v43 }
 0xbd7   :  { %v3110_v8 = vadd.f32 %v3109_v19, %v3097_v44  ;;  %v3149_v60 = vadd.f32 %v3148_v23, %v3136_v55 }
 0xbd8   :  { %v3161_v6 = vsel %vm3160_vm9, %v4914_v37, %v3157_v9  ;;  %v3189_v9 = vperm.slane %v4628_v26, 1 }
 0xbd9   :  { %v3182_v7 = vmul.f32 %v3161_v6, %v6270_v38  ;;  %4915 = vrsqrt.f32 %v3110_v8  ;;  %vm3168_vm3 = vweird.f32 %v3110_v8  ;;  %vm3178_vm4 = vweird.f32 %v3149_v60 }
 0xbda   :  { %4917 = vrsqrt.f32 %v3149_v60  ;;  %v3190_v6 = vperm.slane %v4628_v26, 2 }
 0xbdb   :  { %v3194_v14 = vmul.f32 %v3188_v0, %v3182_v7 }
 0xbdc   :  { %v3098_v50 = vpop.f32.mrf.mxu3  ;;  %v3137_v17 = vpop.f32.mrf.mxu2 }
 0xbdd   :  { %v3206_v30 = vadd.f32 %v3200_v47, %v3194_v14  ;;  %v3201_v47 = vperm.slane %v3198_v4, 1 }
 0xbdf   :  { %v4916_v36 = vpop.eup %4915  ;;  %v3219_v28 = vmul.f32 %v3217_v46, %v3206_v30  ;;  %vm3209_vm7 = vcmp.gt.f32.partialorder %v3206_v30, 0.0 }
 0xbe0   :  { %v4918_v3 = vpop.eup %4917  ;;  %v3163_v43 = vmul.f32 %v4916_v36, %v3110_v8  ;;  %vm3169_vm5 = vweird.f32 %v4916_v36 }
 0xbe1   :  { %v3173_v62 = vmul.f32 %v4918_v3, %v3149_v60  ;;  %v3222_v19 = vsel %vm3209_vm7, %v3206_v30, %v3219_v28  ;;  %vm3179_vm14 = vweird.f32 %v4918_v3  ;;  %vm3170_vm13 = vmor %vm3168_vm3, %vm3169_vm5  ;;  %v3202_v28 = vperm.slane %v3198_v4, 2  ;;  %v3599_v4 = vld [vmem:[#allocation2 + $0x30] sm:$0xff] }
 0xbe2   :  { %v3164_v23 = vmul.f32 %v4916_v36, %v3163_v43  ;;  %3227 = vrot.lane.b32.xlu0 %v3222_v19, %s5055_s3  ;;  %vm3180_vm9 = vmor %vm3178_vm4, %vm3179_vm14  ;;  %v6321_v19 = vld [vmem:[#allocation2 + $0x18] sm:$0xff]  ;;  %vm158_vm14 = vcmask 805888   ;;  %vm138_vm3 = vcmask 265216   ;;  %vm168_vm4 = vcmask 1044376  }
 0xbe3   :  { %v3174_v37 = vmul.f32 %v4918_v3, %v3173_v62  ;;  %159 = vst.msk [vmem:[#allocation2 + $0xa8] sm:$0xf] %vm158_vm14, %v6043_v18  ;;  %vm7001_vm14 = vcmask 359424  }
 0xbe4   :  { %v3165_v38 = vmul.f32 0.5, %v3164_v23 }
 0xbe5   :  { %v3175_v1 = vmul.f32 0.5, %v3174_v37  ;;  %v3394_v37 = vld [vmem:[#allocation2 + $0x10] sm:$0xff] }
 0xbe6   :  { %v3166_v44 = vsub.f32 1.5, %v3165_v38  ;;  %v3400_v60 = vpack.c.bf16 %v6321_v19, %v3394_v37  ;;  %v3262_v37 = vld [vmem:[#allocation2 + $0x80] sm:$0xf] }
 0xbe7   :  { %v3176_v55 = vsub.f32 1.5, %v3175_v1 }
 0xbe8   :  { %v3167_v50 = vmul.f32 %v4916_v36, %v3166_v44  ;;  %v3604_v44 = vpack.c.bf16 %v3599_v4, %v6088_v16 }
 0xbe9   :  { %v3177_v17 = vmul.f32 %v4918_v3, %v3176_v55 }
 0xbea   :  { %v3171_v0 = vsel %vm3170_vm13, %v4916_v36, %v3167_v50  ;;  %v3610_v50 = vrot.slane %v3604_v44, 6  ;;  %vm144_vm13 = vcmask 535944  }
 0xbeb   :  { %v3183_v30 = vmul.f32 %v3171_v0, %v6279_v52  ;;  %v3181_v7 = vsel %vm3180_vm9, %v4918_v3, %v3177_v17  ;;  %v3408_v3 = vrot.slane %v6046_v22, 6  ;;  %v3612_v17 = vrot.slane %v6067_v63, 6  ;;  %v3366_v0 = vld [vmem:[#allocation2 + $0x50] sm:$0xff] }
 0xbec   :  { %v3184_v14 = vmul.f32 %v3181_v7, %v6286_v27  ;;  %v3406_v27 = vrot.slane %v3400_v60, 6  ;;  %v3300_v7 = vld [vmem:[#allocation2 + $0x80] sm:$0xf]  ;;  %vm6998_vm9 = vcmask 1043984  }
 0xbed   :  { %v3195_v43 = vmul.f32 %v3189_v9, %v3183_v30  ;;  %v3611_v9 = vrot.slane %v3610_v50, 4 }
 0xbee   :  { %v3196_v62 = vmul.f32 %v3190_v6, %v3184_v14  ;;  %v3407_v1 = vrot.slane %v3406_v27, 4  ;;  %v3367_v6 = vld [vmem:[#allocation2 + $0x58] sm:$0xff] }
 0xbef   :  { %v3207_v23 = vadd.f32 %v3201_v47, %v3195_v43  ;;  %v3613_v16 = vsel %vm5741_vm12, %v3611_v9, %v3612_v17  ;;  %v6346_v30 = vpack.c.bf16 %v3367_v6, %v3366_v0  ;;  %v3301_v47 = vld [vmem:[#allocation2 + $0x88] sm:$0xf]  ;;  %v4928_v43 = vld [vmem:[#allocation2 + $0x40] sm:$0xff] }
 0xbf0   :  { %v3208_v8 = vadd.f32 %v3202_v28, %v3196_v62  ;;  %v3304_v28 = vpack.c.bf16 %v3301_v47, %v3300_v7  ;;  %v6359_v62 = vpack.c.bf16 %v4928_v43, %v3367_v6  ;;  %139 = vst.msk [vmem:[#allocation2 + $0x90] sm:$0xf] %vm138_vm3, %v4928_v43  ;;  %vm7002_vm3 = vcmask 396288  }
 0xbf1   :  { %v3220_v38 = vmul.f32 %v3217_v46, %v3207_v23  ;;  %vm3210_vm7 = vcmp.gt.f32.partialorder %v3207_v23, 0.0  ;;  %v3341_v14 = vrot.slane %v6346_v30, 6  ;;  %145 = vst.msk [vmem:[#allocation2 + $0x98] sm:$0xf] %vm144_vm13, %v4928_v43  ;;  %vm7003_vm13 = vcmask 678912  }
 0xbf2   :  { %v3221_v36 = vmul.f32 %v3217_v46, %v3208_v8  ;;  %vm3211_vm5 = vcmp.gt.f32.partialorder %v3208_v8, 0.0  ;;  %v3409_v46 = vsel %vm5741_vm12, %v3407_v1, %v3408_v3  ;;  %156 = vst.msk [vmem:[#allocation2 + $0x98] sm:$0xf] %vm6998_vm9, %v4928_v43  ;;  %vm3317_vm9 = vcmask 1031168  }
 0xbf3   :  { %v3223_v26 = vsel %vm3210_vm7, %v3207_v23, %v3220_v38  ;;  %v3342_v18 = vsel %vm5741_vm12, %v3407_v1, %v3341_v14  ;;  %v3297_v23 = vld [vmem:[#allocation2 + $0x8] sm:$0xff]  ;;  %169 = vst.msk [vmem:[#allocation2 + $0xb0] sm:$0xf] %vm168_vm4, %v4928_v43  ;;  %vm6999_vm7 = vcmask 1044248   ;;  %vm7004_vm4 = vcmask 936960  }
 0xbf4   :  { %3237 = vrot.lane.b32.xlu2 %v3223_v26, %s5056_s11  ;;  %3229 = vrot.lane.b32.xlu1 %v3223_v26, %s5055_s3  ;;  %v3224_v52 = vsel %vm3211_vm5, %v3208_v8, %v3221_v36  ;;  %s5072_s3 = smov 126   ;;  %v6366_v8 = vpack.c.bf16 %v3297_v23, %v6154_v61  ;;  %v3263_v38 = vld [vmem:[#allocation2 + $0x88] sm:$0xf]  ;;  %v3272_v36 = vrot.slane %v6162_v35, 6  ;;  %vm7000_vm5 = vcmask 1043720  }
 0xbf5   :  { %3239 = vrot.lane.b32.xlu0 %v3224_v52, %s5056_s11  ;;  %s5073_s11 = smov 76  }
 0xbf6   :  { %v3274_v26 = vrot.slane %v3272_v36, 4 }
 0xbfc   :  { %3415 = vrot.lane.b32.xlu2 %v3409_v46, %s5047_s21  ;;  %3413 = vrot.lane.b32.xlu1 %v3406_v27, %s5047_s21 }
 0xbfd   :  { %3376 = vrot.lane.b32.xlu0 %v3400_v60, %s5042_s16  ;;  %v3266_v60 = vpack.c.bf16 %v3263_v38, %v3262_v37 }
 0xbff   :  { %v3275_v52 = vrot.slane %v3266_v60, 6 }
 0xc04   :  { %3619 = vrot.lane.b32.xlu2 %v3613_v16, %s5046_s20  ;;  %3617 = vrot.lane.b32.xlu1 %v3610_v50, %s5046_s20 }
 0xc05   :  { %3582 = vrot.lane.b32.xlu0 %v6067_v63, %s5045_s19 }
 0xc0c   :  { %3580 = vrot.lane.b32.xlu2 %v3604_v44, %s5045_s19  ;;  %3378 = vrot.lane.b32.xlu1 %v6346_v30, %s5042_s16 }
 0xc0d   :  { %3552 = vrot.lane.b32.xlu0 %v3613_v16, %s5053_s27 }
 0xc14   :  { %3310 = vrot.lane.b32.xlu2 %v6162_v35, %s5072_s3  ;;  %3348 = vrot.lane.b32.xlu1 %v3342_v18, %s5050_s24 }
 0xc15   :  { %3312 = vrot.lane.b32.xlu0 %v3304_v28, %s5072_s3 }
 0xc1c   :  { %3514 = vrot.lane.b32.xlu2 %v6359_v62, %s5073_s11  ;;  %3346 = vrot.lane.b32.xlu1 %v3406_v27, %s5050_s24  ;;  %v3276_v27 = vsel %vm5741_vm12, %v3274_v26, %v3275_v52 }
 0xc1d   :  { %3308 = vrot.lane.b32.xlu0 %v6366_v8, %s5072_s3 }
 0xc24   :  { %3550 = vrot.lane.b32.xlu1 %v3610_v50, %s5053_s27  ;;  %3281 = vrot.lane.b32.xlu2 %v3276_v27, %s5074_s9 }
 0xc4e   :  { %v3238_v4 = vpop.permute.xlu2 %3237 }
 0xc4f   :  { %3244 = vst.msk [vmem:[#allocation2 + $0xa8] sm:$0xf] %vm6999_vm7, %v3238_v4  ;;  %vm7007_vm7 = vcmask 367616  }
 0xc54   :  { %v3228_v61 = vpop.permute.xlu0 %3227 }
 0xc55   :  { %3234 = vst.msk [vmem:[#allocation2 + $0x90] sm:$0xf] %vm7000_vm5, %v3228_v61  ;;  %vm3521_vm5 = vcmask 621568  }
 0xc56   :  { %v3416_v1 = vpop.permute.xlu2 %3415 }
 0xc57   :  { %v3420_v44 = vrot.slane %v3416_v1, 4 }
 0xc59   :  { %v3423_v46 = vsel %vm314_vm10, %v3416_v1, %v3420_v44 }
 0xc5a   :  { %3429 = vst.msk [vmem:[#allocation3 + $0x9c] sm:$0xff] %vm5525_vm15, %v3423_v46 }
 0xc5c   :  { %v3368_v23 = vld [vmem:[#allocation2 + $0x90] sm:$0xf] }
 0xc5d   :  { %v3398_v37 = vld [vmem:[#allocation2 + $0x90] sm:$0xf] }
 0xc5e   :  { %v3620_v50 = vpop.permute.xlu2 %3619 }
 0xc5f   :  { %v3624_v9 = vrot.slane %v3620_v50, 4 }
 0xc61   :  { %v3627_v16 = vsel %vm7001_vm14, %v3620_v50, %v3624_v9  ;;  %v3602_v50 = vld [vmem:[#allocation2 + $0xa8] sm:$0xf] }
 0xc62   :  { %3633 = vst.msk [vmem:[#allocation3 + $0xa0] sm:$0xff] %vm5533_vm0, %v3627_v16 }
 0xc66   :  { %v3581_v0 = vpop.permute.xlu2 %3580  ;;  %v3230_v6 = vpop.permute.xlu1 %3229 }
 0xc67   :  { %v3231_v7 = vsel %vm134_vm8, %v3228_v61, %v3230_v6  ;;  %v3240_v47 = vpop.permute.xlu0 %3239  ;;  %v3586_v1 = vrot.slane %v3581_v0, 4  ;;  %vm7005_vm8 = vcmask 777216  }
 0xc68   :  { %3235 = vst.msk [vmem:[#allocation2 + $0x98] sm:$0xf] %vm7002_vm3, %v3231_v7  ;;  %v3241_v28 = vsel %vm7003_vm13, %v3238_v4, %v3240_v47  ;;  %v3410_v47 = vrot.slane %v3408_v3, 4  ;;  %v3331_v3 = vld [vmem:[#allocation2 + $0x90] sm:$0xf]  ;;  %vm7009_vm3 = vmmov %vm7005_vm8 }
 0xc69   :  { %3245 = vst.msk [vmem:[#allocation2 + $0xb0] sm:$0xf] %vm7004_vm4, %v3241_v28  ;;  %vm7010_vm13 = vmmov %vm7007_vm7  ;;  %vm7011_vm4 = vcmask 785408  }
 0xc6e   :  { %v3311_v18 = vpop.permute.xlu2 %3310  ;;  %v3414_v43 = vpop.permute.xlu1 %3413 }
 0xc6f   :  { %v3315_v38 = vrot.slane %v3311_v18, 4  ;;  %v3419_v60 = vrot.slane %v3414_v43, 4  ;;  %v3377_v26 = vpop.permute.xlu0 %3376  ;;  %v3369_v52 = vld [vmem:[#allocation2 + $0x98] sm:$0xf] }
 0xc70   :  { %v3399_v27 = vld [vmem:[#allocation2 + $0x98] sm:$0xf]  ;;  %v3382_v44 = vrot.slane %v3377_v26, 4  ;;  %v3372_v61 = vpack.c.bf16 %v3369_v52, %v3368_v23  ;;  %v3603_v9 = vld [vmem:[#allocation2 + $0xb0] sm:$0xf] }
 0xc71   :  { %v3402_v46 = vpack.c.bf16 %v3399_v27, %v3398_v37  ;;  %v3319_v4 = vsel %vm3317_vm9, %v3311_v18, %v3315_v38  ;;  %v3422_v16 = vsel %vm314_vm10, %v3414_v43, %v3419_v60  ;;  %v3606_v6 = vpack.c.bf16 %v3603_v9, %v3602_v50  ;;  %v3332_v23 = vld [vmem:[#allocation2 + $0x98] sm:$0xf]  ;;  %v3573_v63 = vld [vmem:[#allocation2 + $0xb0] sm:$0xf] }
 0xc72   :  { %3325 = vst.msk [vmem:[#allocation3 + $0x48] sm:$0xff] %vm5525_vm15, %v3319_v4  ;;  %v3385_v7 = vsel %vm7005_vm8, %v3377_v26, %v3382_v44  ;;  %3380 = vrot.lane.b32.xlu0 %v3372_v61, %s5042_s16  ;;  %v3270_v37 = vrot.slane %v6366_v8, 6  ;;  %v3614_v18 = vrot.slane %v3612_v17, 4  ;;  %v3589_v38 = vsel %vm7007_vm7, %v3581_v0, %v3586_v1  ;;  %s5075_s16 = smov 77   ;;  %vm7013_vm7 = vmmov %vm7011_vm4 }
 0xc73   :  { %v3411_v28 = vrot.slane %v3402_v46, 6  ;;  %3428 = vst.msk [vmem:[#allocation3 + $0x90] sm:$0xcc] %vm5144_vm11, %v3422_v16  ;;  %v3615_v43 = vrot.slane %v3606_v6, 6  ;;  %v3335_v17 = vpack.c.bf16 %v3332_v23, %v3331_v3  ;;  %v3572_v46 = vld [vmem:[#allocation2 + $0xa8] sm:$0xf] }
 0xc74   :  { %3391 = vst.msk [vmem:[#allocation3 + $0x78] sm:$0xff] %vm5525_vm15, %v3385_v7  ;;  %v3271_v27 = vrot.slane %v3270_v37, 4  ;;  %v3576_v50 = vpack.c.bf16 %v3573_v63, %v3572_v46  ;;  %v3536_v6 = vld [vmem:[#allocation2 + $0xb0] sm:$0xf]  ;;  %v3535_v23 = vld [vmem:[#allocation2 + $0xa8] sm:$0xf] }
 0xc75   :  { %v3412_v22 = vsel %vm5741_vm12, %v3410_v47, %v3411_v28  ;;  %3595 = vst.msk [vmem:[#allocation3 + $0x7c] sm:$0xff] %vm5533_vm0, %v3589_v38  ;;  %v3616_v60 = vsel %vm5741_vm12, %v3614_v18, %v3615_v43  ;;  %v3344_v16 = vrot.slane %v3335_v17, 6  ;;  %v3343_v28 = vrot.slane %v3341_v14, 4  ;;  %v3505_v3 = vld [vmem:[#allocation2 + $0xa0] sm:$0xf] }
 0xc76   :  { %3417 = vrot.lane.b32.xlu1 %v3412_v22, %s5047_s21  ;;  %3621 = vrot.lane.b32.xlu2 %v3616_v60, %s5046_s20  ;;  %v3515_v0 = vpop.permute.xlu2 %3514  ;;  %v3618_v26 = vpop.permute.xlu1 %3617  ;;  %v3273_v7 = vsel %vm5741_vm12, %v3271_v27, %v3272_v36  ;;  %v3539_v43 = vpack.c.bf16 %v3536_v6, %v3535_v23  ;;  %v3504_v22 = vld [vmem:[#allocation2 + $0x98] sm:$0xf]  ;;  %vm7012_vm8 = vcmask 375808  }
 0xc77   :  { %v3519_v1 = vrot.slane %v3515_v0, 4  ;;  %v3623_v44 = vrot.slane %v3618_v26, 4  ;;  %v3583_v61 = vpop.permute.xlu0 %3582  ;;  %v3345_v38 = vsel %vm5741_vm12, %v3343_v28, %v3344_v16  ;;  %v3508_v17 = vpack.c.bf16 %v3505_v3, %v3504_v22  ;;  %v3466_v14 = vld [vmem:[#allocation2 + $0x98] sm:$0xf] }
 0xc78   :  { %v3587_v60 = vrot.slane %v3583_v61, 4 }
 0xc79   :  { %v3523_v9 = vsel %vm3521_vm5, %v3515_v0, %v3519_v1  ;;  %v3626_v4 = vsel %vm7001_vm14, %v3618_v26, %v3623_v44  ;;  %v3548_v0 = vrot.slane %v3539_v43, 6  ;;  %v3467_v26 = vld [vmem:[#allocation2 + $0xa0] sm:$0xf]  ;;  %v3435_v43 = vld [vmem:[#allocation2 + $0x98] sm:$0xf]  ;;  %vm7014_vm14 = vmmov %vm7012_vm8 }
 0xc7a   :  { %3529 = vst.msk [vmem:[#allocation3 + $0x4c] sm:$0xff] %vm5533_vm0, %v3523_v9  ;;  %3584 = vrot.lane.b32.xlu0 %v3576_v50, %s5045_s19  ;;  %v3590_v27 = vsel %vm7010_vm13, %v3583_v61, %v3587_v60  ;;  %v3501_v1 = vld [vmem:[#allocation2 + $0x20] sm:$0xff]  ;;  %v3470_v50 = vpack.c.bf16 %v3467_v26, %v3466_v14  ;;  %s5076_s19 = smov 78   ;;  %v4725_v26 = vld [vmem:[%s6679_s4 + $0x10] sm:$0xf]  ;;  %vm3452_vm13 = vcmask 637952  }
 0xc7b   :  { %3632 = vst.msk [vmem:[#allocation3 + $0x94] sm:$0xcc] %vm5165_vm1, %v3626_v4  ;;  %v3506_v44 = vpack.c.bf16 %v3501_v1, %v6321_v19  ;;  %v3549_v46 = vsel %vm5741_vm12, %v3614_v18, %v3548_v0  ;;  %v3476_v4 = vrot.slane %v6359_v62, 6  ;;  %v3436_v19 = vld [vmem:[#allocation2 + $0xa0] sm:$0xf] }
 0xc7c   :  { %v3439_v3 = vpack.c.bf16 %v3436_v19, %v3435_v43 }
 0xc7d   :  { %v3478_v18 = vrot.slane %v3476_v4, 4  ;;  %v3474_v8 = vrot.slane %v3506_v44, 6 }
 0xc7e   :  { %3279 = vrot.lane.b32.xlu1 %v3273_v7, %s5074_s9  ;;  %3350 = vrot.lane.b32.xlu2 %v3345_v38, %s5050_s24  ;;  %v3379_v35 = vpop.permute.xlu1 %3378  ;;  %v3479_v7 = vrot.slane %v3470_v50, 6 }
 0xc7f   :  { %v3383_v36 = vrot.slane %v3379_v35, 4  ;;  %v3553_v63 = vpop.permute.xlu0 %3552 }
 0xc80   :  { %v3557_v9 = vrot.slane %v3553_v63, 4  ;;  %v3480_v60 = vsel %vm5741_vm12, %v3478_v18, %v3479_v7 }
 0xc81   :  { %v3386_v30 = vsel %vm7009_vm3, %v3379_v35, %v3383_v36  ;;  %vm3286_vm3 = vcmask 1039360  }
 0xc82   :  { %3392 = vst.msk [vmem:[#allocation3 + $0x84] sm:$0xff] %vm5525_vm15, %v3386_v30  ;;  %3516 = vrot.lane.b32.xlu0 %v3508_v17, %s5073_s11  ;;  %v3560_v38 = vsel %vm7012_vm8, %v3553_v63, %v3557_v9  ;;  %v3475_v63 = vrot.slane %v3474_v8, 4 }
 0xc83   :  { %3596 = vst.msk [vmem:[#allocation3 + $0x88] sm:$0xff] %vm5533_vm0, %v3590_v27  ;;  %v3282_v27 = vpop.permute.xlu2 %3281 }
 0xc84   :  { %v3477_v17 = vsel %vm5741_vm12, %v3475_v63, %v3476_v4  ;;  %v3285_v55 = vrot.slane %v3282_v27, 4  ;;  %vm7015_vm12 = vmmov %vm7011_vm4 }
 0xc86   :  { %3554 = vrot.lane.b32.xlu1 %v3549_v46, %s5053_s27  ;;  %3512 = vrot.lane.b32.xlu2 %v3506_v44, %s5073_s11  ;;  %v3349_v61 = vpop.permute.xlu1 %3348  ;;  %v3289_v1 = vsel %vm3286_vm3, %v3282_v27, %v3285_v55 }
 0xc87   :  { %v3353_v16 = vrot.slane %v3349_v61, 4  ;;  %v3313_v6 = vpop.permute.xlu0 %3312  ;;  %3295 = vst.msk [vmem:[#allocation3 + $0x30] sm:$0xff] %vm5525_vm15, %v3289_v1 }
 0xc88   :  { %v3316_v28 = vrot.slane %v3313_v6, 4 }
 0xc89   :  { %v3356_v23 = vsel %vm7011_vm4, %v3349_v61, %v3353_v16  ;;  %vm7017_vm4 = vcmask 359424  }
 0xc8a   :  { %3362 = vst.msk [vmem:[#allocation3 + $0x60] sm:$0xff] %vm5525_vm15, %v3356_v23  ;;  %3277 = vrot.lane.b32.xlu0 %v3270_v37, %s5074_s9  ;;  %v3320_v22 = vsel %vm3317_vm9, %v3313_v6, %v3316_v28 }
 0xc8b   :  { %3566 = vst.msk [vmem:[#allocation3 + $0x64] sm:$0xff] %vm5533_vm0, %v3560_v38 }
 0xc8c   :  { %3326 = vst.msk [vmem:[#allocation3 + $0x54] sm:$0x33] %vm5135_vm6, %v3320_v22 }
 0xc8e   :  { %3485 = vrot.lane.b32.xlu1 %v3480_v60, %s5075_s16  ;;  %3447 = vrot.lane.b32.xlu2 %v3439_v3, %s5076_s19  ;;  %v3347_v35 = vpop.permute.xlu1 %3346 }
 0xc8f   :  { %v3352_v37 = vrot.slane %v3347_v35, 4 }
 0xc91   :  { %v3355_v36 = vsel %vm7013_vm7, %v3347_v35, %v3352_v37 }
 0xc92   :  { %3361 = vst.msk [vmem:[#allocation3 + $0x54] sm:$0xcc] %vm5144_vm11, %v3355_v36  ;;  %3481 = vrot.lane.b32.xlu0 %v3474_v8, %s5075_s16  ;;  %v4842_v36 = vld [vmem:[#allocation3 + $0xa0] sm:$0xf0] }
 0xc96   :  { %3483 = vrot.lane.b32.xlu1 %v3477_v17, %s5075_s16  ;;  %3443 = vrot.lane.b32.xlu2 %v3506_v44, %s5076_s19  ;;  %v3551_v0 = vpop.permute.xlu1 %3550  ;;  %v3309_v44 = vpop.permute.xlu0 %3308 }
 0xc97   :  { %v3556_v30 = vrot.slane %v3551_v0, 4  ;;  %v3314_v46 = vrot.slane %v3309_v44, 4 }
 0xc99   :  { %v3559_v14 = vsel %vm7014_vm14, %v3551_v0, %v3556_v30  ;;  %v3318_v50 = vsel %vm3317_vm9, %v3309_v44, %v3314_v46  ;;  %vm7016_vm9 = vcmask 777216  }
 0xc9a   :  { %3565 = vst.msk [vmem:[#allocation3 + $0x58] sm:$0xcc] %vm5165_vm1, %v3559_v14  ;;  %3445 = vrot.lane.b32.xlu0 %v6359_v62, %s5076_s19 }
 0xc9b   :  { %3324 = vst.msk [vmem:[#allocation3 + $0x3c] sm:$0xff] %vm5525_vm15, %v3318_v50 }
 0xc9e   :  { %4155 = vperm.xlu1 %4892, %v4725_v26  }
 0xcd0   :  { %v3622_v62 = vpop.permute.xlu2 %3621 }
 0xcd1   :  { %v3625_v43 = vrot.slane %v3622_v62, 4 }
 0xcd3   :  { %v3628_v35 = vsel %vm7017_vm4, %v3622_v62, %v3625_v43 }
 0xcd8   :  { %v3351_v9 = vpop.permute.xlu2 %3350 }
 0xcd9   :  { %v3354_v61 = vrot.slane %v3351_v9, 4 }
 0xcdb   :  { %v3357_v4 = vsel %vm7015_vm12, %v3351_v9, %v3354_v61 }
 0xcdc   :  { %3363 = vst.msk [vmem:[#allocation3 + $0x6c] sm:$0xff] %vm5525_vm15, %v3357_v4 }
 0xce0   :  { %v3513_v16 = vpop.permute.xlu2 %3512 }
 0xce1   :  { %v3518_v6 = vrot.slane %v3513_v16, 4 }
 0xce3   :  { %v3522_v7 = vsel %vm3521_vm5, %v3513_v16, %v3518_v6 }
 0xce4   :  { %3528 = vst.msk [vmem:[#allocation3 + $0x40] sm:$0xff] %vm5533_vm0, %v3522_v7  ;;  %v3381_v28 = vpop.permute.xlu0 %3380 }
 0xce5   :  { %v3384_v23 = vrot.slane %v3381_v28, 4 }
 0xce7   :  { %v3387_v19 = vsel %vm7016_vm9, %v3381_v28, %v3384_v23 }
 0xce8   :  { %v3418_v38 = vpop.permute.xlu1 %3417  ;;  %3393 = vst.msk [vmem:[#allocation3 + $0x90] sm:$0x33] %vm5135_vm6, %v3387_v19  ;;  %v3448_v22 = vpop.permute.xlu2 %3447  ;;  %vm7019_vm6 = vcmask 367616  }
 0xce9   :  { %v3421_v18 = vrot.slane %v3418_v38, 4  ;;  %v3451_v3 = vrot.slane %v3448_v22, 4 }
 0xceb   :  { %v3424_v60 = vsel %vm314_vm10, %v3418_v38, %v3421_v18  ;;  %v3455_v8 = vsel %vm3452_vm13, %v3448_v22, %v3451_v3  ;;  %vm7020_vm10 = vcmask 1043456  }
 0xcec   :  { %3430 = vst.msk [vmem:[#allocation3 + $0xa8] sm:$0xff] %vm5525_vm15, %v3424_v60  ;;  %v3585_v37 = vpop.permute.xlu0 %3584  ;;  %vm7021_vm8 = vmmov %vm7020_vm10  ;;  %v4841_v60 = vld [vmem:[#allocation3 + $0x98] sm:$0xf0] }
 0xced   :  { %3634 = vst.msk [vmem:[#allocation3 + $0xac] sm:$0xff] %vm5533_vm0, %v3628_v35  ;;  %v3588_v58 = vrot.slane %v3585_v37, 4  ;;  %vm7022_vm7 = vmmov %vm7021_vm8  ;;  %v4707_v35 = vld [vmem:[#allocation3 + $0x9c] sm:$0xf0] }
 0xcee   :  { %3461 = vst.msk [vmem:[#allocation3 + $0x1c] sm:$0x33] %vm5157_vm2, %v3455_v8 }
 0xcef   :  { %v3591_v63 = vsel %vm7019_vm6, %v3585_v37, %v3588_v58  ;;  %v4705_v28 = vld [vmem:[#allocation3 + $0x90] sm:$0xf] }
 0xcf0   :  { %v3280_v17 = vpop.permute.xlu1 %3279  ;;  %3597 = vst.msk [vmem:[#allocation3 + $0x94] sm:$0x33] %vm5157_vm2, %v3591_v63  ;;  %v3444_v0 = vpop.permute.xlu2 %3443  ;;  %v4706_v8 = vor.u32 %v4841_v60, %v4705_v28  ;;  %v4689_v28 = vld [vmem:[#allocation3 + $0x68] sm:$0xf] }
 0xcf1   :  { %v3284_v30 = vrot.slane %v3280_v17, 4  ;;  %v3449_v14 = vrot.slane %v3444_v0, 4 }
 0xcf3   :  { %v3288_v26 = vsel %vm3286_vm3, %v3280_v17, %v3284_v30  ;;  %v3453_v27 = vsel %vm3452_vm13, %v3444_v0, %v3449_v14  ;;  %v4838_v17 = vld [vmem:[#allocation3 + $0x80] sm:$0xf0]  ;;  %v4695_v0 = vld [vmem:[#allocation3 + $0x84] sm:$0xf0]  ;;  %v4839_v14 = vld [vmem:[#allocation3 + $0x88] sm:$0xf0] }
 0xcf4   :  { %3294 = vst.msk [vmem:[#allocation3 + $0x24] sm:$0xff] %vm5525_vm15, %v3288_v26  ;;  %v3665_v55 = vld [vmem:[#allocation3 + $0xa8] sm:$0xff]  ;;  %v3666_v1 = vld [vmem:[#allocation3 + $0xb0] sm:$0xf]  ;;  %v3517_v44 = vpop.permute.xlu0 %3516  ;;  %v4693_v26 = vld [vmem:[#allocation3 + $0x78] sm:$0xf] }
 0xcf5   :  { %3459 = vst.msk [vmem:[#allocation3 + $0x4] sm:$0xff] %vm5533_vm0, %v3453_v27  ;;  %v3739_v46 = vunpack.c.l.b16 %v3665_v55  ;;  %v3740_v50 = vunpack.c.h.b16 %v3665_v55  ;;  %v3741_v62 = vunpack.c.l.b16 %v3666_v1  ;;  %v3520_v9 = vrot.slane %v3517_v44, 4  ;;  %v4837_v27 = vld [vmem:[#allocation3 + $0x7c] sm:$0xf] }
 0xcf7   :  { %v3763_v61 = vpack.c.b16 %v3739_v46, %v3739_v46  ;;  %v3764_v4 = vpack.c.b16 %v3740_v50, %v3740_v50  ;;  %v3765_v16 = vpack.c.b16 %v3741_v62, %v3741_v62  ;;  %v3524_v6 = vsel %vm3521_vm5, %v3517_v44, %v3520_v9  ;;  %v4840_v23 = vld [vmem:[#allocation3 + $0x94] sm:$0xf]  ;;  %v4713_v22 = vld [vmem:[#allocation3 + $0x98] sm:$0xf]  ;;  %v4701_v50 = vld [vmem:[#allocation3 + $0x80] sm:$0xf] }
 0xcf8   :  { %v3555_v7 = vpop.permute.xlu1 %3554  ;;  %3530 = vst.msk [vmem:[#allocation3 + $0x58] sm:$0x33] %vm5157_vm2, %v3524_v6  ;;  %v4710_v37 = vor.u32 %v4840_v23, %v4707_v35  ;;  %v4714_v63 = vor.u32 %v4842_v36, %v4713_v22  ;;  %vm3490_vm2 = vcmask 629760   ;;  %v4694_v44 = vor.u32 %v4838_v17, %v4693_v26  ;;  %v4832_v22 = vld [vmem:[#allocation3 + $0x50] sm:$0xf0] }
 0xcf9   :  { %v3558_v43 = vrot.slane %v3555_v7, 4  ;;  %v3792_v19 = vsel %vm7020_vm10, %v3763_v61, 0  ;;  %v3795_v38 = vsel %vm7021_vm8, %v3764_v4, 0  ;;  %v3798_v18 = vsel %vm7022_vm7, %v3765_v16, 0  ;;  %v4835_v61 = vld [vmem:[#allocation3 + $0x68] sm:$0xf0] }
 0xcfa   :  { %3800 = vmatpush.bf16.msrb.mxu3 %v3792_v19  ;;  %3813 = vmatpush.bf16.msrb.mxu0 %v3795_v38  ;;  %v4698_v46 = vor.u32 %v4837_v27, %v4695_v0  ;;  %v4702_v9 = vor.u32 %v4839_v14, %v4701_v50  ;;  %v4681_v4 = vld [vmem:[#allocation3 + $0x60] sm:$0xf]  ;;  %v4834_v16 = vld [vmem:[#allocation3 + $0x64] sm:$0xf]  ;;  %v4677_v17 = vld [vmem:[#allocation3 + $0x50] sm:$0xf] }
 0xcfb   :  { %v3561_v3 = vsel %vm7014_vm14, %v3555_v7, %v3558_v43  ;;  %3826 = vmatpush.bf16.msrb.mxu1 %v3798_v18  ;;  %v4682_v43 = vor.u32 %v4835_v61, %v4681_v4  ;;  %v4669_v18 = vld [vmem:[#allocation3 + $0x48] sm:$0xf]  ;;  %v4657_v0 = vld [vmem:[#allocation3 + $0x30] sm:$0xf]  ;;  %v4829_v26 = vld [vmem:[#allocation3 + $0x38] sm:$0xf0] }
 0xcfc   :  { %3567 = vst.msk [vmem:[#allocation3 + $0x70] sm:$0xff] %vm5533_vm0, %v3561_v3  ;;  %v3278_v58 = vpop.permute.xlu0 %3277  ;;  %v4659_v27 = vld [vmem:[#allocation3 + $0x3c] sm:$0xf0]  ;;  %v4658_v50 = vor.u32 %v4829_v26, %v4657_v0  ;;  %v7025_v0 = vld [vmem:[#allocation23_spill] sm:$0xff]  ;;  %v7028_v26 = vld [vmem:[#allocation26_spill] sm:$0xff] }
 0xcfd   :  { %v3283_v30 = vrot.slane %v3278_v58, 4 }
 0xcfe   :  { %3801 = vmatpush.bf16.msrb.mxu3 %v4706_v8  ;;  %3814 = vmatpush.bf16.msrb.mxu0 %v4710_v37  ;;  %v4831_v8 = vld [vmem:[#allocation3 + $0x4c] sm:$0xf] }
 0xcff   :  { %3827 = vmatpush.bf16.msrb.mxu1 %v4714_v63  ;;  %v3287_v55 = vsel %vm3286_vm3, %v3278_v58, %v3283_v30  ;;  %v4671_v3 = vld [vmem:[#allocation3 + $0x54] sm:$0xf0]  ;;  %v4833_v35 = vld [vmem:[#allocation3 + $0x58] sm:$0xf0]  ;;  %v4670_v58 = vor.u32 %v4832_v22, %v4669_v18 }
 0xd00   :  { %v3486_v1 = vpop.permute.xlu1 %3485  ;;  %3293 = vst.msk [vmem:[#allocation3 + $0x18] sm:$0xcc] %vm5144_vm11, %v3287_v55  ;;  %v4674_v63 = vor.u32 %v4831_v8, %v4671_v3  ;;  %v4678_v14 = vor.u32 %v4833_v35, %v4677_v17  ;;  %v4822_v35 = vld [vmem:[#allocation3 + $0x4] sm:$0xf]  ;;  %v4641_v8 = vld [vmem:[#allocation3 + $0x8] sm:$0xf] }
 0xd01   :  { %v3489_v62 = vrot.slane %v3486_v1, 4  ;;  %v7024_v17 = vld [vmem:[#allocation21_spill] sm:$0xff]  ;;  %vm7043_vm11 = vcmask 261120  }
 0xd02   :  { %3802 = vmatpush.bf16.msrb.mxu3 %v4694_v44  ;;  %3815 = vmatpush.bf16.msrb.mxu0 %v4698_v46  ;;  %v4830_v46 = vld [vmem:[#allocation3 + $0x40] sm:$0xf0] }
 0xd03   :  { %v3493_v6 = vsel %vm3490_vm2, %v3486_v1, %v3489_v62  ;;  %3828 = vmatpush.bf16.msrb.mxu1 %v4702_v9  ;;  %v4683_v7 = vld [vmem:[#allocation3 + $0x6c] sm:$0xf0]  ;;  %v4836_v23 = vld [vmem:[#allocation3 + $0x70] sm:$0xf0] }
 0xd04   :  { %3499 = vst.msk [vmem:[#allocation3 + $0x34] sm:$0xff] %vm5533_vm0, %v3493_v6  ;;  %v4686_v19 = vor.u32 %v4834_v16, %v4683_v7  ;;  %v4690_v52 = vor.u32 %v4836_v23, %v4689_v28  ;;  %v3482_v38 = vpop.permute.xlu0 %3481  ;;  %v4826_v16 = vld [vmem:[#allocation3 + $0x20] sm:$0xf0]  ;;  %v4633_v6 = vld [vmem:[#allocation3] sm:$0xf] }
 0xd05   :  { %v3487_v60 = vrot.slane %v3482_v38, 4  ;;  %v4823_v7 = vld [vmem:[#allocation3 + $0x8] sm:$0xf0] }
 0xd06   :  { %3803 = vmatpush.bf16.msrb.mxu3 %v4682_v43  ;;  %3816 = vmatpush.bf16.msrb.mxu0 %v4686_v19  ;;  %v4634_v43 = vor.u32 %v4823_v7, %v4633_v6  ;;  %v7041_v6 = vld [vmem:[#allocation45_spill] sm:$0xff]  ;;  %v7042_v7 = vld [vmem:[#allocation47_spill] sm:$0xff] }
 0xd07   :  { %3829 = vmatpush.bf16.msrb.mxu1 %v4690_v52  ;;  %v3491_v37 = vsel %vm3490_vm2, %v3482_v38, %v3487_v60  ;;  %v4645_v61 = vld [vmem:[#allocation3 + $0x18] sm:$0xf]  ;;  %v4630_v60 = vld [vmem:[%s6676_s1 + $0x8] sm:$0x3] }
 0xd08   :  { %v3484_v36 = vpop.permute.xlu1 %3483  ;;  %3497 = vst.msk [vmem:[#allocation3 + $0x1c] sm:$0xcc] %vm5165_vm1, %v3491_v37  ;;  %v4646_v23 = vor.u32 %v4826_v16, %v4645_v61  ;;  %vm3787_vm1 = vcmask 982016   ;;  %v7038_v61 = vld [vmem:[#allocation38_spill] sm:$0xff] }
 0xd09   :  { %v3488_v30 = vrot.slane %v3484_v36, 4  ;;  %v7040_v16 = vld [vmem:[#allocation42_spill] sm:$0xff] }
 0xd0a   :  { %3804 = vmatpush.bf16.msrb.mxu3 %v4670_v58  ;;  %3817 = vmatpush.bf16.msrb.mxu0 %v4674_v63  ;;  %v7023_v63 = vld [vmem:[#allocation41_spill] sm:$0xff] }
 0xd0b   :  { %v3492_v55 = vsel %vm3490_vm2, %v3484_v36, %v3488_v30  ;;  %3830 = vmatpush.bf16.msrb.mxu1 %v4678_v14  ;;  %v4828_v1 = vld [vmem:[#allocation3 + $0x34] sm:$0xf]  ;;  %v4665_v44 = vld [vmem:[#allocation3 + $0x38] sm:$0xf]  ;;  %v7027_v14 = vld [vmem:[#allocation25_spill] sm:$0xff] }
 0xd0c   :  { %3498 = vst.msk [vmem:[#allocation3 + $0x28] sm:$0xff] %vm5533_vm0, %v3492_v55  ;;  %v4662_v62 = vor.u32 %v4828_v1, %v4659_v27  ;;  %v4666_v9 = vor.u32 %v4830_v46, %v4665_v44  ;;  %v3446_v47 = vpop.permute.xlu0 %3445  ;;  %v7026_v30 = vld [vmem:[#allocation24_spill] sm:$0xff]  ;;  %v7029_v27 = vld [vmem:[#allocation27_spill] sm:$0xff]  ;;  %v7031_v1 = vld [vmem:[#allocation30_spill] sm:$0xff] }
 0xd0d   :  { %v3450_v4 = vrot.slane %v3446_v47, 4  ;;  %v7030_v55 = vld [vmem:[#allocation28_spill] sm:$0xff]  ;;  %v7032_v44 = vld [vmem:[#allocation29_spill] sm:$0xff]  ;;  %v7033_v46 = vld [vmem:[#allocation31_spill] sm:$0xff] }
 0xd0e   :  { %3805 = vmatpush.bf16.msrb.mxu3 %v4658_v50  ;;  %3818 = vmatpush.bf16.msrb.mxu0 %v4662_v62  ;;  %v7034_v50 = vld [vmem:[#allocation35_spill] sm:$0xff]  ;;  %v7035_v62 = vld [vmem:[#allocation50_spill] sm:$0xff] }
 0xd0f   :  { %3831 = vmatpush.bf16.msrb.mxu1 %v4666_v9  ;;  %v3454_v28 = vsel %vm3452_vm13, %v3446_v47, %v3450_v4  ;;  %v4825_v19 = vld [vmem:[#allocation3 + $0x1c] sm:$0xf]  ;;  %v4653_v38 = vld [vmem:[#allocation3 + $0x20] sm:$0xf]  ;;  %v7036_v9 = vld [vmem:[#allocation36_spill] sm:$0xff] }
 0xd10   :  { %3460 = vst.msk [vmem:[#allocation3 + $0x10] sm:$0xff] %vm5533_vm0, %v3454_v28  ;;  %v7037_v47 = vld [vmem:[#allocation51_spill] sm:$0xff]  ;;  %vm7044_vm0 = vmmov %vm7043_vm11 }
 0xd11   :  { %v7039_v4 = vld [vmem:[#allocation39_spill] sm:$0xff]  ;;  %vm7045_vm5 = vmmov %vm7044_vm0 }
 0xd12   :  { %3806 = vmatpush.bf16.msrb.mxu3 %v4646_v23  ;;  %vm7053_vm3 = vmmov %vm7044_vm0 }
 0xd13   :  { %v4647_v52 = vld [vmem:[#allocation3 + $0x24] sm:$0xf0]  ;;  %v4827_v18 = vld [vmem:[#allocation3 + $0x28] sm:$0xf0]  ;;  %vm7054_vm12 = vmmov %vm7044_vm0 }
 0xd14   :  { %v4650_v22 = vor.u32 %v4825_v19, %v4647_v52  ;;  %v4654_v3 = vor.u32 %v4827_v18, %v4653_v38  ;;  %vm7055_vm9 = vmmov %vm7044_vm0 }
 0xd16   :  { %3807 = vmatpush.bf16.msrb.mxu3 %v4634_v43  ;;  %3819 = vmatpush.bf16.msrb.mxu0 %v4650_v22 }
 0xd17   :  { %3832 = vmatpush.bf16.msrb.mxu1 %v4654_v3  ;;  %v4635_v25 = vld [vmem:[#allocation3 + $0xc] sm:$0xf0]  ;;  %v4824_v37 = vld [vmem:[#allocation3 + $0x10] sm:$0xf0] }
 0xd18   :  { %v4638_v36 = vor.u32 %v4822_v35, %v4635_v25  ;;  %v4642_v58 = vor.u32 %v4824_v37, %v4641_v8 }
 0xd19   :  { %4715 = vmatmul.msk.bf16.vlgmr.msrb.gmra.mxu3 %vm3787_vm1, %v4630_v60 }
 0xd1a   :  { %3858 = vmatpush.bf16.msra.mxu3 %v5190_v59  ;;  %3820 = vmatpush.bf16.msrb.mxu0 %v4638_v36 }
 0xd1b   :  { %3833 = vmatpush.bf16.msrb.mxu1 %v4642_v58 }
 0xd1d   :  { %4716 = vmatmul.msk.bf16.vlgmr.msrb.gmra.mxu0 %vm3787_vm1, %v4630_v60 }
 0xd1e   :  { %3859 = vmatpush.bf16.msra.mxu3 %v5201_v5  ;;  %3877 = vmatpush.bf16.msra.mxu0 %v5234_v51 }
 0xd1f   :  { %3884 = vmatpush.bf16.msra.mxu1 %v5207_v20 }
 0xd20   :  { %4717 = vmatmul.msk.bf16.vlgmr.msrb.gmra.mxu1 %vm3787_vm1, %v4630_v60 }
 0xd22   :  { %3860 = vmatpush.bf16.msra.mxu3 %v5210_v21  ;;  %3878 = vmatpush.bf16.msra.mxu0 %v5283_v53 }
 0xd23   :  { %3885 = vmatpush.bf16.msra.mxu1 %v5215_v32 }
 0xd26   :  { %3916 = vmatpush.bf16.msrb.mxu0 %v6973_v42  ;;  %3861 = vmatpush.bf16.msra.mxu3 %v5218_v34 }
 0xd27   :  { %3886 = vmatpush.bf16.msra.mxu1 %v5226_v41 }
 0xd2a   :  { %3917 = vmatpush.bf16.msrb.mxu0 %v7023_v63  ;;  %3862 = vmatpush.bf16.msra.mxu3 %v7024_v17 }
 0xd2b   :  { %3887 = vmatpush.bf16.msra.mxu1 %v7025_v0 }
 0xd2e   :  { %3863 = vmatpush.bf16.msra.mxu3 %v7026_v30 }
 0xd2f   :  { %3888 = vmatpush.bf16.msra.mxu1 %v7027_v14 }
 0xd32   :  { %3864 = vmatpush.bf16.msra.mxu3 %v7028_v26 }
 0xd33   :  { %3889 = vmatpush.bf16.msra.mxu1 %v7029_v27 }
 0xd36   :  { %3865 = vmatpush.bf16.msra.mxu3 %v7030_v55 }
 0xd37   :  { %3890 = vmatpush.bf16.msra.mxu1 %v7031_v1 }
 0xd3a   :  { %3923 = vmatpush.bf16.msrb.mxu3 %v7032_v44 }
 0xd3b   :  { %3891 = vmatpush.bf16.msra.mxu1 %v7033_v46 }
 0xd3e   :  { %3924 = vmatpush.bf16.msrb.mxu3 %v7034_v50 }
 0xd3f   :  { %3955 = vmatpush.bf16.msrb.mxu1 %v7035_v62 }
 0xd42   :  { %3925 = vmatpush.bf16.msrb.mxu3 %v7036_v9 }
 0xd43   :  { %3956 = vmatpush.bf16.msrb.mxu1 %v7037_v47 }
 0xd46   :  { %3926 = vmatpush.bf16.msrb.mxu3 %v7038_v61 }
 0xd4a   :  { %3927 = vmatpush.bf16.msrb.mxu3 %v7039_v4 }
 0xd4e   :  { %3928 = vmatpush.bf16.msrb.mxu3 %v7040_v16 }
 0xd52   :  { %3929 = vmatpush.bf16.msrb.mxu3 %v7041_v6 }
 0xd56   :  { %3930 = vmatpush.bf16.msrb.mxu3 %v7042_v7 }
 0xd9a   :  { %v6563_v28 = vpop.f32.mrf.mxu0 }
 0xd9b   :  { %v3840_v43 = vpack.c.bf16 %v6563_v28, %v6563_v28 }
 0xd9c   :  { %v6571_v52 = vpop.f32.mrf.mxu3 }
 0xd9d   :  { %v6565_v23 = vpop.f32.mrf.mxu1  ;;  %v3839_v38 = vpack.c.bf16 %v6571_v52, %v6571_v52  ;;  %3866 = vmatmul.bf16.vlgmr.msra.gmra.mxu3 %v3840_v43 }
 0xd9e   :  { %v3841_v19 = vpack.c.bf16 %v6565_v23, %v6565_v23  ;;  %4006 = vmatpush.bf16.msra.mxu3 %v5234_v51 }
 0xd9f   :  { %3853 = vmatmul.bf16.vlgmr.msrb.gmra.mxu2 %v3839_v38  ;;  %3892 = vmatmul.bf16.vlgmr.msra.gmra.mxu1 %v3839_v38 }
 0xda0   :  { %4718 = vmatmul.msk.bf16.vlgmr.msra.gmra.mxu0 %vm7043_vm11, %v3841_v19  ;;  %3974 = vmatpush.bf16.msrb.mxu2 %v5181_v48  ;;  %v7046_v48 = vld [vmem:[#allocation43_spill] sm:$0xff] }
 0xda1   :  { %3936 = vmatpush.bf16.msra.mxu0 %v6883_v40  ;;  %3987 = vmatpush.bf16.msra.mxu1 %v5190_v59  ;;  %v7048_v59 = vld [vmem:[#allocation40_spill] sm:$0xff] }
 0xda2   :  { %v3824_v22 = vpop.f32.mrf.mxu0  ;;  %4007 = vmatpush.bf16.msra.mxu3 %v5283_v53 }
 0xda4   :  { %v3811_v3 = vpop.f32.mrf.mxu3  ;;  %3975 = vmatpush.bf16.msrb.mxu2 %v5186_v54  ;;  %v7047_v54 = vld [vmem:[#allocation34_spill] sm:$0xff] }
 0xda5   :  { %v3837_v18 = vpop.f32.mrf.mxu1  ;;  %3937 = vmatpush.bf16.msra.mxu0 %v6885_v24  ;;  %3988 = vmatpush.bf16.msra.mxu1 %v5201_v5  ;;  %v7050_v5 = vld [vmem:[#allocation46_spill] sm:$0xff] }
 0xda8   :  { %3976 = vmatpush.bf16.msrb.mxu2 %v5194_v2  ;;  %v7049_v2 = vld [vmem:[#allocation44_spill] sm:$0xff] }
 0xda9   :  { %3938 = vmatpush.bf16.msra.mxu0 %v5273_v31  ;;  %3989 = vmatpush.bf16.msra.mxu1 %v5210_v21  ;;  %v7052_v21 = vld [vmem:[#allocation49_spill] sm:$0xff] }
 0xdac   :  { %3977 = vmatpush.bf16.msrb.mxu2 %v6937_v49 }
 0xdad   :  { %3939 = vmatpush.bf16.msra.mxu0 %v5280_v45  ;;  %3990 = vmatpush.bf16.msra.mxu1 %v5218_v34 }
 0xdae   :  { %3931 = vmatmul.bf16.vlgmr.msrb.gmra.mxu3 %v3839_v38 }
 0xdaf   :  { %3905 = vmatmul.bf16.vlgmr.msra.gmra.mxu2 %v3840_v43  ;;  %4720 = vmatmul.msk.bf16.vlgmr.msrb.gmra.mxu1 %vm7045_vm5, %v3841_v19 }
 0xdb0   :  { %4719 = vmatmul.msk.bf16.vlgmr.msrb.gmra.mxu0 %vm7044_vm0, %v3841_v19  ;;  %3978 = vmatpush.bf16.msrb.mxu2 %v6938_v12 }
 0xdb1   :  { %3940 = vmatpush.bf16.msra.mxu0 %v5293_v10  ;;  %3991 = vmatpush.bf16.msra.mxu1 %v7024_v17 }
 0xdb2   :  { %4026 = vmatpush.bf16.msrb.mxu3 %v5287_v57 }
 0xdb4   :  { %3979 = vmatpush.bf16.msrb.mxu2 %v6939_v29 }
 0xdb5   :  { %3941 = vmatpush.bf16.msra.mxu0 %v5305_v33  ;;  %3992 = vmatpush.bf16.msra.mxu1 %v7026_v30 }
 0xdb6   :  { %4027 = vmatpush.bf16.msrb.mxu3 %v5295_v11 }
 0xdb8   :  { %3980 = vmatpush.bf16.msrb.mxu2 %v6968_v13 }
 0xdb9   :  { %3942 = vmatpush.bf16.msra.mxu0 %v5314_v56  ;;  %3993 = vmatpush.bf16.msra.mxu1 %v7028_v26 }
 0xdba   :  { %4028 = vmatpush.bf16.msrb.mxu3 %v5307_v39 }
 0xdbc   :  { %3981 = vmatpush.bf16.msrb.mxu2 %v7047_v54 }
 0xdbd   :  { %3943 = vmatpush.bf16.msra.mxu0 %v7046_v48  ;;  %3994 = vmatpush.bf16.msra.mxu1 %v7030_v55 }
 0xdbe   :  { %4029 = vmatpush.bf16.msrb.mxu3 %v7048_v59 }
 0xdc0   :  { %4045 = vmatpush.bf16.msra.mxu2 %v6973_v42  ;;  %3944 = vmatmul.bf16.vlgmr.msra.gmra.mxu0 %v3840_v43 }
 0xdc1   :  { %4013 = vmatpush.bf16.msrb.mxu0 %v5207_v20  ;;  %4052 = vmatpush.bf16.msrb.mxu1 %v7032_v44  ;;  %v7051_v20 = vld [vmem:[#allocation48_spill] sm:$0xff] }
 0xdc2   :  { %4030 = vmatpush.bf16.msrb.mxu3 %v7049_v2 }
 0xdc4   :  { %4046 = vmatpush.bf16.msra.mxu2 %v7023_v63 }
 0xdc5   :  { %4014 = vmatpush.bf16.msrb.mxu0 %v5215_v32  ;;  %4053 = vmatpush.bf16.msrb.mxu1 %v7034_v50 }
 0xdc6   :  { %4031 = vmatpush.bf16.msrb.mxu3 %v7050_v5 }
 0xdc9   :  { %4015 = vmatpush.bf16.msrb.mxu0 %v5226_v41  ;;  %4054 = vmatpush.bf16.msrb.mxu1 %v7036_v9 }
 0xdca   :  { %4032 = vmatpush.bf16.msrb.mxu3 %v7051_v20 }
 0xdcd   :  { %4016 = vmatpush.bf16.msrb.mxu0 %v7025_v0  ;;  %4055 = vmatpush.bf16.msrb.mxu1 %v7038_v61 }
 0xdce   :  { %4033 = vmatpush.bf16.msrb.mxu3 %v7052_v21 }
 0xdd1   :  { %4017 = vmatpush.bf16.msrb.mxu0 %v7027_v14  ;;  %4056 = vmatpush.bf16.msrb.mxu1 %v7039_v4 }
 0xdd5   :  { %4018 = vmatpush.bf16.msrb.mxu0 %v7029_v27  ;;  %4057 = vmatpush.bf16.msrb.mxu1 %v7040_v16 }
 0xdd9   :  { %4019 = vmatpush.bf16.msrb.mxu0 %v7031_v1  ;;  %4058 = vmatpush.bf16.msrb.mxu1 %v7041_v6 }
 0xddd   :  { %4020 = vmatpush.bf16.msrb.mxu0 %v7033_v46  ;;  %4059 = vmatpush.bf16.msrb.mxu1 %v7042_v7 }
 0xde1   :  { %4084 = vmatpush.bf16.msra.mxu0 %v7035_v62 }
 0xde5   :  { %4085 = vmatpush.bf16.msra.mxu0 %v7037_v47 }
 0xe1c   :  { %v3893_v34 = vpop.f32.mrf.mxu1 }
 0xe1d   :  { %v3880_v32 = vpop.f32.mrf.mxu0 }
 0xe20   :  { %v3867_v41 = vpop.f32.mrf.mxu3 }
 0xe22   :  { %v3854_v51 = vpop.f32.mrf.mxu2 }
 0xe23   :  { %v3868_v53 = vadd.f32 %v3867_v41, %v3854_v51 }
 0xe24   :  { %v3895_v11 = vpop.f32.mrf.mxu1 }
 0xe25   :  { %v3882_v57 = vpop.f32.mrf.mxu0  ;;  %v3881_v39 = vadd.f32 %v3880_v32, %v3868_v53 }
 0xe27   :  { %v6633_v49 = vsub.f32 %v6571_v52, %v3881_v39 }
 0xe28   :  { %v3869_v29 = vpop.f32.mrf.mxu3 }
 0xe29   :  { %v3965_v12 = vmul.f32 %v6633_v49, %v6633_v49 }
 0xe2a   :  { %v3856_v13 = vpop.f32.mrf.mxu2 }
 0xe2b   :  { %v3968_v42 = vpack.c.bf16 %v3965_v12, %v3965_v12  ;;  %v4724_v12 = vld [vmem:[%s6677_s2 + $0xc] sm:$0x7]  ;;  %s5077_s2 = smov [#allocation10]  }
 0xe2c   :  { %v3958_v35 = vpop.f32.mrf.mxu1  ;;  %s4185_s10 = sshll.u32 %s5077_s2, 4  ;;  %s4186_s10 = int_to_ptr.vmem [resolvable:$true] %s4185_s10 }
 0xe2d   :  { %v3919_v60 = vpop.f32.mrf.mxu0  ;;  %3982 = vmatmul.bf16.vlgmr.msrb.gmra.mxu2 %v3968_v42  ;;  %4021 = vmatmul.bf16.vlgmr.msrb.gmra.mxu0 %v3968_v42 }
 0xe2e   :  { %4065 = vmatpush.bf16.msrb.mxu2 %v6883_v40 }
 0xe31   :  { %v3932_v25 = vpop.f32.mrf.mxu3 }
 0xe32   :  { %v3906_v8 = vpop.f32.mrf.mxu2  ;;  %4066 = vmatpush.bf16.msrb.mxu2 %v6885_v24 }
 0xe33   :  { %v3907_v37 = vadd.f32 %v3906_v8, %v3893_v34  ;;  %v4137_v8 = vld [vmem:[#allocation7 + $0xc] sm:$0x7] }
 0xe34   :  { %v3960_v58 = vpop.f32.mrf.mxu1 }
 0xe35   :  { %v3921_v36 = vpop.f32.mrf.mxu0  ;;  %v3920_v63 = vadd.f32 %v3919_v60, %v3907_v37 }
 0xe36   :  { %4067 = vmatpush.bf16.msrb.mxu2 %v5273_v31 }
 0xe37   :  { %v6641_v17 = vsub.f32 %v6563_v28, %v3920_v63  ;;  %v4139_v63 = vperm.slane %v4137_v8, 0 }
 0xe39   :  { %v3966_v0 = vmul.f32 %v6641_v17, %v6641_v17  ;;  %v3934_v30 = vpop.f32.mrf.mxu3 }
 0xe3a   :  { %v3908_v14 = vpop.f32.mrf.mxu2  ;;  %4068 = vmatpush.bf16.msrb.mxu2 %v5280_v45 }
 0xe3b   :  { %v3969_v40 = vpack.c.bf16 %v3966_v0, %v3966_v0  ;;  %v4128_v14 = vperm.slane %v4724_v12, 1 }
 0xe3d   :  { %v3945_v26 = vpop.f32.mrf.mxu0  ;;  %3995 = vmatmul.bf16.vlgmr.msra.gmra.mxu1 %v3969_v40 }
 0xe3e   :  { %v3946_v27 = vadd.f32 %v3945_v26, %v3932_v25  ;;  %4069 = vmatpush.bf16.msrb.mxu2 %v5293_v10  ;;  %v4129_v26 = vperm.slane %v4724_v12, 2 }
 0xe40   :  { %v3959_v24 = vadd.f32 %v3958_v35, %v3946_v27  ;;  %v4127_v35 = vperm.slane %v4724_v12, 0 }
 0xe42   :  { %v6648_v55 = vsub.f32 %v6565_v23, %v3959_v24  ;;  %4070 = vmatpush.bf16.msrb.mxu2 %v5305_v33  ;;  %v4140_v24 = vperm.slane %v4137_v8, 1 }
 0xe44   :  { %v3967_v31 = vmul.f32 %v6648_v55, %v6648_v55 }
 0xe45   :  { %v3947_v1 = vpop.f32.mrf.mxu0 }
 0xe46   :  { %v3970_v44 = vpack.c.bf16 %v3967_v31, %v3967_v31  ;;  %4071 = vmatpush.bf16.msrb.mxu2 %v5314_v56  ;;  %v4141_v1 = vperm.slane %v4137_v8, 2 }
 0xe48   :  { %4721 = vmatmul.msk.bf16.vlgmr.msra.gmra.mxu3 %vm7053_vm3, %v3970_v44  ;;  %4722 = vmatmul.msk.bf16.vlgmr.msra.gmra.mxu2 %vm7054_vm12, %v3970_v44  ;;  %vm7056_vm3 = vcmask 1043456  }
 0xe49   :  { %4723 = vmatmul.msk.bf16.vlgmr.msra.gmra.mxu0 %vm7055_vm9, %v3970_v44  ;;  %vm7057_vm12 = vmmov %vm7056_vm3  ;;  %vm7058_vm9 = vcmask 916480  }
 0xe4a   :  { %4072 = vmatpush.bf16.msrb.mxu2 %v7046_v48 }
 0xe4d   :  { %4060 = vmatmul.bf16.vlgmr.msrb.gmra.mxu1 %v3968_v42 }
 0xe58   :  { %4034 = vmatmul.bf16.vlgmr.msrb.gmra.mxu3 %v3969_v40  ;;  %4073 = vmatmul.bf16.vlgmr.msrb.gmra.mxu2 %v3969_v40 }
 0xeaa   :  { %v4022_v45 = vpop.f32.mrf.mxu0 }
 0xeab   :  { %v4023_v18 = vadd.f32 1e-05, %v4022_v45 }
 0xeb0   :  { %v3983_v10 = vpop.f32.mrf.mxu2 }
 0xeb1   :  { %v3984_v47 = vadd.f32 1e-05, %v3983_v10 }
 0xeb2   :  { %v4024_v33 = vpop.f32.mrf.mxu0 }
 0xeb8   :  { %v3985_v46 = vpop.f32.mrf.mxu2 }
 0xeb9   :  { %v4156_v46 = vpop.permute.xlu1 %4155 }
 0xeba   :  { %v3996_v50 = vpop.f32.mrf.mxu1 }
 0xebb   :  { %v3997_v56 = vadd.f32 %v3996_v50, %v3984_v47 }
 0xec2   :  { %v3998_v62 = vpop.f32.mrf.mxu1 }
 0xec6   :  { %v4087_v9 = vpop.f32.mrf.mxu0 }
 0xeca   :  { %v4061_v6 = vpop.f32.mrf.mxu1 }
 0xecb   :  { %v4009_v61 = vpop.f32.mrf.mxu3  ;;  %v4048_v4 = vpop.f32.mrf.mxu2  ;;  %v4062_v22 = vadd.f32 1e-05, %v4061_v6 }
 0xecc   :  { %v4010_v16 = vadd.f32 %v4009_v61, %v3997_v56 }
 0xece   :  { %4919 = vrsqrt.f32 %v4010_v16  ;;  %v4089_v7 = vpop.f32.mrf.mxu0  ;;  %vm4097_vm4 = vweird.f32 %v4010_v16 }
 0xed2   :  { %v4063_v19 = vpop.f32.mrf.mxu1 }
 0xed3   :  { %v4011_v28 = vpop.f32.mrf.mxu3  ;;  %v4050_v23 = vpop.f32.mrf.mxu2 }
 0xed4   :  { %v4920_v43 = vpop.eup %4919 }
 0xed5   :  { %v4092_v52 = vmul.f32 %v4920_v43, %v4010_v16  ;;  %vm4098_vm13 = vweird.f32 %v4920_v43 }
 0xed6   :  { %vm4099_vm6 = vmor %vm4097_vm4, %vm4098_vm13 }
 0xed7   :  { %v4093_v38 = vmul.f32 %v4920_v43, %v4092_v52 }
 0xed9   :  { %v4094_v2 = vmul.f32 0.5, %v4093_v38 }
 0xedb   :  { %v4035_v3 = vpop.f32.mrf.mxu3  ;;  %v4074_v48 = vpop.f32.mrf.mxu2  ;;  %v4095_v21 = vsub.f32 1.5, %v4094_v2 }
 0xedc   :  { %v4036_v54 = vadd.f32 %v4035_v3, %v4023_v18  ;;  %v4075_v59 = vadd.f32 %v4074_v48, %v4062_v22 }
 0xedd   :  { %v4096_v41 = vmul.f32 %v4920_v43, %v4095_v21 }
 0xede   :  { %v4049_v5 = vadd.f32 %v4048_v4, %v4036_v54  ;;  %v4088_v20 = vadd.f32 %v4087_v9, %v4075_v59 }
 0xedf   :  { %v4100_v39 = vsel %vm4099_vm6, %v4920_v43, %v4096_v41 }
 0xee0   :  { %4921 = vrsqrt.f32 %v4049_v5  ;;  %v4121_v60 = vmul.f32 %v4100_v39, %v6633_v49  ;;  %vm4107_vm7 = vweird.f32 %v4049_v5  ;;  %vm4117_vm2 = vweird.f32 %v4088_v20 }
 0xee1   :  { %4923 = vrsqrt.f32 %v4088_v20 }
 0xee2   :  { %v4133_v0 = vmul.f32 %v4127_v35, %v4121_v60 }
 0xee3   :  { %v4037_v32 = vpop.f32.mrf.mxu3  ;;  %v4076_v34 = vpop.f32.mrf.mxu2 }
 0xee4   :  { %v4145_v45 = vadd.f32 %v4139_v63, %v4133_v0 }
 0xee6   :  { %v4922_v51 = vpop.eup %4921  ;;  %v4158_v9 = vmul.f32 %v4156_v46, %v4145_v45  ;;  %vm4148_vm5 = vcmp.gt.f32.partialorder %v4145_v45, 0.0 }
 0xee7   :  { %v4924_v53 = vpop.eup %4923  ;;  %v4102_v57 = vmul.f32 %v4922_v51, %v4049_v5  ;;  %vm4108_vm10 = vweird.f32 %v4922_v51 }
 0xee8   :  { %v4112_v11 = vmul.f32 %v4924_v53, %v4088_v20  ;;  %vm4118_vm8 = vweird.f32 %v4924_v53  ;;  %vm4109_vm14 = vmor %vm4107_vm7, %vm4108_vm10  ;;  %v4161_v16 = vsel %vm4148_vm5, %v4145_v45, %v4158_v9 }
 0xee9   :  { %v4103_v29 = vmul.f32 %v4922_v51, %v4102_v57  ;;  %vm4119_vm1 = vmor %vm4117_vm2, %vm4118_vm8 }
 0xeea   :  { %v4113_v13 = vmul.f32 %v4924_v53, %v4112_v11 }
 0xeeb   :  { %v4104_v42 = vmul.f32 0.5, %v4103_v29 }
 0xeec   :  { %v4114_v25 = vmul.f32 0.5, %v4113_v13 }
 0xeed   :  { %v4105_v37 = vsub.f32 1.5, %v4104_v42 }
 0xeee   :  { %v4115_v36 = vsub.f32 1.5, %v4114_v25 }
 0xeef   :  { %v4106_v58 = vmul.f32 %v4922_v51, %v4105_v37 }
 0xef0   :  { %v4116_v30 = vmul.f32 %v4924_v53, %v4115_v36 }
 0xef1   :  { %v4110_v40 = vsel %vm4109_vm14, %v4922_v51, %v4106_v58 }
 0xef2   :  { %v4122_v49 = vmul.f32 %v4110_v40, %v6641_v17  ;;  %v4120_v27 = vsel %vm4119_vm1, %v4924_v53, %v4116_v30 }
 0xef3   :  { %v4123_v31 = vmul.f32 %v4120_v27, %v6648_v55 }
 0xef4   :  { %v4134_v44 = vmul.f32 %v4128_v14, %v4122_v49 }
 0xef5   :  { %v4135_v10 = vmul.f32 %v4129_v26, %v4123_v31 }
 0xef6   :  { %v4146_v33 = vadd.f32 %v4140_v24, %v4134_v44 }
 0xef7   :  { %v4147_v50 = vadd.f32 %v4141_v1, %v4135_v10 }
 0xef8   :  { %vm4149_vm11 = vcmp.gt.f32.partialorder %v4146_v33, 0.0  ;;  %v4159_v62 = vmul.f32 %v4156_v46, %v4146_v33 }
 0xef9   :  { %vm4150_vm0 = vcmp.gt.f32.partialorder %v4147_v50, 0.0  ;;  %v4160_v47 = vmul.f32 %v4156_v46, %v4147_v50 }
 0xefa   :  { %v4162_v56 = vsel %vm4149_vm11, %v4146_v33, %v4159_v62 }
 0xefb   :  { %v4163_v61 = vsel %vm4150_vm0, %v4147_v50, %v4160_v47  ;;  %v4166_v17 = vrot.slane %v4162_v56, 4 }
 0xefc   :  { %v4171_v4 = vrot.slane %v4163_v61, 4 }
 0xefd   :  { %v4167_v55 = vsel %vm7056_vm3, %v4161_v16, %v4166_v17 }
 0xefe   :  { %v4172_v6 = vsel %vm7057_vm12, %v4162_v56, %v4171_v4  ;;  %4169 = vst.msk [vmem:[#allocation10] sm:$0xff] %vm5525_vm15, %v4167_v55 }
 0xeff   :  { %4173 = vrot.lane.b32.xlu2 %v4172_v6, %s5043_s17 }
 0xf59   :  { %v4174_v7 = vpop.permute.xlu2 %4173 }
 0xf5a   :  { %v4175_v28 = vrot.slane %v4174_v7, 4 }
 0xf5c   :  { %v4177_v23 = vsel %vm7058_vm9, %v4174_v7, %v4175_v28 }
 0xf5d   :  { %4180 = vst.msk [vmem:[#allocation10 + $0x8] sm:$0xff] %vm5525_vm15, %v4177_v23 }
 0xf5e   :  { %4193 = dma.vmem_to_hbm [thread:$0]  %s4186_s10, 256, %s4188_s14, [#allocation6], %s5078_s0, %s5078_s0, %s5079_s15  }
 0xf5f   :  { %5029 = dma.done.wait [#allocation6], 256  }
 0xf60   :  { %5030 = vsyncadd [#allocation6], 4294967040 }
 0xf61   :  { %4198 = vsyncpa [#allocation5], 1 }
 0xf62   :  { %4199 = vsyncpa [#allocation8], 1 }
 0xf63   :  { %4200 = vsyncpa [#allocation6], 1 }

</bundles_post_ra>
